<compile_context>
chip_gen: v5e
topology: v5e:2x2
jax: 0.10.0
libtpu: 0.0.40
codegen_flags: <defaults>
</compile_context>

<pallas_src>
import jax
import jax.numpy as jnp
import numpy as np
from jax.experimental import pallas as pl
from jax.experimental.pallas import tpu as pltpu


def _round_up(a, m):
    return (a + m - 1) // m * m


# ----------------------------------------------------------------------------
# Pallas kernel: one batch tile of walks, full forward pass.
# ----------------------------------------------------------------------------
def _discriminator_kernel(x_ref,      # (rw_len*TB, NpW) time-major slab: [one-hot nodes | edge-w | 0-pad]
                          weff_ref,   # (NpW, 4*Hg)      combined (W_down^T @ W_x^T | w_w^T), gate-reordered/padded
                          b_ref,      # (1, 4*Hg)        LSTM bias (+1.0 folded into forget block), f32
                          wh_ref,     # (Hg, 4*Hg)       recurrent weight^T, gate-reordered/padded
                          wout_ref,   # (Hg, 128)        lin_out weight^T, col 0 real, rest zero
                          bout_ref,   # (1, 128)         lin_out bias (col 0 real)
                          out_ref,    # (TB, 128)        prediction tile (col 0 real)
                          gx_ref,     # scratch (rw_len*TB, 4*Hg) f32
                          hx_ref,     # scratch (TB, Hg) f32
                          cx_ref):    # scratch (TB, Hg) f32
    M = x_ref.shape[0]
    TB, Hg = hx_ref.shape
    rw_len = M // TB

    # --- hoisted non-recurrent matmul: all timesteps of this batch tile ------
    gx_ref[...] = (jnp.dot(x_ref[...], weff_ref[...],
                           preferred_element_type=jnp.float32)
                   + b_ref[...])                                  # (M, 4*Hg)

    hx_ref[...] = jnp.zeros_like(hx_ref)
    cx_ref[...] = jnp.zeros_like(cx_ref)

    # --- recurrence: only hx @ W_h^T + gate nonlinearities per step ----------
    def step(i, carry):
        start = pl.multiple_of(i * TB, TB)
        gates = gx_ref[pl.ds(start, TB), :] + jnp.dot(
            hx_ref[...], wh_ref[...], preferred_element_type=jnp.float32)
        # gate order (reordered in the wrapper): ingate | forgetgate | outgate | cellgate
        # -> one sigmoid over 3*Hg lanes + one tanh; all slices 128-lane aligned.
        sg = jax.nn.sigmoid(gates[:, :3 * Hg])
        ingate = sg[:, :Hg]
        forgetgate = sg[:, Hg:2 * Hg]
        outgate = sg[:, 2 * Hg:3 * Hg]
        cellgate = jnp.tanh(gates[:, 3 * Hg:])
        cx = cx_ref[...] * forgetgate + ingate * cellgate
        cx_ref[...] = cx
        hx_ref[...] = outgate * jnp.tanh(cx)
        return carry

    jax.lax.fori_loop(0, rw_len, step, 0, unroll=True)

    # lane-dense output store (col 0 holds the prediction, rest is zero + bias pad)
    out_ref[...] = (jnp.dot(hx_ref[...], wout_ref[...],
                            preferred_element_type=jnp.float32) + bout_ref[...])


# ----------------------------------------------------------------------------
# Wrapper: weight prep / layout plumbing + pallas_call with a parallel grid.
# ----------------------------------------------------------------------------
def discriminator_forward(x, params, *, N, H, H_inputs, rw_len,
                          input_dtype=jnp.float32):
    """x: (B, rw_len, N+1) — same axis convention as the PyTorch module.

    input_dtype: dtype of the hoisted-matmul operands (x slab and W_eff).
    jnp.bfloat16 halves HBM/VMEM traffic for the dominant input; accumulation
    and the recurrence stay in float32.
    """
    wdown, wcell, bcell, wout, bout = params
    B = x.shape[0]

    # ---- lane/sublane-friendly sizes -----------------------------------------
    Hg = _round_up(H, 128)            # per-gate lane width (128-aligned slices)
    NpW = _round_up(N + 1, 128)       # node one-hots + edge-weight lane, padded

    # batch tile: sublane aligned, up to 256 (v6e/v7x 256-wide MXU);
    # prefer >= 2 grid steps when batch allows it (v7x has 2 TensorCores).
    TB = min(_round_up(B, 8), 256)
    if B > 8 and -(-B // TB) == 1:
        TB = max(8, _round_up(-(-B // 2), 8))
    B_pad = _round_up(B, TB)
    G = B_pad // TB
    M = rw_len * TB

    # ---- input slab: nodes + edge-weight lane together, time-major per tile --
    x = x.astype(jnp.float32)
    x_slab = jnp.pad(x[:, :, :N + 1],
                     ((0, B_pad - B), (0, 0), (0, NpW - (N + 1))))    # (B_pad, rw_len, NpW)
    x_t = (x_slab.reshape(G, TB, rw_len, NpW)
                 .transpose(0, 2, 1, 3)                               # time-major in tile
                 .reshape(G, M, NpW)
                 .astype(input_dtype))

    # ---- gate reorder: [ingate, forgetgate, outgate, cellgate] ---------------
    # original chunk order of wcell rows: ingate, cellgate, forgetgate, outgate
    perm = np.concatenate([np.arange(0, H), np.arange(2 * H, 3 * H),
                           np.arange(3 * H, 4 * H), np.arange(H, 2 * H)])
    wcell_p = wcell[perm]                                             # (4H, H_inputs+1+H)
    w_x_p = wcell_p[:, :H_inputs]                                     # (4H, H_inputs)
    w_w_p = wcell_p[:, H_inputs:H_inputs + 1]                         # (4H, 1)
    w_h_p = wcell_p[:, H_inputs + 1:]                                 # (4H, H)

    # ---- W_eff = [W_down^T @ W_x^T ; w_w^T], gate-block padded to 4*Hg -------
    node_part = wdown.T @ w_x_p.T                                     # (N, 4H)
    weff = jnp.concatenate([node_part, w_w_p.T], axis=0)              # (N+1, 4H)
    weff = jnp.pad(weff.reshape(N + 1, 4, H),
                   ((0, NpW - (N + 1)), (0, 0), (0, Hg - H)))
    weff = weff.reshape(NpW, 4 * Hg).astype(input_dtype)

    # recurrent weight^T, gate-block padded, rows padded to Hg
    wh_t = jnp.pad(w_h_p.T.reshape(H, 4, H),
                   ((0, Hg - H), (0, 0), (0, Hg - H))).reshape(Hg, 4 * Hg)

    # bias: +1.0 folded into forget block (index 1 after the reorder), padded
    b4 = bcell[perm].reshape(4, H).at[1].add(1.0)
    b4 = jnp.pad(b4, ((0, 0), (0, Hg - H))).reshape(1, 4 * Hg).astype(jnp.float32)

    # lin_out weight^T / bias padded to a lane-dense 128-wide output
    wout_t = jnp.pad(wout.T, ((0, Hg - H), (0, 127)))                 # (Hg, 128)
    bout_p = jnp.pad(bout.reshape(1, 1), ((0, 0), (0, 127)))          # (1, 128)

    # ---- explicit VMEM budget (double-buffered inputs + scratch) -------------
    isz = jnp.dtype(input_dtype).itemsize
    vmem_bytes = (
        2 * M * NpW * isz                          # x slab
        + 2 * NpW * 4 * Hg * isz                   # W_eff
        + 2 * (Hg * 4 * Hg + 4 * Hg + Hg * 128 + 128) * 4   # f32 weights/bias
        + 2 * TB * 128 * 4                         # output tile
        + (M * 4 * Hg + 2 * TB * Hg) * 4           # gx / hx / cx scratch
    )
    vmem_limit = int(min(100 * 2**20, max(32 * 2**20, 2 * vmem_bytes)))

    out = pl.pallas_call(
        _discriminator_kernel,
        out_shape=jax.ShapeDtypeStruct((B_pad, 128), jnp.float32),
        grid=(G,),
        in_specs=[
            pl.BlockSpec((None, M, NpW), lambda j: (j, 0, 0)),   # x slab tile
            pl.BlockSpec((NpW, 4 * Hg), lambda j: (0, 0)),       # W_eff
            pl.BlockSpec((1, 4 * Hg), lambda j: (0, 0)),         # bias
            pl.BlockSpec((Hg, 4 * Hg), lambda j: (0, 0)),        # W_h^T
            pl.BlockSpec((Hg, 128), lambda j: (0, 0)),           # W_out^T
            pl.BlockSpec((1, 128), lambda j: (0, 0)),            # b_out
        ],
        out_specs=pl.BlockSpec((TB, 128), lambda j: (j, 0)),
        scratch_shapes=[
            pltpu.VMEM((M, 4 * Hg), jnp.float32),                # precomputed gate-x
            pltpu.VMEM((TB, Hg), jnp.float32),                   # hx
            pltpu.VMEM((TB, Hg), jnp.float32),                   # cx
        ],
        compiler_params=pltpu.CompilerParams(
            dimension_semantics=("parallel",),
            vmem_limit_bytes=vmem_limit),
    )(x_t, weff, b4, wh_t, wout_t, bout_p)

    return out[:B, :1]


# ----------------------------------------------------------------------------
# Pure-JAX reference (mirrors the PyTorch code line-by-line, in float32)
# ----------------------------------------------------------------------------
def discriminator_reference(x, params, *, N, H, H_inputs, rw_len):
    wdown, wcell, bcell, wout, bout = params
    B = x.shape[0]
    x_rw = x[:, :, :N].reshape(-1, N)
    x_w = x[:, :, -1:]
    xa = x_rw @ wdown.T
    xa = xa.reshape(-1, rw_len, H_inputs)
    xc = jnp.concatenate([xa, x_w], axis=2)
    hx = jnp.zeros((B, H), dtype=jnp.float32)
    cx = jnp.zeros((B, H), dtype=jnp.float32)
    for i in range(rw_len):
        g = jnp.concatenate([xc[:, i, :], hx], axis=1) @ wcell.T + bcell
        ingate, cellgate, forgetgate, outgate = jnp.split(g, 4, axis=1)
        ingate = jax.nn.sigmoid(ingate)
        forgetgate = jax.nn.sigmoid(forgetgate + 1.0)
        cellgate = jnp.tanh(cellgate)
        outgate = jax.nn.sigmoid(outgate)
        cx = cx * forgetgate + ingate * cellgate
        hx = outgate * jnp.tanh(cx)
    return hx @ wout.T + bout


# ----------------------------------------------------------------------------
# Deterministic parameter init (xavier_uniform weights, zero biases)
# ----------------------------------------------------------------------------
def _xavier_uniform(key, shape):
    fan_out, fan_in = shape
    bound = float(np.sqrt(6.0 / (fan_in + fan_out)))
    return jax.random.uniform(key, shape, jnp.float32, -bound, bound)


def init_params(key, *, N, H, H_inputs):
    k1, k2, k3 = jax.random.split(key, 3)
    wdown = _xavier_uniform(k1, (H_inputs, N))                  # W_down.weight
    wcell = _xavier_uniform(k2, (4 * H, H_inputs + 1 + H))      # lstmcell.cell.weight
    bcell = jnp.zeros((4 * H,), jnp.float32)                    # lstmcell.cell.bias
    wout = _xavier_uniform(k3, (1, H))                          # lin_out.weight
    bout = jnp.zeros((1,), jnp.float32)                         # lin_out.bias
    return (wdown, wcell, bcell, wout, bout)


if __name__ == "__main__":
    # small shapes consistent with the module
    B, rw_len, N, H_inputs, H = 2, 8, 32, 16, 32

    key = jax.random.PRNGKey(0)
    kx, kp = jax.random.split(key)
    x = jax.random.normal(kx, (B, rw_len, N + 1), jnp.float32)
    params = init_params(kp, N=N, H=H, H_inputs=H_inputs)

    ref = discriminator_reference(x, params, N=N, H=H, H_inputs=H_inputs, rw_len=rw_len)

    # f32 path (exact semantics, modulo f64->f32 of the original module)
    pred = discriminator_forward(x, params, N=N, H=H, H_inputs=H_inputs, rw_len=rw_len)
    pred = jax.block_until_ready(pred)
    np.testing.assert_allclose(np.asarray(pred), np.asarray(ref), rtol=1e-4, atol=1e-4)

    # bf16 hoisted-matmul path (f32 accumulation / recurrence): loose check
    pred_bf16 = discriminator_forward(x, params, N=N, H=H, H_inputs=H_inputs,
                                      rw_len=rw_len, input_dtype=jnp.bfloat16)
    pred_bf16 = jax.block_until_ready(pred_bf16)
    np.testing.assert_allclose(np.asarray(pred_bf16), np.asarray(ref), rtol=0.1, atol=0.1)

    print("KERNEL_OK")
</pallas_src>

<mosaic_0001>
module attributes {stable_mosaic.version = 11 : i64} {
  func.func @_discriminator_kernel(%arg0: i32, %arg1: memref<1x64x128xf32, #tpu.memory_space<vmem>>, %arg2: memref<128x512xf32, #tpu.memory_space<vmem>>, %arg3: memref<1x512xf32, #tpu.memory_space<vmem>>, %arg4: memref<128x512xf32, #tpu.memory_space<vmem>>, %arg5: memref<128x128xf32, #tpu.memory_space<vmem>>, %arg6: memref<1x128xf32, #tpu.memory_space<vmem>>, %arg7: memref<8x128xf32, #tpu.memory_space<vmem>>, %arg8: memref<64x512xf32, #tpu.memory_space<vmem>>, %arg9: memref<8x128xf32, #tpu.memory_space<vmem>>, %arg10: memref<8x128xf32, #tpu.memory_space<vmem>>) attributes {dimension_semantics = [#tpu.dimension_semantics<parallel>], iteration_bounds = array<i64: 1>, scalar_prefetch = 0 : i64, scratch_operands = 3 : i64, tpu.core_type = #tpu.core_type<tc>, window_params = [{transform_indices = @transform_0, window_bounds = array<i64: 1, 64, 128>}, {pipeline_mode = #tpu.pipeline_mode<synchronous>, transform_indices = @transform_1, window_bounds = array<i64: 128, 512>}, {pipeline_mode = #tpu.pipeline_mode<synchronous>, transform_indices = @transform_2, window_bounds = array<i64: 1, 512>}, {pipeline_mode = #tpu.pipeline_mode<synchronous>, transform_indices = @transform_3, window_bounds = array<i64: 128, 512>}, {pipeline_mode = #tpu.pipeline_mode<synchronous>, transform_indices = @transform_4, window_bounds = array<i64: 128, 128>}, {pipeline_mode = #tpu.pipeline_mode<synchronous>, transform_indices = @transform_5, window_bounds = array<i64: 1, 128>}, {transform_indices = @transform_6, window_bounds = array<i64: 8, 128>}]} {
    %c0 = arith.constant 0 : index
    %c0_0 = arith.constant 0 : index
    %c0_1 = arith.constant 0 : index
    %0 = vector.load %arg1[%c0, %c0_0, %c0_1] : memref<1x64x128xf32, #tpu.memory_space<vmem>>, vector<1x64x128xf32>
    %1 = vector.shape_cast %0 : vector<1x64x128xf32> to vector<64x128xf32>
    %c0_2 = arith.constant 0 : index
    %c0_3 = arith.constant 0 : index
    %2 = vector.load %arg2[%c0_2, %c0_3] : memref<128x512xf32, #tpu.memory_space<vmem>>, vector<128x512xf32>
    %cst = arith.constant dense<0.000000e+00> : vector<64x512xf32>
    %3 = tpu.matmul %1, %2, %cst {dimension_numbers = #tpu.dot_dimension_numbers<[1], [0], [0], [1], [0, 0, 1, 1], [], []>} : vector<64x128xf32>, vector<128x512xf32>, vector<64x512xf32> -> vector<64x512xf32>
    %c0_4 = arith.constant 0 : index
    %c0_5 = arith.constant 0 : index
    %4 = vector.load %arg3[%c0_4, %c0_5] : memref<1x512xf32, #tpu.memory_space<vmem>>, vector<1x512xf32>
    %5 = vector.broadcast %4 : vector<1x512xf32> to vector<64x512xf32>
    %6 = arith.addf %3, %5 : vector<64x512xf32>
    %c0_6 = arith.constant 0 : index
    %c0_7 = arith.constant 0 : index
    %7 = vector.load %arg8[%c0_6, %c0_7] : memref<64x512xf32, #tpu.memory_space<vmem>>, vector<64x512xf32>
    tpu.vector_store %arg8[%c0_6, %c0_7], %6 {strides = array<i32>} : memref<64x512xf32, #tpu.memory_space<vmem>>, vector<64x512xf32>,
    %cst_8 = arith.constant 0.000000e+00 : f32
    %8 = vector.broadcast %cst_8 : f32 to vector<8x128xf32>
    %c0_9 = arith.constant 0 : index
    %c0_10 = arith.constant 0 : index
    %9 = vector.load %arg9[%c0_9, %c0_10] : memref<8x128xf32, #tpu.memory_space<vmem>>, vector<8x128xf32>
    tpu.vector_store %arg9[%c0_9, %c0_10], %8 {strides = array<i32>} : memref<8x128xf32, #tpu.memory_space<vmem>>, vector<8x128xf32>,
    %cst_11 = arith.constant 0.000000e+00 : f32
    %10 = vector.broadcast %cst_11 : f32 to vector<8x128xf32>
    %c0_12 = arith.constant 0 : index
    %c0_13 = arith.constant 0 : index
    %11 = vector.load %arg10[%c0_12, %c0_13] : memref<8x128xf32, #tpu.memory_space<vmem>>, vector<8x128xf32>
    tpu.vector_store %arg10[%c0_12, %c0_13], %10 {strides = array<i32>} : memref<8x128xf32, #tpu.memory_space<vmem>>, vector<8x128xf32>,
    %c0_i32 = arith.constant 0 : i32
    %c8_i32 = arith.constant 8 : i32
    %12 = arith.muli %c0_i32, %c8_i32 : i32
    %13 = tpu.assume_multiple %12, 8 : i32
    %14 = arith.index_cast %13 : i32 to index
    %c0_14 = arith.constant 0 : index
    %15 = vector.load %arg8[%14, %c0_14] : memref<64x512xf32, #tpu.memory_space<vmem>>, vector<8x512xf32>
    %c0_15 = arith.constant 0 : index
    %c0_16 = arith.constant 0 : index
    %16 = vector.load %arg9[%c0_15, %c0_16] : memref<8x128xf32, #tpu.memory_space<vmem>>, vector<8x128xf32>
    %c0_17 = arith.constant 0 : index
    %c0_18 = arith.constant 0 : index
    %17 = vector.load %arg4[%c0_17, %c0_18] : memref<128x512xf32, #tpu.memory_space<vmem>>, vector<128x512xf32>
    %cst_19 = arith.constant dense<0.000000e+00> : vector<8x512xf32>
    %18 = tpu.matmul %16, %17, %cst_19 {dimension_numbers = #tpu.dot_dimension_numbers<[1], [0], [0], [1], [0, 0, 1, 1], [], []>} : vector<8x128xf32>, vector<128x512xf32>, vector<8x512xf32> -> vector<8x512xf32>
    %19 = arith.addf %15, %18 : vector<8x512xf32>
    %20 = vector.extract_strided_slice %19 {offsets = [0, 0], sizes = [8, 384], strides = [1, 1]} : vector<8x512xf32> to vector<8x384xf32>
    %21 = arith.negf %20 : vector<8x384xf32>
    %22 = math.exp %21 : vector<8x384xf32>
    %cst_20 = arith.constant 1.000000e+00 : f32
    %23 = vector.broadcast %cst_20 : f32 to vector<8x384xf32>
    %24 = arith.addf %23, %22 : vector<8x384xf32>
    %25 = arith.divf %23, %24 : vector<8x384xf32>
    %26 = vector.extract_strided_slice %25 {offsets = [0, 0], sizes = [8, 128], strides = [1, 1]} : vector<8x384xf32> to vector<8x128xf32>
    %27 = vector.extract_strided_slice %25 {offsets = [0, 128], sizes = [8, 128], strides = [1, 1]} : vector<8x384xf32> to vector<8x128xf32>
    %28 = vector.extract_strided_slice %25 {offsets = [0, 256], sizes = [8, 128], strides = [1, 1]} : vector<8x384xf32> to vector<8x128xf32>
    %29 = vector.extract_strided_slice %19 {offsets = [0, 384], sizes = [8, 128], strides = [1, 1]} : vector<8x512xf32> to vector<8x128xf32>
    %30 = math.tanh %29 : vector<8x128xf32>
    %c0_21 = arith.constant 0 : index
    %c0_22 = arith.constant 0 : index
    %31 = vector.load %arg10[%c0_21, %c0_22] : memref<8x128xf32, #tpu.memory_space<vmem>>, vector<8x128xf32>
    %32 = arith.mulf %31, %27 : vector<8x128xf32>
    %33 = arith.mulf %26, %30 : vector<8x128xf32>
    %34 = arith.addf %32, %33 : vector<8x128xf32>
    %c0_23 = arith.constant 0 : index
    %c0_24 = arith.constant 0 : index
    %35 = vector.load %arg10[%c0_23, %c0_24] : memref<8x128xf32, #tpu.memory_space<vmem>>, vector<8x128xf32>
    tpu.vector_store %arg10[%c0_23, %c0_24], %34 {strides = array<i32>} : memref<8x128xf32, #tpu.memory_space<vmem>>, vector<8x128xf32>,
    %36 = math.tanh %34 : vector<8x128xf32>
    %37 = arith.mulf %28, %36 : vector<8x128xf32>
    %c0_25 = arith.constant 0 : index
    %c0_26 = arith.constant 0 : index
    %38 = vector.load %arg9[%c0_25, %c0_26] : memref<8x128xf32, #tpu.memory_space<vmem>>, vector<8x128xf32>
    tpu.vector_store %arg9[%c0_25, %c0_26], %37 {strides = array<i32>} : memref<8x128xf32, #tpu.memory_space<vmem>>, vector<8x128xf32>,
    %c1_i32 = arith.constant 1 : i32
    %c8_i32_27 = arith.constant 8 : i32
    %39 = arith.muli %c1_i32, %c8_i32_27 : i32
    %40 = tpu.assume_multiple %39, 8 : i32
    %41 = arith.index_cast %40 : i32 to index
    %c0_28 = arith.constant 0 : index
    %42 = vector.load %arg8[%41, %c0_28] : memref<64x512xf32, #tpu.memory_space<vmem>>, vector<8x512xf32>
    %c0_29 = arith.constant 0 : index
    %c0_30 = arith.constant 0 : index
    %43 = vector.load %arg9[%c0_29, %c0_30] : memref<8x128xf32, #tpu.memory_space<vmem>>, vector<8x128xf32>
    %c0_31 = arith.constant 0 : index
    %c0_32 = arith.constant 0 : index
    %44 = vector.load %arg4[%c0_31, %c0_32] : memref<128x512xf32, #tpu.memory_space<vmem>>, vector<128x512xf32>
    %cst_33 = arith.constant dense<0.000000e+00> : vector<8x512xf32>
    %45 = tpu.matmul %43, %44, %cst_33 {dimension_numbers = #tpu.dot_dimension_numbers<[1], [0], [0], [1], [0, 0, 1, 1], [], []>} : vector<8x128xf32>, vector<128x512xf32>, vector<8x512xf32> -> vector<8x512xf32>
    %46 = arith.addf %42, %45 : vector<8x512xf32>
    %47 = vector.extract_strided_slice %46 {offsets = [0, 0], sizes = [8, 384], strides = [1, 1]} : vector<8x512xf32> to vector<8x384xf32>
    %48 = arith.negf %47 : vector<8x384xf32>
    %49 = math.exp %48 : vector<8x384xf32>
    %cst_34 = arith.constant 1.000000e+00 : f32
    %50 = vector.broadcast %cst_34 : f32 to vector<8x384xf32>
    %51 = arith.addf %50, %49 : vector<8x384xf32>
    %52 = arith.divf %50, %51 : vector<8x384xf32>
    %53 = vector.extract_strided_slice %52 {offsets = [0, 0], sizes = [8, 128], strides = [1, 1]} : vector<8x384xf32> to vector<8x128xf32>
    %54 = vector.extract_strided_slice %52 {offsets = [0, 128], sizes = [8, 128], strides = [1, 1]} : vector<8x384xf32> to vector<8x128xf32>
    %55 = vector.extract_strided_slice %52 {offsets = [0, 256], sizes = [8, 128], strides = [1, 1]} : vector<8x384xf32> to vector<8x128xf32>
    %56 = vector.extract_strided_slice %46 {offsets = [0, 384], sizes = [8, 128], strides = [1, 1]} : vector<8x512xf32> to vector<8x128xf32>
    %57 = math.tanh %56 : vector<8x128xf32>
    %c0_35 = arith.constant 0 : index
    %c0_36 = arith.constant 0 : index
    %58 = vector.load %arg10[%c0_35, %c0_36] : memref<8x128xf32, #tpu.memory_space<vmem>>, vector<8x128xf32>
    %59 = arith.mulf %58, %54 : vector<8x128xf32>
    %60 = arith.mulf %53, %57 : vector<8x128xf32>
    %61 = arith.addf %59, %60 : vector<8x128xf32>
    %c0_37 = arith.constant 0 : index
    %c0_38 = arith.constant 0 : index
    %62 = vector.load %arg10[%c0_37, %c0_38] : memref<8x128xf32, #tpu.memory_space<vmem>>, vector<8x128xf32>
    tpu.vector_store %arg10[%c0_37, %c0_38], %61 {strides = array<i32>} : memref<8x128xf32, #tpu.memory_space<vmem>>, vector<8x128xf32>,
    %63 = math.tanh %61 : vector<8x128xf32>
    %64 = arith.mulf %55, %63 : vector<8x128xf32>
    %c0_39 = arith.constant 0 : index
    %c0_40 = arith.constant 0 : index
    %65 = vector.load %arg9[%c0_39, %c0_40] : memref<8x128xf32, #tpu.memory_space<vmem>>, vector<8x128xf32>
    tpu.vector_store %arg9[%c0_39, %c0_40], %64 {strides = array<i32>} : memref<8x128xf32, #tpu.memory_space<vmem>>, vector<8x128xf32>,
    %c2_i32 = arith.constant 2 : i32
    %c8_i32_41 = arith.constant 8 : i32
    %66 = arith.muli %c2_i32, %c8_i32_41 : i32
    %67 = tpu.assume_multiple %66, 8 : i32
    %68 = arith.index_cast %67 : i32 to index
    %c0_42 = arith.constant 0 : index
    %69 = vector.load %arg8[%68, %c0_42] : memref<64x512xf32, #tpu.memory_space<vmem>>, vector<8x512xf32>
    %c0_43 = arith.constant 0 : index
    %c0_44 = arith.constant 0 : index
    %70 = vector.load %arg9[%c0_43, %c0_44] : memref<8x128xf32, #tpu.memory_space<vmem>>, vector<8x128xf32>
    %c0_45 = arith.constant 0 : index
    %c0_46 = arith.constant 0 : index
    %71 = vector.load %arg4[%c0_45, %c0_46] : memref<128x512xf32, #tpu.memory_space<vmem>>, vector<128x512xf32>
    %cst_47 = arith.constant dense<0.000000e+00> : vector<8x512xf32>
    %72 = tpu.matmul %70, %71, %cst_47 {dimension_numbers = #tpu.dot_dimension_numbers<[1], [0], [0], [1], [0, 0, 1, 1], [], []>} : vector<8x128xf32>, vector<128x512xf32>, vector<8x512xf32> -> vector<8x512xf32>
    %73 = arith.addf %69, %72 : vector<8x512xf32>
    %74 = vector.extract_strided_slice %73 {offsets = [0, 0], sizes = [8, 384], strides = [1, 1]} : vector<8x512xf32> to vector<8x384xf32>
    %75 = arith.negf %74 : vector<8x384xf32>
    %76 = math.exp %75 : vector<8x384xf32>
    %cst_48 = arith.constant 1.000000e+00 : f32
    %77 = vector.broadcast %cst_48 : f32 to vector<8x384xf32>
    %78 = arith.addf %77, %76 : vector<8x384xf32>
    %79 = arith.divf %77, %78 : vector<8x384xf32>
    %80 = vector.extract_strided_slice %79 {offsets = [0, 0], sizes = [8, 128], strides = [1, 1]} : vector<8x384xf32> to vector<8x128xf32>
    %81 = vector.extract_strided_slice %79 {offsets = [0, 128], sizes = [8, 128], strides = [1, 1]} : vector<8x384xf32> to vector<8x128xf32>
    %82 = vector.extract_strided_slice %79 {offsets = [0, 256], sizes = [8, 128], strides = [1, 1]} : vector<8x384xf32> to vector<8x128xf32>
    %83 = vector.extract_strided_slice %73 {offsets = [0, 384], sizes = [8, 128], strides = [1, 1]} : vector<8x512xf32> to vector<8x128xf32>
    %84 = math.tanh %83 : vector<8x128xf32>
    %c0_49 = arith.constant 0 : index
    %c0_50 = arith.constant 0 : index
    %85 = vector.load %arg10[%c0_49, %c0_50] : memref<8x128xf32, #tpu.memory_space<vmem>>, vector<8x128xf32>
    %86 = arith.mulf %85, %81 : vector<8x128xf32>
    %87 = arith.mulf %80, %84 : vector<8x128xf32>
    %88 = arith.addf %86, %87 : vector<8x128xf32>
    %c0_51 = arith.constant 0 : index
    %c0_52 = arith.constant 0 : index
    %89 = vector.load %arg10[%c0_51, %c0_52] : memref<8x128xf32, #tpu.memory_space<vmem>>, vector<8x128xf32>
    tpu.vector_store %arg10[%c0_51, %c0_52], %88 {strides = array<i32>} : memref<8x128xf32, #tpu.memory_space<vmem>>, vector<8x128xf32>,
    %90 = math.tanh %88 : vector<8x128xf32>
    %91 = arith.mulf %82, %90 : vector<8x128xf32>
    %c0_53 = arith.constant 0 : index
    %c0_54 = arith.constant 0 : index
    %92 = vector.load %arg9[%c0_53, %c0_54] : memref<8x128xf32, #tpu.memory_space<vmem>>, vector<8x128xf32>
    tpu.vector_store %arg9[%c0_53, %c0_54], %91 {strides = array<i32>} : memref<8x128xf32, #tpu.memory_space<vmem>>, vector<8x128xf32>,
    %c3_i32 = arith.constant 3 : i32
    %c8_i32_55 = arith.constant 8 : i32
    %93 = arith.muli %c3_i32, %c8_i32_55 : i32
    %94 = tpu.assume_multiple %93, 8 : i32
    %95 = arith.index_cast %94 : i32 to index
    %c0_56 = arith.constant 0 : index
    %96 = vector.load %arg8[%95, %c0_56] : memref<64x512xf32, #tpu.memory_space<vmem>>, vector<8x512xf32>
    %c0_57 = arith.constant 0 : index
    %c0_58 = arith.constant 0 : index
    %97 = vector.load %arg9[%c0_57, %c0_58] : memref<8x128xf32, #tpu.memory_space<vmem>>, vector<8x128xf32>
    %c0_59 = arith.constant 0 : index
    %c0_60 = arith.constant 0 : index
    %98 = vector.load %arg4[%c0_59, %c0_60] : memref<128x512xf32, #tpu.memory_space<vmem>>, vector<128x512xf32>
    %cst_61 = arith.constant dense<0.000000e+00> : vector<8x512xf32>
    %99 = tpu.matmul %97, %98, %cst_61 {dimension_numbers = #tpu.dot_dimension_numbers<[1], [0], [0], [1], [0, 0, 1, 1], [], []>} : vector<8x128xf32>, vector<128x512xf32>, vector<8x512xf32> -> vector<8x512xf32>
    %100 = arith.addf %96, %99 : vector<8x512xf32>
    %101 = vector.extract_strided_slice %100 {offsets = [0, 0], sizes = [8, 384], strides = [1, 1]} : vector<8x512xf32> to vector<8x384xf32>
    %102 = arith.negf %101 : vector<8x384xf32>
    %103 = math.exp %102 : vector<8x384xf32>
    %cst_62 = arith.constant 1.000000e+00 : f32
    %104 = vector.broadcast %cst_62 : f32 to vector<8x384xf32>
    %105 = arith.addf %104, %103 : vector<8x384xf32>
    %106 = arith.divf %104, %105 : vector<8x384xf32>
    %107 = vector.extract_strided_slice %106 {offsets = [0, 0], sizes = [8, 128], strides = [1, 1]} : vector<8x384xf32> to vector<8x128xf32>
    %108 = vector.extract_strided_slice %106 {offsets = [0, 128], sizes = [8, 128], strides = [1, 1]} : vector<8x384xf32> to vector<8x128xf32>
    %109 = vector.extract_strided_slice %106 {offsets = [0, 256], sizes = [8, 128], strides = [1, 1]} : vector<8x384xf32> to vector<8x128xf32>
    %110 = vector.extract_strided_slice %100 {offsets = [0, 384], sizes = [8, 128], strides = [1, 1]} : vector<8x512xf32> to vector<8x128xf32>
    %111 = math.tanh %110 : vector<8x128xf32>
    %c0_63 = arith.constant 0 : index
    %c0_64 = arith.constant 0 : index
    %112 = vector.load %arg10[%c0_63, %c0_64] : memref<8x128xf32, #tpu.memory_space<vmem>>, vector<8x128xf32>
    %113 = arith.mulf %112, %108 : vector<8x128xf32>
    %114 = arith.mulf %107, %111 : vector<8x128xf32>
    %115 = arith.addf %113, %114 : vector<8x128xf32>
    %c0_65 = arith.constant 0 : index
    %c0_66 = arith.constant 0 : index
    %116 = vector.load %arg10[%c0_65, %c0_66] : memref<8x128xf32, #tpu.memory_space<vmem>>, vector<8x128xf32>
    tpu.vector_store %arg10[%c0_65, %c0_66], %115 {strides = array<i32>} : memref<8x128xf32, #tpu.memory_space<vmem>>, vector<8x128xf32>,
    %117 = math.tanh %115 : vector<8x128xf32>
    %118 = arith.mulf %109, %117 : vector<8x128xf32>
    %c0_67 = arith.constant 0 : index
    %c0_68 = arith.constant 0 : index
    %119 = vector.load %arg9[%c0_67, %c0_68] : memref<8x128xf32, #tpu.memory_space<vmem>>, vector<8x128xf32>
    tpu.vector_store %arg9[%c0_67, %c0_68], %118 {strides = array<i32>} : memref<8x128xf32, #tpu.memory_space<vmem>>, vector<8x128xf32>,
    %c4_i32 = arith.constant 4 : i32
    %c8_i32_69 = arith.constant 8 : i32
    %120 = arith.muli %c4_i32, %c8_i32_69 : i32
    %121 = tpu.assume_multiple %120, 8 : i32
    %122 = arith.index_cast %121 : i32 to index
    %c0_70 = arith.constant 0 : index
    %123 = vector.load %arg8[%122, %c0_70] : memref<64x512xf32, #tpu.memory_space<vmem>>, vector<8x512xf32>
    %c0_71 = arith.constant 0 : index
    %c0_72 = arith.constant 0 : index
    %124 = vector.load %arg9[%c0_71, %c0_72] : memref<8x128xf32, #tpu.memory_space<vmem>>, vector<8x128xf32>
    %c0_73 = arith.constant 0 : index
    %c0_74 = arith.constant 0 : index
    %125 = vector.load %arg4[%c0_73, %c0_74] : memref<128x512xf32, #tpu.memory_space<vmem>>, vector<128x512xf32>
    %cst_75 = arith.constant dense<0.000000e+00> : vector<8x512xf32>
    %126 = tpu.matmul %124, %125, %cst_75 {dimension_numbers = #tpu.dot_dimension_numbers<[1], [0], [0], [1], [0, 0, 1, 1], [], []>} : vector<8x128xf32>, vector<128x512xf32>, vector<8x512xf32> -> vector<8x512xf32>
    %127 = arith.addf %123, %126 : vector<8x512xf32>
    %128 = vector.extract_strided_slice %127 {offsets = [0, 0], sizes = [8, 384], strides = [1, 1]} : vector<8x512xf32> to vector<8x384xf32>
    %129 = arith.negf %128 : vector<8x384xf32>
    %130 = math.exp %129 : vector<8x384xf32>
    %cst_76 = arith.constant 1.000000e+00 : f32
    %131 = vector.broadcast %cst_76 : f32 to vector<8x384xf32>
    %132 = arith.addf %131, %130 : vector<8x384xf32>
    %133 = arith.divf %131, %132 : vector<8x384xf32>
    %134 = vector.extract_strided_slice %133 {offsets = [0, 0], sizes = [8, 128], strides = [1, 1]} : vector<8x384xf32> to vector<8x128xf32>
    %135 = vector.extract_strided_slice %133 {offsets = [0, 128], sizes = [8, 128], strides = [1, 1]} : vector<8x384xf32> to vector<8x128xf32>
    %136 = vector.extract_strided_slice %133 {offsets = [0, 256], sizes = [8, 128], strides = [1, 1]} : vector<8x384xf32> to vector<8x128xf32>
    %137 = vector.extract_strided_slice %127 {offsets = [0, 384], sizes = [8, 128], strides = [1, 1]} : vector<8x512xf32> to vector<8x128xf32>
    %138 = math.tanh %137 : vector<8x128xf32>
    %c0_77 = arith.constant 0 : index
    %c0_78 = arith.constant 0 : index
    %139 = vector.load %arg10[%c0_77, %c0_78] : memref<8x128xf32, #tpu.memory_space<vmem>>, vector<8x128xf32>
    %140 = arith.mulf %139, %135 : vector<8x128xf32>
    %141 = arith.mulf %134, %138 : vector<8x128xf32>
    %142 = arith.addf %140, %141 : vector<8x128xf32>
    %c0_79 = arith.constant 0 : index
    %c0_80 = arith.constant 0 : index
    %143 = vector.load %arg10[%c0_79, %c0_80] : memref<8x128xf32, #tpu.memory_space<vmem>>, vector<8x128xf32>
    tpu.vector_store %arg10[%c0_79, %c0_80], %142 {strides = array<i32>} : memref<8x128xf32, #tpu.memory_space<vmem>>, vector<8x128xf32>,
    %144 = math.tanh %142 : vector<8x128xf32>
    %145 = arith.mulf %136, %144 : vector<8x128xf32>
    %c0_81 = arith.constant 0 : index
    %c0_82 = arith.constant 0 : index
    %146 = vector.load %arg9[%c0_81, %c0_82] : memref<8x128xf32, #tpu.memory_space<vmem>>, vector<8x128xf32>
    tpu.vector_store %arg9[%c0_81, %c0_82], %145 {strides = array<i32>} : memref<8x128xf32, #tpu.memory_space<vmem>>, vector<8x128xf32>,
    %c5_i32 = arith.constant 5 : i32
    %c8_i32_83 = arith.constant 8 : i32
    %147 = arith.muli %c5_i32, %c8_i32_83 : i32
    %148 = tpu.assume_multiple %147, 8 : i32
    %149 = arith.index_cast %148 : i32 to index
    %c0_84 = arith.constant 0 : index
    %150 = vector.load %arg8[%149, %c0_84] : memref<64x512xf32, #tpu.memory_space<vmem>>, vector<8x512xf32>
    %c0_85 = arith.constant 0 : index
    %c0_86 = arith.constant 0 : index
    %151 = vector.load %arg9[%c0_85, %c0_86] : memref<8x128xf32, #tpu.memory_space<vmem>>, vector<8x128xf32>
    %c0_87 = arith.constant 0 : index
    %c0_88 = arith.constant 0 : index
    %152 = vector.load %arg4[%c0_87, %c0_88] : memref<128x512xf32, #tpu.memory_space<vmem>>, vector<128x512xf32>
    %cst_89 = arith.constant dense<0.000000e+00> : vector<8x512xf32>
    %153 = tpu.matmul %151, %152, %cst_89 {dimension_numbers = #tpu.dot_dimension_numbers<[1], [0], [0], [1], [0, 0, 1, 1], [], []>} : vector<8x128xf32>, vector<128x512xf32>, vector<8x512xf32> -> vector<8x512xf32>
    %154 = arith.addf %150, %153 : vector<8x512xf32>
    %155 = vector.extract_strided_slice %154 {offsets = [0, 0], sizes = [8, 384], strides = [1, 1]} : vector<8x512xf32> to vector<8x384xf32>
    %156 = arith.negf %155 : vector<8x384xf32>
    %157 = math.exp %156 : vector<8x384xf32>
    %cst_90 = arith.constant 1.000000e+00 : f32
    %158 = vector.broadcast %cst_90 : f32 to vector<8x384xf32>
    %159 = arith.addf %158, %157 : vector<8x384xf32>
    %160 = arith.divf %158, %159 : vector<8x384xf32>
    %161 = vector.extract_strided_slice %160 {offsets = [0, 0], sizes = [8, 128], strides = [1, 1]} : vector<8x384xf32> to vector<8x128xf32>
    %162 = vector.extract_strided_slice %160 {offsets = [0, 128], sizes = [8, 128], strides = [1, 1]} : vector<8x384xf32> to vector<8x128xf32>
    %163 = vector.extract_strided_slice %160 {offsets = [0, 256], sizes = [8, 128], strides = [1, 1]} : vector<8x384xf32> to vector<8x128xf32>
    %164 = vector.extract_strided_slice %154 {offsets = [0, 384], sizes = [8, 128], strides = [1, 1]} : vector<8x512xf32> to vector<8x128xf32>
    %165 = math.tanh %164 : vector<8x128xf32>
    %c0_91 = arith.constant 0 : index
    %c0_92 = arith.constant 0 : index
    %166 = vector.load %arg10[%c0_91, %c0_92] : memref<8x128xf32, #tpu.memory_space<vmem>>, vector<8x128xf32>
    %167 = arith.mulf %166, %162 : vector<8x128xf32>
    %168 = arith.mulf %161, %165 : vector<8x128xf32>
    %169 = arith.addf %167, %168 : vector<8x128xf32>
    %c0_93 = arith.constant 0 : index
    %c0_94 = arith.constant 0 : index
    %170 = vector.load %arg10[%c0_93, %c0_94] : memref<8x128xf32, #tpu.memory_space<vmem>>, vector<8x128xf32>
    tpu.vector_store %arg10[%c0_93, %c0_94], %169 {strides = array<i32>} : memref<8x128xf32, #tpu.memory_space<vmem>>, vector<8x128xf32>,
    %171 = math.tanh %169 : vector<8x128xf32>
    %172 = arith.mulf %163, %171 : vector<8x128xf32>
    %c0_95 = arith.constant 0 : index
    %c0_96 = arith.constant 0 : index
    %173 = vector.load %arg9[%c0_95, %c0_96] : memref<8x128xf32, #tpu.memory_space<vmem>>, vector<8x128xf32>
    tpu.vector_store %arg9[%c0_95, %c0_96], %172 {strides = array<i32>} : memref<8x128xf32, #tpu.memory_space<vmem>>, vector<8x128xf32>,
    %c6_i32 = arith.constant 6 : i32
    %c8_i32_97 = arith.constant 8 : i32
    %174 = arith.muli %c6_i32, %c8_i32_97 : i32
    %175 = tpu.assume_multiple %174, 8 : i32
    %176 = arith.index_cast %175 : i32 to index
    %c0_98 = arith.constant 0 : index
    %177 = vector.load %arg8[%176, %c0_98] : memref<64x512xf32, #tpu.memory_space<vmem>>, vector<8x512xf32>
    %c0_99 = arith.constant 0 : index
    %c0_100 = arith.constant 0 : index
    %178 = vector.load %arg9[%c0_99, %c0_100] : memref<8x128xf32, #tpu.memory_space<vmem>>, vector<8x128xf32>
    %c0_101 = arith.constant 0 : index
    %c0_102 = arith.constant 0 : index
    %179 = vector.load %arg4[%c0_101, %c0_102] : memref<128x512xf32, #tpu.memory_space<vmem>>, vector<128x512xf32>
    %cst_103 = arith.constant dense<0.000000e+00> : vector<8x512xf32>
    %180 = tpu.matmul %178, %179, %cst_103 {dimension_numbers = #tpu.dot_dimension_numbers<[1], [0], [0], [1], [0, 0, 1, 1], [], []>} : vector<8x128xf32>, vector<128x512xf32>, vector<8x512xf32> -> vector<8x512xf32>
    %181 = arith.addf %177, %180 : vector<8x512xf32>
    %182 = vector.extract_strided_slice %181 {offsets = [0, 0], sizes = [8, 384], strides = [1, 1]} : vector<8x512xf32> to vector<8x384xf32>
    %183 = arith.negf %182 : vector<8x384xf32>
    %184 = math.exp %183 : vector<8x384xf32>
    %cst_104 = arith.constant 1.000000e+00 : f32
    %185 = vector.broadcast %cst_104 : f32 to vector<8x384xf32>
    %186 = arith.addf %185, %184 : vector<8x384xf32>
    %187 = arith.divf %185, %186 : vector<8x384xf32>
    %188 = vector.extract_strided_slice %187 {offsets = [0, 0], sizes = [8, 128], strides = [1, 1]} : vector<8x384xf32> to vector<8x128xf32>
    %189 = vector.extract_strided_slice %187 {offsets = [0, 128], sizes = [8, 128], strides = [1, 1]} : vector<8x384xf32> to vector<8x128xf32>
    %190 = vector.extract_strided_slice %187 {offsets = [0, 256], sizes = [8, 128], strides = [1, 1]} : vector<8x384xf32> to vector<8x128xf32>
    %191 = vector.extract_strided_slice %181 {offsets = [0, 384], sizes = [8, 128], strides = [1, 1]} : vector<8x512xf32> to vector<8x128xf32>
    %192 = math.tanh %191 : vector<8x128xf32>
    %c0_105 = arith.constant 0 : index
    %c0_106 = arith.constant 0 : index
    %193 = vector.load %arg10[%c0_105, %c0_106] : memref<8x128xf32, #tpu.memory_space<vmem>>, vector<8x128xf32>
    %194 = arith.mulf %193, %189 : vector<8x128xf32>
    %195 = arith.mulf %188, %192 : vector<8x128xf32>
    %196 = arith.addf %194, %195 : vector<8x128xf32>
    %c0_107 = arith.constant 0 : index
    %c0_108 = arith.constant 0 : index
    %197 = vector.load %arg10[%c0_107, %c0_108] : memref<8x128xf32, #tpu.memory_space<vmem>>, vector<8x128xf32>
    tpu.vector_store %arg10[%c0_107, %c0_108], %196 {strides = array<i32>} : memref<8x128xf32, #tpu.memory_space<vmem>>, vector<8x128xf32>,
    %198 = math.tanh %196 : vector<8x128xf32>
    %199 = arith.mulf %190, %198 : vector<8x128xf32>
    %c0_109 = arith.constant 0 : index
    %c0_110 = arith.constant 0 : index
    %200 = vector.load %arg9[%c0_109, %c0_110] : memref<8x128xf32, #tpu.memory_space<vmem>>, vector<8x128xf32>
    tpu.vector_store %arg9[%c0_109, %c0_110], %199 {strides = array<i32>} : memref<8x128xf32, #tpu.memory_space<vmem>>, vector<8x128xf32>,
    %c7_i32 = arith.constant 7 : i32
    %c8_i32_111 = arith.constant 8 : i32
    %201 = arith.muli %c7_i32, %c8_i32_111 : i32
    %202 = tpu.assume_multiple %201, 8 : i32
    %203 = arith.index_cast %202 : i32 to index
    %c0_112 = arith.constant 0 : index
    %204 = vector.load %arg8[%203, %c0_112] : memref<64x512xf32, #tpu.memory_space<vmem>>, vector<8x512xf32>
    %c0_113 = arith.constant 0 : index
    %c0_114 = arith.constant 0 : index
    %205 = vector.load %arg9[%c0_113, %c0_114] : memref<8x128xf32, #tpu.memory_space<vmem>>, vector<8x128xf32>
    %c0_115 = arith.constant 0 : index
    %c0_116 = arith.constant 0 : index
    %206 = vector.load %arg4[%c0_115, %c0_116] : memref<128x512xf32, #tpu.memory_space<vmem>>, vector<128x512xf32>
    %cst_117 = arith.constant dense<0.000000e+00> : vector<8x512xf32>
    %207 = tpu.matmul %205, %206, %cst_117 {dimension_numbers = #tpu.dot_dimension_numbers<[1], [0], [0], [1], [0, 0, 1, 1], [], []>} : vector<8x128xf32>, vector<128x512xf32>, vector<8x512xf32> -> vector<8x512xf32>
    %208 = arith.addf %204, %207 : vector<8x512xf32>
    %209 = vector.extract_strided_slice %208 {offsets = [0, 0], sizes = [8, 384], strides = [1, 1]} : vector<8x512xf32> to vector<8x384xf32>
    %210 = arith.negf %209 : vector<8x384xf32>
    %211 = math.exp %210 : vector<8x384xf32>
    %cst_118 = arith.constant 1.000000e+00 : f32
    %212 = vector.broadcast %cst_118 : f32 to vector<8x384xf32>
    %213 = arith.addf %212, %211 : vector<8x384xf32>
    %214 = arith.divf %212, %213 : vector<8x384xf32>
    %215 = vector.extract_strided_slice %214 {offsets = [0, 0], sizes = [8, 128], strides = [1, 1]} : vector<8x384xf32> to vector<8x128xf32>
    %216 = vector.extract_strided_slice %214 {offsets = [0, 128], sizes = [8, 128], strides = [1, 1]} : vector<8x384xf32> to vector<8x128xf32>
    %217 = vector.extract_strided_slice %214 {offsets = [0, 256], sizes = [8, 128], strides = [1, 1]} : vector<8x384xf32> to vector<8x128xf32>
    %218 = vector.extract_strided_slice %208 {offsets = [0, 384], sizes = [8, 128], strides = [1, 1]} : vector<8x512xf32> to vector<8x128xf32>
    %219 = math.tanh %218 : vector<8x128xf32>
    %c0_119 = arith.constant 0 : index
    %c0_120 = arith.constant 0 : index
    %220 = vector.load %arg10[%c0_119, %c0_120] : memref<8x128xf32, #tpu.memory_space<vmem>>, vector<8x128xf32>
    %221 = arith.mulf %220, %216 : vector<8x128xf32>
    %222 = arith.mulf %215, %219 : vector<8x128xf32>
    %223 = arith.addf %221, %222 : vector<8x128xf32>
    %c0_121 = arith.constant 0 : index
    %c0_122 = arith.constant 0 : index
    %224 = vector.load %arg10[%c0_121, %c0_122] : memref<8x128xf32, #tpu.memory_space<vmem>>, vector<8x128xf32>
    tpu.vector_store %arg10[%c0_121, %c0_122], %223 {strides = array<i32>} : memref<8x128xf32, #tpu.memory_space<vmem>>, vector<8x128xf32>,
    %225 = math.tanh %223 : vector<8x128xf32>
    %226 = arith.mulf %217, %225 : vector<8x128xf32>
    %c0_123 = arith.constant 0 : index
    %c0_124 = arith.constant 0 : index
    %227 = vector.load %arg9[%c0_123, %c0_124] : memref<8x128xf32, #tpu.memory_space<vmem>>, vector<8x128xf32>
    tpu.vector_store %arg9[%c0_123, %c0_124], %226 {strides = array<i32>} : memref<8x128xf32, #tpu.memory_space<vmem>>, vector<8x128xf32>,
    %c8_i32_125 = arith.constant 8 : i32
    %c0_126 = arith.constant 0 : index
    %c0_127 = arith.constant 0 : index
    %228 = vector.load %arg9[%c0_126, %c0_127] : memref<8x128xf32, #tpu.memory_space<vmem>>, vector<8x128xf32>
    %c0_128 = arith.constant 0 : index
    %c0_129 = arith.constant 0 : index
    %229 = vector.load %arg5[%c0_128, %c0_129] : memref<128x128xf32, #tpu.memory_space<vmem>>, vector<128x128xf32>
    %cst_130 = arith.constant dense<0.000000e+00> : vector<8x128xf32>
    %230 = tpu.matmul %228, %229, %cst_130 {dimension_numbers = #tpu.dot_dimension_numbers<[1], [0], [0], [1], [0, 0, 1, 1], [], []>} : vector<8x128xf32>, vector<128x128xf32>, vector<8x128xf32> -> vector<8x128xf32>
    %c0_131 = arith.constant 0 : index
    %c0_132 = arith.constant 0 : index
    %231 = vector.load %arg6[%c0_131, %c0_132] : memref<1x128xf32, #tpu.memory_space<vmem>>, vector<1x128xf32>
    %232 = vector.broadcast %231 : vector<1x128xf32> to vector<8x128xf32>
    %233 = arith.addf %230, %232 : vector<8x128xf32>
    %c0_133 = arith.constant 0 : index
    %c0_134 = arith.constant 0 : index
    %234 = vector.load %arg7[%c0_133, %c0_134] : memref<8x128xf32, #tpu.memory_space<vmem>>, vector<8x128xf32>
    tpu.vector_store %arg7[%c0_133, %c0_134], %233 {strides = array<i32>} : memref<8x128xf32, #tpu.memory_space<vmem>>, vector<8x128xf32>,
    return
  }
  func.func @transform_0(%arg0: i32) -> (i32, i32, i32) {
    %c0_i32 = arith.constant 0 : i32
    %c0_i32_0 = arith.constant 0 : i32
    %c0_i32_1 = arith.constant 0 : i32
    return %arg0, %c0_i32, %c0_i32_0 : i32, i32, i32
  }
  func.func @transform_1(%arg0: i32) -> (i32, i32) {
    %c0_i32 = arith.constant 0 : i32
    %c0_i32_0 = arith.constant 0 : i32
    %c0_i32_1 = arith.constant 0 : i32
    return %c0_i32, %c0_i32_0 : i32, i32
  }
  func.func @transform_2(%arg0: i32) -> (i32, i32) {
    %c0_i32 = arith.constant 0 : i32
    %c0_i32_0 = arith.constant 0 : i32
    %c0_i32_1 = arith.constant 0 : i32
    return %c0_i32, %c0_i32_0 : i32, i32
  }
  func.func @transform_3(%arg0: i32) -> (i32, i32) {
    %c0_i32 = arith.constant 0 : i32
    %c0_i32_0 = arith.constant 0 : i32
    %c0_i32_1 = arith.constant 0 : i32
    return %c0_i32, %c0_i32_0 : i32, i32
  }
  func.func @transform_4(%arg0: i32) -> (i32, i32) {
    %c0_i32 = arith.constant 0 : i32
    %c0_i32_0 = arith.constant 0 : i32
    %c0_i32_1 = arith.constant 0 : i32
    return %c0_i32, %c0_i32_0 : i32, i32
  }
  func.func @transform_5(%arg0: i32) -> (i32, i32) {
    %c0_i32 = arith.constant 0 : i32
    %c0_i32_0 = arith.constant 0 : i32
    %c0_i32_1 = arith.constant 0 : i32
    return %c0_i32, %c0_i32_0 : i32, i32
  }
  func.func @transform_6(%arg0: i32) -> (i32, i32) {
    %c0_i32 = arith.constant 0 : i32
    %c0_i32_0 = arith.constant 0 : i32
    return %arg0, %c0_i32 : i32, i32
  }
}

</mosaic_0001>

<bundles_post_ra>
// kernel: tpu_custom_call.1
= control target key start
LH: loop header
LB: loop body
LE: loop exit
PB: predicated region body
PF: predicated region fallthrough
CT: control target
= control target key end

     0   :  { %11 = vsyncpa [#allocation6], 0  ;;  %s3701_s0 = inlined_call_operand.hbm [shape: f32[1,64,128], index: 0, kind: input, shape index: {}]   ;;  %s3702_s1 = inlined_call_operand.hbm [shape: f32[128,512], index: 1, kind: input, shape index: {}]   ;;  %s3703_s2 = inlined_call_operand.hbm [shape: f32[1,512], index: 2, kind: input, shape index: {}]   ;;  %s3704_s3 = inlined_call_operand.hbm [shape: f32[128,512], index: 3, kind: input, shape index: {}]   ;;  %s3705_s4 = inlined_call_operand.hbm [shape: f32[128,128], index: 4, kind: input, shape index: {}]   ;;  %s3706_s5 = inlined_call_operand.vmem [shape: f32[1,128], index: 5, kind: input, shape index: {}]   ;;  %s3707_s6 = inlined_call_operand.hbm [shape: f32[8,128], index: 6, kind: output, shape index: {}]  }
   0x1   :  { %12 = vsyncpa [#allocation9], 0 }
   0x2   :  { %13 = vsyncpa [#allocation12], 0  ;;  %s32_s23 = sshll.u32 %s3702_s1, 4  ;;  %s33_s23 = int_to_ptr.hbm [resolvable:$true] %s32_s23 }
   0x3   :  { %14 = vsyncpa [#allocation7], 0  ;;  %s2540_s24 = smov [#allocation8]   ;;  %s56_s28 = sshll.u32 %s3704_s3, 4  ;;  %s57_s28 = int_to_ptr.hbm [resolvable:$true] %s56_s28 }
   0x4   :  { %s34_s25 = sshll.u32 %s2540_s24, 4  ;;  %s2541_s29 = smov 512   ;;  %s35_s25 = int_to_ptr.vmem [resolvable:$true] %s34_s25 }
   0x5   :  { %s2542_s30 = smov 32   ;;  %s2543_s7 = smov [#allocation11]  }
   0x6   :  { %40 = dma.hbm_to_vmem [thread:$0]  %s33_s23, 8192, %s35_s25, [#allocation9], %s2541_s29, %s2541_s29, %s2542_s30  }
   0x7   :  { %s58_s8 = sshll.u32 %s2543_s7, 4  ;;  %s19_s11 = sshll.u32 %s3701_s0, 4  ;;  %s59_s8 = int_to_ptr.vmem [resolvable:$true] %s58_s8  ;;  %s20_s11 = int_to_ptr.hbm [resolvable:$true] %s19_s11 }
   0x8   :  { %64 = dma.hbm_to_vmem [thread:$0]  %s57_s28, 8192, %s59_s8, [#allocation12], %s2541_s29, %s2541_s29, %s2542_s30  }
   0x9   :  { %s2544_s1 = smov [#allocation5]   ;;  %s46_s3 = sshll.u32 %s3703_s2, 4  ;;  %s47_s3 = int_to_ptr.hbm [resolvable:$true] %s46_s3 }
   0xa   :  { %s21_s12 = sshll.u32 %s2544_s1, 4  ;;  %s2545_s15 = smov 128   ;;  %s22_s12 = int_to_ptr.vmem [resolvable:$true] %s21_s12 }
   0xb   :  { %s2546_s16 = smov 8   ;;  %s2547_s17 = smov [#allocation10]  }
   0xc   :  { %27 = dma.hbm_to_vmem [thread:$0]  %s20_s11, 1024, %s22_s12, [#allocation6], %s2545_s15, %s2545_s15, %s2546_s16  }
   0xd   :  { %s48_s18 = sshll.u32 %s2547_s17, 4  ;;  %s69_s0 = sshll.u32 %s3705_s4, 4  ;;  %s49_s18 = int_to_ptr.vmem [resolvable:$true] %s48_s18  ;;  %s70_s0 = int_to_ptr.hbm [resolvable:$true] %s69_s0 }
   0xe   :  { %51 = dma.hbm_to_vmem [thread:$0]  %s47_s3, 64, %s49_s18, [#allocation9]  }
   0xf   :  { %s2548_s21 = smov [#allocation13]  }
  0x10   :  { %s71_s22 = sshll.u32 %s2548_s21, 4  ;;  %s72_s22 = int_to_ptr.vmem [resolvable:$true] %s71_s22 }
  0x11   :  { %77 = dma.hbm_to_vmem [thread:$0]  %s70_s0, 2048, %s72_s22, [#allocation12], %s2545_s15, %s2545_s15, %s2546_s16  }
  0x12   :  { %2532 = dma.done.wait [#allocation6], 1024  }
  0x13   :  { %2533 = vsyncadd [#allocation6], 4294966272 }
  0x14   :  { %2534 = dma.done.wait [#allocation9], 8256  }
  0x15   :  { %2535 = vsyncadd [#allocation9], 4294959040 }
  0x16   :  { %2536 = dma.done.wait [#allocation12], 10240  }
  0x17   :  { %2537 = vsyncadd [#allocation12], 4294957056  ;;  %v168_v0 = vld [vmem:[#allocation8 + $0x1e0] sm:$0xff]  ;;  %v169_v1 = vld [vmem:[#allocation8 + $0x1e8] sm:$0xff]  ;;  %s2550_s23 = smov [#allocation14]   ;;  %s2205_s27 = sshll.u32 %s3707_s6, 4  ;;  %s2206_s27 = int_to_ptr.hbm [resolvable:$true] %s2205_s27 }
  0x18   :  { %v170_v2 = vld [vmem:[#allocation8 + $0x1f0] sm:$0xff]  ;;  %182 = vmatpush.msra.mxu0 %v168_v0  ;;  %223 = vmatpush.msra.mxu1 %v169_v1  ;;  %v171_v3 = vld [vmem:[#allocation8 + $0x1f8] sm:$0xff]  ;;  %v164_v4 = vld [vmem:[#allocation8 + $0x1c0] sm:$0xff]  ;;  %s2203_s24 = sshll.u32 %s2550_s23, 4  ;;  %s2204_s24 = int_to_ptr.vmem [resolvable:$true] %s2203_s24 }
  0x19   :  { %v165_v5 = vld [vmem:[#allocation8 + $0x1c8] sm:$0xff]  ;;  %264 = vmatpush.msra.mxu2 %v170_v2  ;;  %305 = vmatpush.msra.mxu3 %v171_v3  ;;  %v166_v6 = vld [vmem:[#allocation8 + $0x1d0] sm:$0xff]  ;;  %v167_v7 = vld [vmem:[#allocation8 + $0x1d8] sm:$0xff] }
  0x1a   :  { %v160_v8 = vld [vmem:[#allocation8 + $0x1a0] sm:$0xff]  ;;  %183 = vmatpush.msra.mxu0 %v164_v4  ;;  %224 = vmatpush.msra.mxu1 %v165_v5  ;;  %v161_v9 = vld [vmem:[#allocation8 + $0x1a8] sm:$0xff]  ;;  %v162_v10 = vld [vmem:[#allocation8 + $0x1b0] sm:$0xff] }
  0x1b   :  { %v163_v11 = vld [vmem:[#allocation8 + $0x1b8] sm:$0xff]  ;;  %265 = vmatpush.msra.mxu2 %v166_v6  ;;  %306 = vmatpush.msra.mxu3 %v167_v7  ;;  %v156_v12 = vld [vmem:[#allocation8 + $0x180] sm:$0xff]  ;;  %v157_v13 = vld [vmem:[#allocation8 + $0x188] sm:$0xff] }
  0x1c   :  { %184 = vmatpush.msra.mxu0 %v160_v8  ;;  %225 = vmatpush.msra.mxu1 %v161_v9  ;;  %v158_v14 = vld [vmem:[#allocation8 + $0x190] sm:$0xff]  ;;  %v159_v15 = vld [vmem:[#allocation8 + $0x198] sm:$0xff]  ;;  %v152_v16 = vld [vmem:[#allocation8 + $0x160] sm:$0xff] }
  0x1d   :  { %266 = vmatpush.msra.mxu2 %v162_v10  ;;  %307 = vmatpush.msra.mxu3 %v163_v11  ;;  %v153_v17 = vld [vmem:[#allocation8 + $0x168] sm:$0xff]  ;;  %v154_v18 = vld [vmem:[#allocation8 + $0x170] sm:$0xff]  ;;  %v155_v19 = vld [vmem:[#allocation8 + $0x178] sm:$0xff] }
  0x1e   :  { %185 = vmatpush.msra.mxu0 %v156_v12  ;;  %226 = vmatpush.msra.mxu1 %v157_v13  ;;  %v148_v20 = vld [vmem:[#allocation8 + $0x140] sm:$0xff]  ;;  %v149_v21 = vld [vmem:[#allocation8 + $0x148] sm:$0xff]  ;;  %v150_v22 = vld [vmem:[#allocation8 + $0x150] sm:$0xff] }
  0x1f   :  { %267 = vmatpush.msra.mxu2 %v158_v14  ;;  %308 = vmatpush.msra.mxu3 %v159_v15  ;;  %v151_v23 = vld [vmem:[#allocation8 + $0x158] sm:$0xff]  ;;  %v144_v24 = vld [vmem:[#allocation8 + $0x120] sm:$0xff]  ;;  %v145_v25 = vld [vmem:[#allocation8 + $0x128] sm:$0xff] }
  0x20   :  { %186 = vmatpush.msra.mxu0 %v152_v16  ;;  %227 = vmatpush.msra.mxu1 %v153_v17  ;;  %v146_v26 = vld [vmem:[#allocation8 + $0x130] sm:$0xff]  ;;  %v147_v27 = vld [vmem:[#allocation8 + $0x138] sm:$0xff]  ;;  %v140_v28 = vld [vmem:[#allocation8 + $0x100] sm:$0xff] }
  0x21   :  { %268 = vmatpush.msra.mxu2 %v154_v18  ;;  %309 = vmatpush.msra.mxu3 %v155_v19  ;;  %v141_v29 = vld [vmem:[#allocation8 + $0x108] sm:$0xff]  ;;  %v142_v30 = vld [vmem:[#allocation8 + $0x110] sm:$0xff]  ;;  %v143_v31 = vld [vmem:[#allocation8 + $0x118] sm:$0xff] }
  0x22   :  { %187 = vmatpush.msra.mxu0 %v148_v20  ;;  %228 = vmatpush.msra.mxu1 %v149_v21  ;;  %v136_v32 = vld [vmem:[#allocation8 + $0xe0] sm:$0xff]  ;;  %v137_v33 = vld [vmem:[#allocation8 + $0xe8] sm:$0xff]  ;;  %v138_v34 = vld [vmem:[#allocation8 + $0xf0] sm:$0xff] }
  0x23   :  { %269 = vmatpush.msra.mxu2 %v150_v22  ;;  %310 = vmatpush.msra.mxu3 %v151_v23  ;;  %v139_v35 = vld [vmem:[#allocation8 + $0xf8] sm:$0xff]  ;;  %v132_v36 = vld [vmem:[#allocation8 + $0xc0] sm:$0xff]  ;;  %v133_v37 = vld [vmem:[#allocation8 + $0xc8] sm:$0xff] }
  0x24   :  { %188 = vmatpush.msra.mxu0 %v144_v24  ;;  %229 = vmatpush.msra.mxu1 %v145_v25  ;;  %v134_v38 = vld [vmem:[#allocation8 + $0xd0] sm:$0xff]  ;;  %v135_v39 = vld [vmem:[#allocation8 + $0xd8] sm:$0xff]  ;;  %v128_v40 = vld [vmem:[#allocation8 + $0xa0] sm:$0xff] }
  0x25   :  { %270 = vmatpush.msra.mxu2 %v146_v26  ;;  %311 = vmatpush.msra.mxu3 %v147_v27  ;;  %v129_v41 = vld [vmem:[#allocation8 + $0xa8] sm:$0xff]  ;;  %v130_v42 = vld [vmem:[#allocation8 + $0xb0] sm:$0xff]  ;;  %v131_v43 = vld [vmem:[#allocation8 + $0xb8] sm:$0xff] }
  0x26   :  { %189 = vmatpush.msra.mxu0 %v140_v28  ;;  %230 = vmatpush.msra.mxu1 %v141_v29  ;;  %v124_v44 = vld [vmem:[#allocation8 + $0x80] sm:$0xff]  ;;  %v125_v45 = vld [vmem:[#allocation8 + $0x88] sm:$0xff]  ;;  %v126_v46 = vld [vmem:[#allocation8 + $0x90] sm:$0xff] }
  0x27   :  { %271 = vmatpush.msra.mxu2 %v142_v30  ;;  %312 = vmatpush.msra.mxu3 %v143_v31  ;;  %v127_v47 = vld [vmem:[#allocation8 + $0x98] sm:$0xff]  ;;  %v120_v48 = vld [vmem:[#allocation8 + $0x60] sm:$0xff]  ;;  %v121_v49 = vld [vmem:[#allocation8 + $0x68] sm:$0xff] }
  0x28   :  { %190 = vmatpush.msra.mxu0 %v136_v32  ;;  %231 = vmatpush.msra.mxu1 %v137_v33  ;;  %v122_v50 = vld [vmem:[#allocation8 + $0x70] sm:$0xff]  ;;  %v123_v51 = vld [vmem:[#allocation8 + $0x78] sm:$0xff]  ;;  %v116_v52 = vld [vmem:[#allocation8 + $0x40] sm:$0xff] }
  0x29   :  { %272 = vmatpush.msra.mxu2 %v138_v34  ;;  %313 = vmatpush.msra.mxu3 %v139_v35  ;;  %v117_v53 = vld [vmem:[#allocation8 + $0x48] sm:$0xff]  ;;  %v118_v54 = vld [vmem:[#allocation8 + $0x50] sm:$0xff]  ;;  %v119_v55 = vld [vmem:[#allocation8 + $0x58] sm:$0xff] }
  0x2a   :  { %191 = vmatpush.msra.mxu0 %v132_v36  ;;  %232 = vmatpush.msra.mxu1 %v133_v37  ;;  %v112_v56 = vld [vmem:[#allocation8 + $0x20] sm:$0xff]  ;;  %v113_v57 = vld [vmem:[#allocation8 + $0x28] sm:$0xff]  ;;  %v114_v58 = vld [vmem:[#allocation8 + $0x30] sm:$0xff] }
  0x2b   :  { %273 = vmatpush.msra.mxu2 %v134_v38  ;;  %314 = vmatpush.msra.mxu3 %v135_v39  ;;  %v115_v59 = vld [vmem:[#allocation8 + $0x38] sm:$0xff]  ;;  %v108_v60 = vld [vmem:[#allocation8] sm:$0xff]  ;;  %v109_v61 = vld [vmem:[#allocation8 + $0x8] sm:$0xff] }
  0x2c   :  { %192 = vmatpush.msra.mxu0 %v128_v40  ;;  %233 = vmatpush.msra.mxu1 %v129_v41  ;;  %v110_v62 = vld [vmem:[#allocation8 + $0x10] sm:$0xff]  ;;  %v111_v63 = vld [vmem:[#allocation8 + $0x18] sm:$0xff]  ;;  %v100_v0 = vld [vmem:[#allocation5] sm:$0xff] }
  0x2d   :  { %274 = vmatpush.msra.mxu2 %v130_v42  ;;  %315 = vmatpush.msra.mxu3 %v131_v43  ;;  %v2601_v1 = vld [vmem:[#allocation11 + $0x1e0] sm:$0xff]  ;;  %v2603_v2 = vld [vmem:[#allocation11 + $0x1e8] sm:$0xff]  ;;  %v2605_v3 = vld [vmem:[#allocation11 + $0x1f0] sm:$0xff] }
  0x2e   :  { %193 = vmatpush.msra.mxu0 %v124_v44  ;;  %234 = vmatpush.msra.mxu1 %v125_v45  ;;  %v2607_v4 = vld [vmem:[#allocation11 + $0x1f8] sm:$0xff]  ;;  %v2609_v5 = vld [vmem:[#allocation11 + $0x1c0] sm:$0xff]  ;;  %v2611_v6 = vld [vmem:[#allocation11 + $0x1c8] sm:$0xff] }
  0x2f   :  { %275 = vmatpush.msra.mxu2 %v126_v46  ;;  %316 = vmatpush.msra.mxu3 %v127_v47  ;;  %v2615_v7 = vld [vmem:[#allocation11 + $0x1d0] sm:$0xff]  ;;  %v2617_v8 = vld [vmem:[#allocation11 + $0x1d8] sm:$0xff]  ;;  %v2620_v9 = vld [vmem:[#allocation11 + $0x1a0] sm:$0xff] }
  0x30   :  { %194 = vmatpush.msra.mxu0 %v120_v48  ;;  %235 = vmatpush.msra.mxu1 %v121_v49  ;;  %v2622_v10 = vld [vmem:[#allocation11 + $0x1a8] sm:$0xff]  ;;  %v2627_v11 = vld [vmem:[#allocation11 + $0x1b0] sm:$0xff]  ;;  %v2629_v12 = vld [vmem:[#allocation11 + $0x1b8] sm:$0xff] }
  0x31   :  { %276 = vmatpush.msra.mxu2 %v122_v50  ;;  %317 = vmatpush.msra.mxu3 %v123_v51  ;;  %v101_v13 = vld [vmem:[#allocation5 + $0x8] sm:$0xff]  ;;  %v2641_v16 = vld [vmem:[#allocation11 + $0x190] sm:$0xff]  ;;  %v2643_v17 = vld [vmem:[#allocation11 + $0x198] sm:$0xff] }
  0x32   :  { %195 = vmatpush.msra.mxu0 %v116_v52  ;;  %236 = vmatpush.msra.mxu1 %v117_v53  ;;  %v2635_v14 = vld [vmem:[#allocation11 + $0x180] sm:$0xff]  ;;  %v2637_v15 = vld [vmem:[#allocation11 + $0x188] sm:$0xff]  ;;  %v2651_v20 = vld [vmem:[#allocation11 + $0x170] sm:$0xff] }
  0x33   :  { %277 = vmatpush.msra.mxu2 %v118_v54  ;;  %318 = vmatpush.msra.mxu3 %v119_v55  ;;  %v2645_v18 = vld [vmem:[#allocation11 + $0x160] sm:$0xff]  ;;  %v2647_v19 = vld [vmem:[#allocation11 + $0x168] sm:$0xff]  ;;  %v2653_v21 = vld [vmem:[#allocation11 + $0x178] sm:$0xff] }
  0x34   :  { %196 = vmatpush.msra.mxu0 %v112_v56  ;;  %237 = vmatpush.msra.mxu1 %v113_v57  ;;  %v2656_v22 = vld [vmem:[#allocation11 + $0x140] sm:$0xff]  ;;  %v2658_v23 = vld [vmem:[#allocation11 + $0x148] sm:$0xff]  ;;  %v2663_v24 = vld [vmem:[#allocation11 + $0x150] sm:$0xff] }
  0x35   :  { %278 = vmatpush.msra.mxu2 %v114_v58  ;;  %319 = vmatpush.msra.mxu3 %v115_v59  ;;  %v2665_v25 = vld [vmem:[#allocation11 + $0x158] sm:$0xff]  ;;  %v102_v26 = vld [vmem:[#allocation5 + $0x10] sm:$0xff]  ;;  %v2671_v27 = vld [vmem:[#allocation11 + $0x120] sm:$0xff] }
  0x36   :  { %197 = vmatpush.msra.mxu0 %v108_v60  ;;  %238 = vmatpush.msra.mxu1 %v109_v61  ;;  %v2673_v28 = vld [vmem:[#allocation11 + $0x128] sm:$0xff]  ;;  %v2677_v29 = vld [vmem:[#allocation11 + $0x130] sm:$0xff]  ;;  %v2679_v30 = vld [vmem:[#allocation11 + $0x138] sm:$0xff] }
  0x37   :  { %279 = vmatpush.msra.mxu2 %v110_v62  ;;  %320 = vmatpush.msra.mxu3 %v111_v63  ;;  %v2681_v31 = vld [vmem:[#allocation11 + $0x100] sm:$0xff]  ;;  %v2683_v32 = vld [vmem:[#allocation11 + $0x108] sm:$0xff]  ;;  %v2687_v33 = vld [vmem:[#allocation11 + $0x110] sm:$0xff] }
  0x38   :  { %198 = vmatmul.f32.vlgmr.msra.gmra.mxu0 %v100_v0  ;;  %239 = vmatmul.f32.vlgmr.msra.gmra.mxu1 %v100_v0  ;;  %v2689_v34 = vld [vmem:[#allocation11 + $0x118] sm:$0xff]  ;;  %v2692_v35 = vld [vmem:[#allocation11 + $0xe0] sm:$0xff]  ;;  %v2694_v36 = vld [vmem:[#allocation11 + $0xe8] sm:$0xff] }
  0x39   :  { %280 = vmatmul.f32.vlgmr.msra.gmra.mxu2 %v100_v0  ;;  %321 = vmatmul.f32.vlgmr.msra.gmra.mxu3 %v100_v0  ;;  %v2699_v37 = vld [vmem:[#allocation11 + $0xf0] sm:$0xff]  ;;  %v2701_v38 = vld [vmem:[#allocation11 + $0xf8] sm:$0xff]  ;;  %v2707_v40 = vld [vmem:[#allocation11 + $0xc0] sm:$0xff] }
  0x3a   :  { %452 = vmatpush.msrb.mxu0 %v2601_v1  ;;  %472 = vmatpush.msrb.mxu1 %v2603_v2  ;;  %v103_v39 = vld [vmem:[#allocation5 + $0x18] sm:$0xff]  ;;  %v2709_v41 = vld [vmem:[#allocation11 + $0xc8] sm:$0xff]  ;;  %v2717_v44 = vld [vmem:[#allocation11 + $0xa0] sm:$0xff] }
  0x3b   :  { %492 = vmatpush.msrb.mxu2 %v2605_v3  ;;  %512 = vmatpush.msrb.mxu3 %v2607_v4  ;;  %v2713_v42 = vld [vmem:[#allocation11 + $0xd0] sm:$0xff]  ;;  %v2715_v43 = vld [vmem:[#allocation11 + $0xd8] sm:$0xff]  ;;  %v2719_v45 = vld [vmem:[#allocation11 + $0xa8] sm:$0xff] }
  0x3c   :  { %453 = vmatpush.msrb.mxu0 %v2609_v5  ;;  %473 = vmatpush.msrb.mxu1 %v2611_v6  ;;  %v2723_v46 = vld [vmem:[#allocation11 + $0xb0] sm:$0xff]  ;;  %v2725_v47 = vld [vmem:[#allocation11 + $0xb8] sm:$0xff]  ;;  %v2728_v48 = vld [vmem:[#allocation11 + $0x80] sm:$0xff] }
  0x3d   :  { %493 = vmatpush.msrb.mxu2 %v2615_v7  ;;  %513 = vmatpush.msrb.mxu3 %v2617_v8  ;;  %v2730_v49 = vld [vmem:[#allocation11 + $0x88] sm:$0xff]  ;;  %v2735_v50 = vld [vmem:[#allocation11 + $0x90] sm:$0xff]  ;;  %v2737_v51 = vld [vmem:[#allocation11 + $0x98] sm:$0xff] }
  0x3e   :  { %454 = vmatpush.msrb.mxu0 %v2620_v9  ;;  %474 = vmatpush.msrb.mxu1 %v2622_v10  ;;  %v104_v52 = vld [vmem:[#allocation5 + $0x20] sm:$0xff]  ;;  %v2745_v54 = vld [vmem:[#allocation11 + $0x68] sm:$0xff]  ;;  %v2749_v55 = vld [vmem:[#allocation11 + $0x70] sm:$0xff] }
  0x3f   :  { %494 = vmatpush.msrb.mxu2 %v2627_v11  ;;  %514 = vmatpush.msrb.mxu3 %v2629_v12  ;;  %v2743_v53 = vld [vmem:[#allocation11 + $0x60] sm:$0xff]  ;;  %v2751_v56 = vld [vmem:[#allocation11 + $0x78] sm:$0xff]  ;;  %v2755_v58 = vld [vmem:[#allocation11 + $0x48] sm:$0xff] }
  0x40   :  { %201 = vmatmul.f32.gmra.mxu0 %v101_v13  ;;  %242 = vmatmul.f32.gmra.mxu1 %v101_v13  ;;  %v2753_v57 = vld [vmem:[#allocation11 + $0x40] sm:$0xff]  ;;  %3745 = vst [vmem:[#allocation19_spill] sm:$0xff] %v2755_v58  ;;  %v2759_v59 = vld [vmem:[#allocation11 + $0x50] sm:$0xff]  ;;  %v2761_v60 = vld [vmem:[#allocation11 + $0x58] sm:$0xff] }
  0x41   :  { %283 = vmatmul.f32.gmra.mxu2 %v101_v13  ;;  %324 = vmatmul.f32.gmra.mxu3 %v101_v13  ;;  %v2764_v61 = vld [vmem:[#allocation11 + $0x20] sm:$0xff]  ;;  %v2766_v62 = vld [vmem:[#allocation11 + $0x28] sm:$0xff]  ;;  %v2771_v63 = vld [vmem:[#allocation11 + $0x30] sm:$0xff] }
  0x42   :  { %455 = vmatpush.msrb.mxu0 %v2635_v14  ;;  %475 = vmatpush.msrb.mxu1 %v2637_v15  ;;  %v2773_v0 = vld [vmem:[#allocation11 + $0x38] sm:$0xff]  ;;  %v105_v13 = vld [vmem:[#allocation5 + $0x28] sm:$0xff] }
  0x43   :  { %495 = vmatpush.msrb.mxu2 %v2641_v16  ;;  %515 = vmatpush.msrb.mxu3 %v2643_v17  ;;  %3746 = vst [vmem:[#allocation20_spill] sm:$0xff] %v2773_v0 }
  0x44   :  { %456 = vmatpush.msrb.mxu0 %v2645_v18  ;;  %476 = vmatpush.msrb.mxu1 %v2647_v19 }
  0x45   :  { %496 = vmatpush.msrb.mxu2 %v2651_v20  ;;  %516 = vmatpush.msrb.mxu3 %v2653_v21 }
  0x46   :  { %457 = vmatpush.msrb.mxu0 %v2656_v22  ;;  %477 = vmatpush.msrb.mxu1 %v2658_v23 }
  0x47   :  { %497 = vmatpush.msrb.mxu2 %v2663_v24  ;;  %517 = vmatpush.msrb.mxu3 %v2665_v25 }
  0x48   :  { %204 = vmatmul.f32.gmra.mxu0 %v102_v26  ;;  %245 = vmatmul.f32.gmra.mxu1 %v102_v26 }
  0x49   :  { %286 = vmatmul.f32.gmra.mxu2 %v102_v26  ;;  %327 = vmatmul.f32.gmra.mxu3 %v102_v26  ;;  %v2779_v26 = vld [vmem:[#allocation11] sm:$0xff] }
  0x4a   :  { %458 = vmatpush.msrb.mxu0 %v2671_v27  ;;  %478 = vmatpush.msrb.mxu1 %v2673_v28 }
  0x4b   :  { %498 = vmatpush.msrb.mxu2 %v2677_v29  ;;  %518 = vmatpush.msrb.mxu3 %v2679_v30 }
  0x4c   :  { %459 = vmatpush.msrb.mxu0 %v2681_v31  ;;  %479 = vmatpush.msrb.mxu1 %v2683_v32 }
  0x4d   :  { %499 = vmatpush.msrb.mxu2 %v2687_v33  ;;  %519 = vmatpush.msrb.mxu3 %v2689_v34 }
  0x4e   :  { %460 = vmatpush.msrb.mxu0 %v2692_v35  ;;  %480 = vmatpush.msrb.mxu1 %v2694_v36 }
  0x4f   :  { %500 = vmatpush.msrb.mxu2 %v2699_v37  ;;  %520 = vmatpush.msrb.mxu3 %v2701_v38 }
  0x50   :  { %207 = vmatmul.f32.gmra.mxu0 %v103_v39  ;;  %248 = vmatmul.f32.gmra.mxu1 %v103_v39 }
  0x51   :  { %289 = vmatmul.f32.gmra.mxu2 %v103_v39  ;;  %330 = vmatmul.f32.gmra.mxu3 %v103_v39  ;;  %v2781_v39 = vld [vmem:[#allocation11 + $0x8] sm:$0xff] }
  0x52   :  { %461 = vmatpush.msrb.mxu0 %v2707_v40  ;;  %481 = vmatpush.msrb.mxu1 %v2709_v41 }
  0x53   :  { %501 = vmatpush.msrb.mxu2 %v2713_v42  ;;  %521 = vmatpush.msrb.mxu3 %v2715_v43 }
  0x54   :  { %462 = vmatpush.msrb.mxu0 %v2717_v44  ;;  %482 = vmatpush.msrb.mxu1 %v2719_v45 }
  0x55   :  { %502 = vmatpush.msrb.mxu2 %v2723_v46  ;;  %522 = vmatpush.msrb.mxu3 %v2725_v47 }
  0x56   :  { %463 = vmatpush.msrb.mxu0 %v2728_v48  ;;  %483 = vmatpush.msrb.mxu1 %v2730_v49 }
  0x57   :  { %503 = vmatpush.msrb.mxu2 %v2735_v50  ;;  %523 = vmatpush.msrb.mxu3 %v2737_v51 }
  0x58   :  { %210 = vmatmul.f32.gmra.mxu0 %v104_v52  ;;  %251 = vmatmul.f32.gmra.mxu1 %v104_v52 }
  0x59   :  { %292 = vmatmul.f32.gmra.mxu2 %v104_v52  ;;  %333 = vmatmul.f32.gmra.mxu3 %v104_v52  ;;  %v2785_v52 = vld [vmem:[#allocation11 + $0x10] sm:$0xff] }
  0x5a   :  { %464 = vmatpush.msrb.mxu0 %v2743_v53  ;;  %484 = vmatpush.msrb.mxu1 %v2745_v54 }
  0x5b   :  { %504 = vmatpush.msrb.mxu2 %v2749_v55  ;;  %524 = vmatpush.msrb.mxu3 %v2751_v56 }
  0x5c   :  { %465 = vmatpush.msrb.mxu0 %v2753_v57  ;;  %485 = vmatpush.msrb.mxu1 %v2755_v58  ;;  %v2787_v58 = vld [vmem:[#allocation11 + $0x18] sm:$0xff] }
  0x5d   :  { %505 = vmatpush.msrb.mxu2 %v2759_v59  ;;  %525 = vmatpush.msrb.mxu3 %v2761_v60 }
  0x5e   :  { %466 = vmatpush.msrb.mxu0 %v2764_v61  ;;  %486 = vmatpush.msrb.mxu1 %v2766_v62 }
  0x5f   :  { %506 = vmatpush.msrb.mxu2 %v2771_v63  ;;  %526 = vmatpush.msrb.mxu3 %v2773_v0  ;;  %v106_v0 = vld [vmem:[#allocation5 + $0x30] sm:$0xff] }
  0x60   :  { %213 = vmatmul.f32.gmra.mxu0 %v105_v13  ;;  %254 = vmatmul.f32.gmra.mxu1 %v105_v13 }
  0x61   :  { %295 = vmatmul.f32.gmra.mxu2 %v105_v13  ;;  %336 = vmatmul.f32.gmra.mxu3 %v105_v13  ;;  %v107_v13 = vld [vmem:[#allocation5 + $0x38] sm:$0xff] }
  0x62   :  { %467 = vmatpush.msrb.mxu0 %v2779_v26  ;;  %487 = vmatpush.msrb.mxu1 %v2781_v39 }
  0x63   :  { %507 = vmatpush.msrb.mxu2 %v2785_v52  ;;  %527 = vmatpush.msrb.mxu3 %v2787_v58 }
  0x64   :  { %674 = vmatpush.msra.mxu0 %v2601_v1  ;;  %694 = vmatpush.msra.mxu1 %v2603_v2 }
  0x65   :  { %714 = vmatpush.msra.mxu2 %v2605_v3  ;;  %734 = vmatpush.msra.mxu3 %v2607_v4 }
  0x66   :  { %675 = vmatpush.msra.mxu0 %v2609_v5  ;;  %695 = vmatpush.msra.mxu1 %v2611_v6 }
  0x67   :  { %715 = vmatpush.msra.mxu2 %v2615_v7  ;;  %735 = vmatpush.msra.mxu3 %v2617_v8 }
  0x68   :  { %216 = vmatmul.f32.gmra.mxu0 %v106_v0  ;;  %257 = vmatmul.f32.gmra.mxu1 %v106_v0 }
  0x69   :  { %298 = vmatmul.f32.gmra.mxu2 %v106_v0  ;;  %339 = vmatmul.f32.gmra.mxu3 %v106_v0  ;;  %v2549_v0 = vmov 0.0  }
  0x6a   :  { %676 = vmatpush.msra.mxu0 %v2620_v9  ;;  %696 = vmatpush.msra.mxu1 %v2622_v10 }
  0x6b   :  { %716 = vmatpush.msra.mxu2 %v2627_v11  ;;  %736 = vmatpush.msra.mxu3 %v2629_v12 }
  0x6c   :  { %677 = vmatpush.msra.mxu0 %v2635_v14  ;;  %697 = vmatpush.msra.mxu1 %v2637_v15 }
  0x6d   :  { %717 = vmatpush.msra.mxu2 %v2641_v16  ;;  %737 = vmatpush.msra.mxu3 %v2643_v17 }
  0x6e   :  { %678 = vmatpush.msra.mxu0 %v2645_v18  ;;  %698 = vmatpush.msra.mxu1 %v2647_v19 }
  0x6f   :  { %718 = vmatpush.msra.mxu2 %v2651_v20  ;;  %738 = vmatpush.msra.mxu3 %v2653_v21 }
  0x70   :  { %219 = vmatmul.f32.gmra.mxu0 %v107_v13  ;;  %260 = vmatmul.f32.gmra.mxu1 %v107_v13 }
  0x71   :  { %301 = vmatmul.f32.gmra.mxu2 %v107_v13  ;;  %342 = vmatmul.f32.gmra.mxu3 %v107_v13  ;;  %v3747_v13 = vld [vmem:[#allocation19_spill] sm:$0xff] }
  0x72   :  { %679 = vmatpush.msra.mxu0 %v2656_v22  ;;  %699 = vmatpush.msra.mxu1 %v2658_v23 }
  0x73   :  { %719 = vmatpush.msra.mxu2 %v2663_v24  ;;  %739 = vmatpush.msra.mxu3 %v2665_v25 }
  0x74   :  { %680 = vmatpush.msra.mxu0 %v2671_v27  ;;  %700 = vmatpush.msra.mxu1 %v2673_v28 }
  0x75   :  { %720 = vmatpush.msra.mxu2 %v2677_v29  ;;  %740 = vmatpush.msra.mxu3 %v2679_v30 }
  0x76   :  { %681 = vmatpush.msra.mxu0 %v2681_v31  ;;  %701 = vmatpush.msra.mxu1 %v2683_v32 }
  0x77   :  { %721 = vmatpush.msra.mxu2 %v2687_v33  ;;  %741 = vmatpush.msra.mxu3 %v2689_v34 }
  0x78   :  { %468 = vmatmul.f32.vlgmr.msrb.gmra.mxu0 %v2549_v0  ;;  %488 = vmatmul.f32.vlgmr.msrb.gmra.mxu1 %v2549_v0 }
  0x79   :  { %508 = vmatmul.f32.vlgmr.msrb.gmra.mxu2 %v2549_v0  ;;  %528 = vmatmul.f32.vlgmr.msrb.gmra.mxu3 %v2549_v0  ;;  %v3748_v0 = vld [vmem:[#allocation20_spill] sm:$0xff] }
  0x7a   :  { %682 = vmatpush.msra.mxu0 %v2692_v35  ;;  %702 = vmatpush.msra.mxu1 %v2694_v36 }
  0x7b   :  { %722 = vmatpush.msra.mxu2 %v2699_v37  ;;  %742 = vmatpush.msra.mxu3 %v2701_v38 }
  0x7c   :  { %683 = vmatpush.msra.mxu0 %v2707_v40  ;;  %703 = vmatpush.msra.mxu1 %v2709_v41 }
  0x7d   :  { %723 = vmatpush.msra.mxu2 %v2713_v42  ;;  %743 = vmatpush.msra.mxu3 %v2715_v43 }
  0x7e   :  { %684 = vmatpush.msra.mxu0 %v2717_v44  ;;  %704 = vmatpush.msra.mxu1 %v2719_v45 }
  0x7f   :  { %724 = vmatpush.msra.mxu2 %v2723_v46  ;;  %744 = vmatpush.msra.mxu3 %v2725_v47 }
  0x80   :  { %685 = vmatpush.msra.mxu0 %v2728_v48  ;;  %705 = vmatpush.msra.mxu1 %v2730_v49 }
  0x81   :  { %725 = vmatpush.msra.mxu2 %v2735_v50  ;;  %745 = vmatpush.msra.mxu3 %v2737_v51 }
  0x82   :  { %686 = vmatpush.msra.mxu0 %v2743_v53  ;;  %706 = vmatpush.msra.mxu1 %v2745_v54 }
  0x83   :  { %726 = vmatpush.msra.mxu2 %v2749_v55  ;;  %746 = vmatpush.msra.mxu3 %v2751_v56 }
  0x84   :  { %687 = vmatpush.msra.mxu0 %v2753_v57  ;;  %707 = vmatpush.msra.mxu1 %v3747_v13 }
  0x85   :  { %727 = vmatpush.msra.mxu2 %v2759_v59  ;;  %747 = vmatpush.msra.mxu3 %v2761_v60 }
  0x86   :  { %688 = vmatpush.msra.mxu0 %v2764_v61  ;;  %708 = vmatpush.msra.mxu1 %v2766_v62 }
  0x87   :  { %728 = vmatpush.msra.mxu2 %v2771_v63  ;;  %748 = vmatpush.msra.mxu3 %v3748_v0 }
  0x88   :  { %689 = vmatpush.msra.mxu0 %v2779_v26  ;;  %709 = vmatpush.msra.mxu1 %v2781_v39 }
  0x89   :  { %729 = vmatpush.msra.mxu2 %v2785_v52  ;;  %749 = vmatpush.msra.mxu3 %v2787_v58 }
  0x8a   :  { %896 = vmatpush.msrb.mxu0 %v2601_v1  ;;  %916 = vmatpush.msrb.mxu1 %v2603_v2 }
  0x8b   :  { %936 = vmatpush.msrb.mxu2 %v2605_v3  ;;  %956 = vmatpush.msrb.mxu3 %v2607_v4  ;;  %v172_v3 = vld [vmem:[#allocation10] sm:$0xf] }
  0x8c   :  { %897 = vmatpush.msrb.mxu0 %v2609_v5  ;;  %917 = vmatpush.msrb.mxu1 %v2611_v6  ;;  %v174_v4 = vperm.slane %v172_v3, 0  ;;  %v175_v5 = vperm.slane %v172_v3, 1 }
  0x8d   :  { %937 = vmatpush.msrb.mxu2 %v2615_v7  ;;  %957 = vmatpush.msrb.mxu3 %v2617_v8 }
  0x8e   :  { %898 = vmatpush.msrb.mxu0 %v2620_v9  ;;  %918 = vmatpush.msrb.mxu1 %v2622_v10 }
  0x8f   :  { %938 = vmatpush.msrb.mxu2 %v2627_v11  ;;  %958 = vmatpush.msrb.mxu3 %v2629_v12  ;;  %v2929_v12 = vperm.slane %v172_v3, 2 }
  0x90   :  { %899 = vmatpush.msrb.mxu0 %v2635_v14  ;;  %919 = vmatpush.msrb.mxu1 %v2637_v15  ;;  %v2931_v14 = vperm.slane %v172_v3, 3 }
  0x91   :  { %939 = vmatpush.msrb.mxu2 %v2641_v16  ;;  %959 = vmatpush.msrb.mxu3 %v2643_v17 }
  0x92   :  { %900 = vmatpush.msrb.mxu0 %v2645_v18  ;;  %920 = vmatpush.msrb.mxu1 %v2647_v19 }
  0x93   :  { %940 = vmatpush.msrb.mxu2 %v2651_v20  ;;  %960 = vmatpush.msrb.mxu3 %v2653_v21 }
  0x94   :  { %901 = vmatpush.msrb.mxu0 %v2656_v22  ;;  %921 = vmatpush.msrb.mxu1 %v2658_v23 }
  0x95   :  { %941 = vmatpush.msrb.mxu2 %v2663_v24  ;;  %961 = vmatpush.msrb.mxu3 %v2665_v25 }
  0x96   :  { %902 = vmatpush.msrb.mxu0 %v2671_v27  ;;  %922 = vmatpush.msrb.mxu1 %v2673_v28 }
  0x97   :  { %942 = vmatpush.msrb.mxu2 %v2677_v29  ;;  %962 = vmatpush.msrb.mxu3 %v2679_v30 }
  0x98   :  { %903 = vmatpush.msrb.mxu0 %v2681_v31  ;;  %923 = vmatpush.msrb.mxu1 %v2683_v32 }
  0x99   :  { %943 = vmatpush.msrb.mxu2 %v2687_v33  ;;  %963 = vmatpush.msrb.mxu3 %v2689_v34 }
  0x9a   :  { %904 = vmatpush.msrb.mxu0 %v2692_v35  ;;  %924 = vmatpush.msrb.mxu1 %v2694_v36 }
  0x9b   :  { %944 = vmatpush.msrb.mxu2 %v2699_v37  ;;  %964 = vmatpush.msrb.mxu3 %v2701_v38 }
  0x9c   :  { %905 = vmatpush.msrb.mxu0 %v2707_v40  ;;  %925 = vmatpush.msrb.mxu1 %v2709_v41 }
  0x9d   :  { %945 = vmatpush.msrb.mxu2 %v2713_v42  ;;  %965 = vmatpush.msrb.mxu3 %v2715_v43 }
  0x9e   :  { %906 = vmatpush.msrb.mxu0 %v2717_v44  ;;  %926 = vmatpush.msrb.mxu1 %v2719_v45 }
  0x9f   :  { %946 = vmatpush.msrb.mxu2 %v2723_v46  ;;  %966 = vmatpush.msrb.mxu3 %v2725_v47 }
  0xa0   :  { %907 = vmatpush.msrb.mxu0 %v2728_v48  ;;  %927 = vmatpush.msrb.mxu1 %v2730_v49 }
  0xa1   :  { %947 = vmatpush.msrb.mxu2 %v2735_v50  ;;  %967 = vmatpush.msrb.mxu3 %v2737_v51 }
  0xa2   :  { %908 = vmatpush.msrb.mxu0 %v2743_v53  ;;  %928 = vmatpush.msrb.mxu1 %v2745_v54 }
  0xa3   :  { %948 = vmatpush.msrb.mxu2 %v2749_v55  ;;  %968 = vmatpush.msrb.mxu3 %v2751_v56 }
  0xa4   :  { %909 = vmatpush.msrb.mxu0 %v2753_v57  ;;  %929 = vmatpush.msrb.mxu1 %v3747_v13 }
  0xa5   :  { %949 = vmatpush.msrb.mxu2 %v2759_v59  ;;  %969 = vmatpush.msrb.mxu3 %v2761_v60 }
  0xa6   :  { %910 = vmatpush.msrb.mxu0 %v2764_v61  ;;  %930 = vmatpush.msrb.mxu1 %v2766_v62 }
  0xa7   :  { %950 = vmatpush.msrb.mxu2 %v2771_v63  ;;  %970 = vmatpush.msrb.mxu3 %v3748_v0 }
  0xa8   :  { %911 = vmatpush.msrb.mxu0 %v2779_v26  ;;  %931 = vmatpush.msrb.mxu1 %v2781_v39 }
  0xa9   :  { %951 = vmatpush.msrb.mxu2 %v2785_v52  ;;  %971 = vmatpush.msrb.mxu3 %v2787_v58 }
  0xb5   :  { %v199_v1 = vpop.f32.mrf.mxu0  ;;  %v240_v2 = vpop.f32.mrf.mxu1 }
  0xb6   :  { %v200_v52 = vadd.f32 %v199_v1, %v174_v4  ;;  %v241_v13 = vadd.f32 %v240_v2, %v175_v5 }
  0xbc   :  { %v2921_v6 = vpop.f32.mrf.mxu2  ;;  %v2923_v7 = vpop.f32.mrf.mxu3 }
  0xbd   :  { %v202_v8 = vpop.f32.mrf.mxu0  ;;  %v243_v9 = vpop.f32.mrf.mxu1 }
  0xbe   :  { %v2925_v10 = vadd.f32 %v202_v8, %v174_v4  ;;  %v2927_v11 = vadd.f32 %v243_v9, %v175_v5 }
  0xc4   :  { %v284_v15 = vpop.f32.mrf.mxu2  ;;  %v325_v16 = vpop.f32.mrf.mxu3 }
  0xc5   :  { %v2934_v17 = vadd.f32 %v284_v15, %v2929_v12  ;;  %v2937_v18 = vadd.f32 %v325_v16, %v2931_v14  ;;  %v205_v19 = vpop.f32.mrf.mxu0  ;;  %v246_v20 = vpop.f32.mrf.mxu1 }
  0xc6   :  { %v2939_v21 = vadd.f32 %v205_v19, %v174_v4  ;;  %v2941_v22 = vadd.f32 %v246_v20, %v175_v5 }
  0xcc   :  { %v287_v23 = vpop.f32.mrf.mxu2  ;;  %v328_v24 = vpop.f32.mrf.mxu3 }
  0xcd   :  { %v2944_v25 = vadd.f32 %v287_v23, %v2929_v12  ;;  %v2947_v27 = vadd.f32 %v328_v24, %v2931_v14  ;;  %v208_v28 = vpop.f32.mrf.mxu0  ;;  %v249_v29 = vpop.f32.mrf.mxu1 }
  0xce   :  { %v2949_v30 = vadd.f32 %v208_v28, %v174_v4  ;;  %v2951_v31 = vadd.f32 %v249_v29, %v175_v5  ;;  %v282_v28 = vadd.f32 %v2921_v6, %v2929_v12 }
  0xd0   :  { %3749 = vst [vmem:[#allocation19_spill] sm:$0xff] %v2949_v30  ;;  %v3187_v30 = vld [vmem:[#allocation11 + $0x30] sm:$0xff] }
  0xd1   :  { %3750 = vst [vmem:[#allocation20_spill] sm:$0xff] %v2951_v31 }
  0xd4   :  { %v290_v32 = vpop.f32.mrf.mxu2  ;;  %v331_v33 = vpop.f32.mrf.mxu3 }
  0xd5   :  { %v2954_v34 = vadd.f32 %v290_v32, %v2929_v12  ;;  %v2957_v35 = vadd.f32 %v331_v33, %v2931_v14  ;;  %v211_v36 = vpop.f32.mrf.mxu0  ;;  %v252_v37 = vpop.f32.mrf.mxu1 }
  0xd6   :  { %v2959_v38 = vadd.f32 %v211_v36, %v174_v4  ;;  %v2961_v40 = vadd.f32 %v252_v37, %v175_v5 }
  0xd7   :  { %3751 = vst [vmem:[#allocation21_spill] sm:$0xff] %v2954_v34  ;;  %v3180_v34 = vld [vmem:[#allocation11 + $0x20] sm:$0xff] }
  0xd8   :  { %3752 = vst [vmem:[#allocation22_spill] sm:$0xff] %v2957_v35  ;;  %v3178_v35 = vld [vmem:[#allocation11 + $0x58] sm:$0xff] }
  0xd9   :  { %3753 = vst [vmem:[#allocation23_spill] sm:$0xff] %v2959_v38 }
  0xda   :  { %3754 = vst [vmem:[#allocation24_spill] sm:$0xff] %v2961_v40  ;;  %v3172_v40 = vld [vmem:[#allocation11 + $0x48] sm:$0xff] }
  0xdb   :  { %3786 = vst [vmem:[#allocation56_spill] sm:$0xff] %v3172_v40 }
  0xdc   :  { %v293_v41 = vpop.f32.mrf.mxu2  ;;  %v334_v42 = vpop.f32.mrf.mxu3  ;;  %3788 = vst [vmem:[#allocation58_spill] sm:$0xff] %v3178_v35 }
  0xdd   :  { %v2964_v43 = vadd.f32 %v293_v41, %v2929_v12  ;;  %v2967_v44 = vadd.f32 %v334_v42, %v2931_v14  ;;  %v214_v45 = vpop.f32.mrf.mxu0  ;;  %v255_v46 = vpop.f32.mrf.mxu1  ;;  %v323_v41 = vadd.f32 %v2923_v7, %v2931_v14 }
  0xde   :  { %v2969_v47 = vadd.f32 %v214_v45, %v174_v4  ;;  %v2971_v48 = vadd.f32 %v255_v46, %v175_v5 }
  0xdf   :  { %3755 = vst [vmem:[#allocation25_spill] sm:$0xff] %v2964_v43  ;;  %v3170_v43 = vld [vmem:[#allocation11 + $0x40] sm:$0xff] }
  0xe0   :  { %3756 = vst [vmem:[#allocation26_spill] sm:$0xff] %v2967_v44  ;;  %v3166_v44 = vld [vmem:[#allocation11 + $0x78] sm:$0xff] }
  0xe1   :  { %3757 = vst [vmem:[#allocation27_spill] sm:$0xff] %v2969_v47  ;;  %v3158_v47 = vld [vmem:[#allocation11 + $0x60] sm:$0xff] }
  0xe2   :  { %3758 = vst [vmem:[#allocation28_spill] sm:$0xff] %v2971_v48  ;;  %v3156_v48 = vld [vmem:[#allocation11 + $0x98] sm:$0xff] }
  0xe3   :  { %3782 = vst [vmem:[#allocation52_spill] sm:$0xff] %v3158_v47 }
  0xe4   :  { %v296_v49 = vpop.f32.mrf.mxu2  ;;  %v337_v50 = vpop.f32.mrf.mxu3  ;;  %3785 = vst [vmem:[#allocation55_spill] sm:$0xff] %v3166_v44 }
  0xe5   :  { %v2974_v51 = vadd.f32 %v296_v49, %v2929_v12  ;;  %v2977_v53 = vadd.f32 %v337_v50, %v2931_v14  ;;  %v217_v54 = vpop.f32.mrf.mxu0  ;;  %v258_v55 = vpop.f32.mrf.mxu1 }
  0xe6   :  { %v2979_v56 = vadd.f32 %v217_v54, %v174_v4  ;;  %v2981_v57 = vadd.f32 %v258_v55, %v175_v5 }
  0xe7   :  { %3759 = vst [vmem:[#allocation29_spill] sm:$0xff] %v2974_v51 }
  0xe8   :  { %3760 = vst [vmem:[#allocation30_spill] sm:$0xff] %v2977_v53  ;;  %v3144_v53 = vld [vmem:[#allocation11 + $0xb8] sm:$0xff] }
  0xe9   :  { %3761 = vst [vmem:[#allocation31_spill] sm:$0xff] %v2979_v56  ;;  %v3140_v56 = vld [vmem:[#allocation11 + $0xb0] sm:$0xff] }
  0xea   :  { %3762 = vst [vmem:[#allocation32_spill] sm:$0xff] %v2981_v57  ;;  %v3138_v57 = vld [vmem:[#allocation11 + $0xa8] sm:$0xff] }
  0xec   :  { %v299_v58 = vpop.f32.mrf.mxu2  ;;  %v340_v59 = vpop.f32.mrf.mxu3 }
  0xed   :  { %v2984_v60 = vadd.f32 %v299_v58, %v2929_v12  ;;  %v2987_v61 = vadd.f32 %v340_v59, %v2931_v14  ;;  %v220_v62 = vpop.f32.mrf.mxu0  ;;  %v261_v63 = vpop.f32.mrf.mxu1 }
  0xee   :  { %v2989_v26 = vadd.f32 %v220_v62, %v174_v4  ;;  %v2991_v39 = vadd.f32 %v261_v63, %v175_v5 }
  0xef   :  { %3763 = vst [vmem:[#allocation33_spill] sm:$0xff] %v2984_v60  ;;  %v3136_v60 = vld [vmem:[#allocation11 + $0xa0] sm:$0xff] }
  0xf0   :  { %3764 = vst [vmem:[#allocation34_spill] sm:$0xff] %v2987_v61 }
  0xf1   :  { %3765 = vst [vmem:[#allocation35_spill] sm:$0xff] %v2989_v26 }
  0xf2   :  { %3766 = vst [vmem:[#allocation36_spill] sm:$0xff] %v2991_v39  ;;  %v3130_v39 = vld [vmem:[#allocation11 + $0xd8] sm:$0xff] }
  0xf4   :  { %v302_v0 = vpop.f32.mrf.mxu2  ;;  %v343_v3 = vpop.f32.mrf.mxu3 }
  0xf5   :  { %v2994_v8 = vadd.f32 %v302_v0, %v2929_v12  ;;  %v2997_v9 = vadd.f32 %v343_v3, %v2931_v14  ;;  %v469_v15 = vpop.f32.mrf.mxu0  ;;  %v489_v16 = vpop.f32.mrf.mxu1 }
  0xf6   :  { %v532_v19 = vadd.f32 %v469_v15, %v200_v52  ;;  %v533_v20 = vadd.f32 %v489_v16, %v241_v13 }
  0xf7   :  { %3767 = vst [vmem:[#allocation37_spill] sm:$0xff] %v2994_v8 }
  0xf8   :  { %3768 = vst [vmem:[#allocation38_spill] sm:$0xff] %v2997_v9  ;;  %v2224_v23 = vmul.f32 -1.442695, %v532_v19  ;;  %v2225_v24 = vmul.f32 -1.442695, %v533_v20 }
  0xfa   :  { %2260 = vpow2.f32 %v2224_v23 }
  0xfb   :  { %2262 = vpow2.f32 %v2225_v24 }
  0xfc   :  { %v509_v1 = vpop.f32.mrf.mxu2  ;;  %v529_v36 = vpop.f32.mrf.mxu3 }
  0xfd   :  { %v534_v2 = vadd.f32 %v509_v1, %v282_v28  ;;  %v535_v46 = vadd.f32 %v529_v36, %v323_v41 }
  0xff   :  { %v2226_v4 = vmul.f32 -1.442695, %v534_v2 }
 0x100   :  { %v2261_v5 = vpop.eup %2260 }
 0x101   :  { %v2263_v29 = vpop.eup %2262  ;;  %v545_v32 = vadd.f32 1.0, %v2261_v5  ;;  %2264 = vpow2.f32 %v2226_v4 }
 0x102   :  { %v546_v33 = vadd.f32 1.0, %v2263_v29 }
 0x103   :  { %2266 = vrcp.f32 %v545_v32  ;;  %v559_v55 = vand.u32 2147483648, %v545_v32  ;;  %v557_v62 = vand.u32 2147483647, %v545_v32  ;;  %vm553_vm2 = vweird.f32 %v545_v32 }
 0x104   :  { %2268 = vrcp.f32 %v546_v33  ;;  %v574_v58 = vand.u32 2147483648, %v546_v33  ;;  %v572_v52 = vand.u32 2147483647, %v546_v33  ;;  %vm568_vm3 = vweird.f32 %v546_v33 }
 0x105   :  { %v560_v0 = vor.u32 1.1754944e-38, %v559_v55  ;;  %vm558_vm5 = vcmp.eq.f32.partialorder %v557_v62, 8.507059e+37 }
 0x106   :  { %v575_v15 = vor.u32 1.1754944e-38, %v574_v58  ;;  %vm573_vm7 = vcmp.eq.f32.partialorder %v572_v52, 8.507059e+37 }
 0x107   :  { %v2265_v37 = vpop.eup %2264 }
 0x108   :  { %v547_v42 = vadd.f32 1.0, %v2265_v37 }
 0x109   :  { %v2267_v45 = vpop.eup %2266 }
 0x10a   :  { %v2269_v6 = vpop.eup %2268  ;;  %v549_v12 = vmul.f32 %v2267_v45, %v545_v32  ;;  %2270 = vrcp.f32 %v547_v42  ;;  %vm554_vm0 = vweird.f32 %v2267_v45  ;;  %v589_v32 = vand.u32 2147483648, %v547_v42 }
 0x10b   :  { %v564_v49 = vmul.f32 %v2269_v6, %v546_v33  ;;  %2272 = vtanh.f32 %v535_v46  ;;  %vm569_vm1 = vweird.f32 %v2269_v6  ;;  %vm555_vm4 = vmor %vm553_vm2, %vm554_vm0  ;;  %vm583_vm9 = vweird.f32 %v547_v42 }
 0x10c   :  { %v550_v50 = vsub.f32 1.0, %v549_v12  ;;  %vm570_vm6 = vmor %vm568_vm3, %vm569_vm1  ;;  %v587_v33 = vand.u32 2147483647, %v547_v42  ;;  %v590_v37 = vor.u32 1.1754944e-38, %v589_v32 }
 0x10d   :  { %v565_v54 = vsub.f32 1.0, %v564_v49 }
 0x10e   :  { %v551_v59 = vmul.f32 %v2267_v45, %v550_v50  ;;  %vm588_vm11 = vcmp.eq.f32.partialorder %v587_v33, 8.507059e+37 }
 0x10f   :  { %v566_v63 = vmul.f32 %v2269_v6, %v565_v54 }
 0x110   :  { %v2271_v13 = vpop.eup %2270  ;;  %v552_v7 = vadd.f32 %v2267_v45, %v551_v59 }
 0x111   :  { %v579_v14 = vmul.f32 %v2271_v13, %v547_v42  ;;  %v567_v3 = vadd.f32 %v2269_v6, %v566_v63  ;;  %v2273_v19 = vpop.eup %2272  ;;  %vm584_vm8 = vweird.f32 %v2271_v13 }
 0x112   :  { %v556_v16 = vsel %vm555_vm4, %v2267_v45, %v552_v7  ;;  %vm585_vm10 = vmor %vm583_vm9, %vm584_vm8 }
 0x113   :  { %v580_v20 = vsub.f32 1.0, %v579_v14  ;;  %v561_v23 = vsel %vm558_vm5, %v560_v0, %v556_v16  ;;  %v571_v24 = vsel %vm570_vm6, %v2269_v6, %v567_v3 }
 0x114   :  { %v576_v28 = vsel %vm573_vm7, %v575_v15, %v571_v24  ;;  %v596_v1 = vmul.f32 %v2273_v19, %v561_v23 }
 0x115   :  { %v595_v2 = vmul.f32 0.0, %v576_v28  ;;  %v581_v4 = vmul.f32 %v2271_v13, %v580_v20 }
 0x117   :  { %v3003_v5 = vadd.f32 %v596_v1, %v595_v2  ;;  %v582_v29 = vadd.f32 %v2271_v13, %v581_v4 }
 0x119   :  { %2274 = vtanh.f32 %v3003_v5  ;;  %v586_v36 = vsel %vm585_vm10, %v2271_v13, %v582_v29 }
 0x11a   :  { %v591_v45 = vsel %vm588_vm11, %v590_v37, %v586_v36 }
 0x11f   :  { %v2275_v41 = vpop.eup %2274 }
 0x120   :  { %v600_v46 = vmul.f32 %v2275_v41, %v591_v45 }
 0x122   :  { %690 = vmatmul.f32.vlgmr.msra.gmra.mxu0 %v600_v46  ;;  %710 = vmatmul.f32.vlgmr.msra.gmra.mxu1 %v600_v46 }
 0x123   :  { %730 = vmatmul.f32.vlgmr.msra.gmra.mxu2 %v600_v46  ;;  %750 = vmatmul.f32.vlgmr.msra.gmra.mxu3 %v600_v46 }
 0x19f   :  { %v691_v6 = vpop.f32.mrf.mxu0  ;;  %v711_v12 = vpop.f32.mrf.mxu1 }
 0x1a0   :  { %v754_v49 = vadd.f32 %v691_v6, %v2925_v10  ;;  %v755_v50 = vadd.f32 %v711_v12, %v2927_v11 }
 0x1a2   :  { %v2227_v54 = vmul.f32 -1.442695, %v754_v49  ;;  %v2228_v55 = vmul.f32 -1.442695, %v755_v50 }
 0x1a4   :  { %2276 = vpow2.f32 %v2227_v54 }
 0x1a5   :  { %2278 = vpow2.f32 %v2228_v55 }
 0x1a6   :  { %v731_v42 = vpop.f32.mrf.mxu2  ;;  %v751_v7 = vpop.f32.mrf.mxu3 }
 0x1a7   :  { %v756_v58 = vadd.f32 %v731_v42, %v2934_v17  ;;  %v757_v11 = vadd.f32 %v751_v7, %v2937_v18 }
 0x1a9   :  { %v2229_v59 = vmul.f32 -1.442695, %v756_v58 }
 0x1aa   :  { %v2277_v62 = vpop.eup %2276 }
 0x1ab   :  { %v2279_v63 = vpop.eup %2278  ;;  %v767_v52 = vadd.f32 1.0, %v2277_v62  ;;  %2280 = vpow2.f32 %v2229_v59 }
 0x1ac   :  { %v768_v13 = vadd.f32 1.0, %v2279_v63 }
 0x1ad   :  { %2282 = vrcp.f32 %v767_v52  ;;  %v781_v20 = vand.u32 2147483648, %v767_v52  ;;  %v779_v28 = vand.u32 2147483647, %v767_v52  ;;  %vm775_vm14 = vweird.f32 %v767_v52 }
 0x1ae   :  { %2284 = vrcp.f32 %v768_v13  ;;  %v796_v23 = vand.u32 2147483648, %v768_v13  ;;  %v794_v2 = vand.u32 2147483647, %v768_v13  ;;  %vm790_vm15 = vweird.f32 %v768_v13 }
 0x1af   :  { %v782_v32 = vor.u32 1.1754944e-38, %v781_v20  ;;  %vm780_vm2 = vcmp.eq.f32.partialorder %v779_v28, 8.507059e+37  ;;  %v3042_v20 = vld [vmem:[#allocation11 + $0x1b0] sm:$0xff]  ;;  %v3052_v28 = vld [vmem:[#allocation11 + $0x188] sm:$0xff] }
 0x1b0   :  { %v797_v36 = vor.u32 1.1754944e-38, %v796_v23  ;;  %vm795_vm3 = vcmp.eq.f32.partialorder %v794_v2, 8.507059e+37  ;;  %v3046_v23 = vld [vmem:[#allocation11 + $0x1b8] sm:$0xff]  ;;  %3773 = vst [vmem:[#allocation43_spill] sm:$0xff] %v3052_v28 }
 0x1b1   :  { %v2281_v14 = vpop.eup %2280  ;;  %v3058_v2 = vld [vmem:[#allocation11 + $0x198] sm:$0xff] }
 0x1b2   :  { %v769_v10 = vadd.f32 1.0, %v2281_v14  ;;  %v3016_v14 = vld [vmem:[#allocation11 + $0x1e8] sm:$0xff]  ;;  %3775 = vst [vmem:[#allocation45_spill] sm:$0xff] %v3058_v2 }
 0x1b3   :  { %v2283_v0 = vpop.eup %2282  ;;  %1138 = vmatpush.msra.mxu1 %v3016_v14 }
 0x1b4   :  { %v2285_v3 = vpop.eup %2284  ;;  %v771_v15 = vmul.f32 %v2283_v0, %v767_v52  ;;  %2286 = vrcp.f32 %v769_v10  ;;  %vm776_vm12 = vweird.f32 %v2283_v0  ;;  %v811_v58 = vand.u32 2147483648, %v769_v10 }
 0x1b5   :  { %v786_v16 = vmul.f32 %v2285_v3, %v768_v13  ;;  %2288 = vtanh.f32 %v757_v11  ;;  %vm791_vm13 = vweird.f32 %v2285_v3  ;;  %vm777_vm0 = vmor %vm775_vm14, %vm776_vm12  ;;  %vm805_vm5 = vweird.f32 %v769_v10  ;;  %v3026_v11 = vld [vmem:[#allocation11 + $0x1c0] sm:$0xff] }
 0x1b6   :  { %v772_v19 = vsub.f32 1.0, %v771_v15  ;;  %vm792_vm1 = vmor %vm790_vm15, %vm791_vm13  ;;  %v809_v59 = vand.u32 2147483647, %v769_v10  ;;  %v812_v63 = vor.u32 1.1754944e-38, %v811_v58  ;;  %3770 = vst [vmem:[#allocation40_spill] sm:$0xff] %v3026_v11  ;;  %v3030_v15 = vld [vmem:[#allocation11 + $0x1d0] sm:$0xff] }
 0x1b7   :  { %v787_v17 = vsub.f32 1.0, %v786_v16  ;;  %3771 = vst [vmem:[#allocation41_spill] sm:$0xff] %v3030_v15  ;;  %v3034_v16 = vld [vmem:[#allocation11 + $0x1d8] sm:$0xff]  ;;  %v3110_v58 = vld [vmem:[#allocation11 + $0xe0] sm:$0xff] }
 0x1b8   :  { %v773_v24 = vmul.f32 %v2283_v0, %v772_v19  ;;  %vm810_vm7 = vcmp.eq.f32.partialorder %v809_v59, 8.507059e+37  ;;  %3772 = vst [vmem:[#allocation42_spill] sm:$0xff] %v3034_v16  ;;  %v3038_v19 = vld [vmem:[#allocation11 + $0x1a0] sm:$0xff]  ;;  %v3112_v59 = vld [vmem:[#allocation11 + $0xe8] sm:$0xff] }
 0x1b9   :  { %v788_v1 = vmul.f32 %v2285_v3, %v787_v17  ;;  %v3040_v17 = vld [vmem:[#allocation11 + $0x1a8] sm:$0xff] }
 0x1ba   :  { %v2287_v4 = vpop.eup %2286  ;;  %v774_v29 = vadd.f32 %v2283_v0, %v773_v24  ;;  %v3050_v24 = vld [vmem:[#allocation11 + $0x180] sm:$0xff] }
 0x1bb   :  { %v801_v18 = vmul.f32 %v2287_v4, %v769_v10  ;;  %v789_v33 = vadd.f32 %v2285_v3, %v788_v1  ;;  %v2289_v41 = vpop.eup %2288  ;;  %vm806_vm4 = vweird.f32 %v2287_v4  ;;  %v3022_v10 = vld [vmem:[#allocation11 + $0x1f8] sm:$0xff]  ;;  %v3054_v1 = vld [vmem:[#allocation11 + $0x190] sm:$0xff] }
 0x1bc   :  { %v778_v37 = vsel %vm777_vm0, %v2283_v0, %v774_v29  ;;  %vm807_vm6 = vmor %vm805_vm5, %vm806_vm4  ;;  %v3018_v0 = vld [vmem:[#allocation11 + $0x1f0] sm:$0xff]  ;;  %3769 = vst [vmem:[#allocation39_spill] sm:$0xff] %v3022_v10  ;;  %1178 = vmatpush.msra.mxu3 %v3022_v10  ;;  %v3064_v29 = vld [vmem:[#allocation11 + $0x168] sm:$0xff] }
 0x1bd   :  { %v802_v45 = vsub.f32 1.0, %v801_v18  ;;  %v783_v46 = vsel %vm780_vm2, %v782_v32, %v778_v37  ;;  %v793_v6 = vsel %vm792_vm1, %v2285_v3, %v789_v33  ;;  %1158 = vmatpush.msra.mxu2 %v3018_v0  ;;  %v3028_v3 = vld [vmem:[#allocation11 + $0x1c8] sm:$0xff]  ;;  %3774 = vst [vmem:[#allocation44_spill] sm:$0xff] %v3054_v1  ;;  %v3066_v18 = vld [vmem:[#allocation11 + $0x170] sm:$0xff]  ;;  %v3070_v32 = vld [vmem:[#allocation11 + $0x178] sm:$0xff] }
 0x1be   :  { %v798_v12 = vsel %vm795_vm3, %v797_v36, %v793_v6  ;;  %v818_v49 = vmul.f32 %v2289_v41, %v783_v46  ;;  %1139 = vmatpush.msra.mxu1 %v3028_v3  ;;  %1179 = vmatpush.msra.mxu3 %v3034_v16  ;;  %v3074_v33 = vld [vmem:[#allocation11 + $0x140] sm:$0xff]  ;;  %v3076_v36 = vld [vmem:[#allocation11 + $0x148] sm:$0xff]  ;;  %v3078_v37 = vld [vmem:[#allocation11 + $0x150] sm:$0xff] }
 0x1bf   :  { %v817_v50 = vmul.f32 %v798_v12, %v3003_v5  ;;  %v803_v54 = vmul.f32 %v2287_v4, %v802_v45  ;;  %v3014_v5 = vld [vmem:[#allocation11 + $0x1e0] sm:$0xff]  ;;  %1159 = vmatpush.msra.mxu2 %v3030_v15  ;;  %3777 = vst [vmem:[#allocation47_spill] sm:$0xff] %v3076_v36  ;;  %v3082_v41 = vld [vmem:[#allocation11 + $0x158] sm:$0xff]  ;;  %v3088_v46 = vld [vmem:[#allocation11 + $0x128] sm:$0xff] }
 0x1c0   :  { %1118 = vmatpush.msra.mxu0 %v3014_v5  ;;  %1140 = vmatpush.msra.mxu1 %v3040_v17  ;;  %v3086_v45 = vld [vmem:[#allocation11 + $0x120] sm:$0xff]  ;;  %3779 = vst [vmem:[#allocation49_spill] sm:$0xff] %v3088_v46  ;;  %v3090_v6 = vld [vmem:[#allocation11 + $0x130] sm:$0xff]  ;;  %v3094_v12 = vld [vmem:[#allocation11 + $0x138] sm:$0xff] }
 0x1c1   :  { %v3011_v55 = vadd.f32 %v818_v49, %v817_v50  ;;  %v804_v42 = vadd.f32 %v2287_v4, %v803_v54  ;;  %1160 = vmatpush.msra.mxu2 %v3042_v20  ;;  %1180 = vmatpush.msra.mxu3 %v3046_v23  ;;  %3778 = vst [vmem:[#allocation48_spill] sm:$0xff] %v3086_v45  ;;  %v3098_v49 = vld [vmem:[#allocation11 + $0x100] sm:$0xff]  ;;  %v3100_v50 = vld [vmem:[#allocation11 + $0x108] sm:$0xff]  ;;  %v3102_v54 = vld [vmem:[#allocation11 + $0x110] sm:$0xff] }
 0x1c2   :  { %1119 = vmatpush.msra.mxu0 %v3026_v11  ;;  %1141 = vmatpush.msra.mxu1 %v3052_v28  ;;  %3780 = vst [vmem:[#allocation50_spill] sm:$0xff] %v3090_v6 }
 0x1c3   :  { %2290 = vtanh.f32 %v3011_v55  ;;  %v808_v62 = vsel %vm807_vm6, %v2287_v4, %v804_v42  ;;  %1161 = vmatpush.msra.mxu2 %v3054_v1  ;;  %1181 = vmatpush.msra.mxu3 %v3058_v2  ;;  %v3062_v4 = vld [vmem:[#allocation11 + $0x160] sm:$0xff]  ;;  %3781 = vst [vmem:[#allocation51_spill] sm:$0xff] %v3094_v12  ;;  %v3106_v42 = vld [vmem:[#allocation11 + $0x118] sm:$0xff] }
 0x1c4   :  { %v813_v13 = vsel %vm810_vm7, %v812_v63, %v808_v62  ;;  %1120 = vmatpush.msra.mxu0 %v3038_v19  ;;  %3776 = vst [vmem:[#allocation46_spill] sm:$0xff] %v3062_v4  ;;  %1142 = vmatpush.msra.mxu1 %v3064_v29  ;;  %v3114_v62 = vld [vmem:[#allocation11 + $0xf0] sm:$0xff]  ;;  %v3118_v63 = vld [vmem:[#allocation11 + $0xf8] sm:$0xff] }
 0x1c5   :  { %1162 = vmatpush.msra.mxu2 %v3066_v18  ;;  %1182 = vmatpush.msra.mxu3 %v3070_v32 }
 0x1c6   :  { %1121 = vmatpush.msra.mxu0 %v3050_v24  ;;  %1143 = vmatpush.msra.mxu1 %v3076_v36 }
 0x1c7   :  { %1163 = vmatpush.msra.mxu2 %v3078_v37  ;;  %1183 = vmatpush.msra.mxu3 %v3082_v41 }
 0x1c8   :  { %1122 = vmatpush.msra.mxu0 %v3062_v4  ;;  %1144 = vmatpush.msra.mxu1 %v3088_v46 }
 0x1c9   :  { %v2291_v52 = vpop.eup %2290  ;;  %1164 = vmatpush.msra.mxu2 %v3090_v6  ;;  %1184 = vmatpush.msra.mxu3 %v3094_v12 }
 0x1ca   :  { %v822_v7 = vmul.f32 %v2291_v52, %v813_v13  ;;  %1123 = vmatpush.msra.mxu0 %v3074_v33  ;;  %1145 = vmatpush.msra.mxu1 %v3100_v50  ;;  %v3122_v52 = vld [vmem:[#allocation11 + $0xc0] sm:$0xff]  ;;  %v3124_v13 = vld [vmem:[#allocation11 + $0xc8] sm:$0xff] }
 0x1cb   :  { %1165 = vmatpush.msra.mxu2 %v3102_v54  ;;  %1185 = vmatpush.msra.mxu3 %v3106_v42 }
 0x1cc   :  { %912 = vmatmul.f32.vlgmr.msrb.gmra.mxu0 %v822_v7  ;;  %932 = vmatmul.f32.vlgmr.msrb.gmra.mxu1 %v822_v7 }
 0x1cd   :  { %952 = vmatmul.f32.vlgmr.msrb.gmra.mxu2 %v822_v7  ;;  %972 = vmatmul.f32.vlgmr.msrb.gmra.mxu3 %v822_v7  ;;  %v3126_v7 = vld [vmem:[#allocation11 + $0xd0] sm:$0xff] }
 0x1ce   :  { %1124 = vmatpush.msra.mxu0 %v3086_v45  ;;  %1146 = vmatpush.msra.mxu1 %v3112_v59 }
 0x1cf   :  { %1166 = vmatpush.msra.mxu2 %v3114_v62  ;;  %1186 = vmatpush.msra.mxu3 %v3118_v63 }
 0x1d0   :  { %1125 = vmatpush.msra.mxu0 %v3098_v49  ;;  %1147 = vmatpush.msra.mxu1 %v3124_v13 }
 0x1d1   :  { %1167 = vmatpush.msra.mxu2 %v3126_v7  ;;  %1187 = vmatpush.msra.mxu3 %v3130_v39 }
 0x1d2   :  { %1126 = vmatpush.msra.mxu0 %v3110_v58  ;;  %1148 = vmatpush.msra.mxu1 %v3138_v57 }
 0x1d3   :  { %1168 = vmatpush.msra.mxu2 %v3140_v56  ;;  %1188 = vmatpush.msra.mxu3 %v3144_v53 }
 0x1d4   :  { %1127 = vmatpush.msra.mxu0 %v3122_v52 }
 0x1d5   :  { %1189 = vmatpush.msra.mxu3 %v3156_v48 }
 0x1d6   :  { %1128 = vmatpush.msra.mxu0 %v3136_v60 }
 0x1d7   :  { %1190 = vmatpush.msra.mxu3 %v3166_v44  ;;  %v3193_v44 = vld [vmem:[#allocation11] sm:$0xff] }
 0x1d9   :  { %1191 = vmatpush.msra.mxu3 %v3178_v35 }
 0x249   :  { %v913_v9 = vpop.f32.mrf.mxu0  ;;  %v933_v8 = vpop.f32.mrf.mxu1 }
 0x24a   :  { %v976_v26 = vadd.f32 %v913_v9, %v2939_v21  ;;  %v977_v61 = vadd.f32 %v933_v8, %v2941_v22  ;;  %v3148_v22 = vld [vmem:[#allocation11 + $0x80] sm:$0xff]  ;;  %v3150_v8 = vld [vmem:[#allocation11 + $0x88] sm:$0xff]  ;;  %v3154_v9 = vld [vmem:[#allocation11 + $0x90] sm:$0xff] }
 0x24b   :  { %1129 = vmatpush.msra.mxu0 %v3148_v22  ;;  %1149 = vmatpush.msra.mxu1 %v3150_v8 }
 0x24c   :  { %v2230_v51 = vmul.f32 -1.442695, %v976_v26  ;;  %v2231_v21 = vmul.f32 -1.442695, %v977_v61  ;;  %1169 = vmatpush.msra.mxu2 %v3154_v9  ;;  %v3162_v61 = vld [vmem:[#allocation11 + $0x68] sm:$0xff]  ;;  %v3164_v26 = vld [vmem:[#allocation11 + $0x70] sm:$0xff] }
 0x24d   :  { %3783 = vst [vmem:[#allocation53_spill] sm:$0xff] %v3162_v61  ;;  %1130 = vmatpush.msra.mxu0 %v3158_v47  ;;  %1150 = vmatpush.msra.mxu1 %v3162_v61  ;;  %v3189_v61 = vld [vmem:[#allocation11 + $0x38] sm:$0xff] }
 0x24e   :  { %2292 = vpow2.f32 %v2230_v51  ;;  %3784 = vst [vmem:[#allocation54_spill] sm:$0xff] %v3164_v26  ;;  %v3174_v51 = vld [vmem:[#allocation11 + $0x50] sm:$0xff]  ;;  %1170 = vmatpush.msra.mxu2 %v3164_v26  ;;  %v3195_v26 = vld [vmem:[#allocation11 + $0x8] sm:$0xff]  ;;  %1192 = vmatpush.msra.mxu3 %v3189_v61 }
 0x24f   :  { %2294 = vpow2.f32 %v2231_v21  ;;  %3787 = vst [vmem:[#allocation57_spill] sm:$0xff] %v3174_v51  ;;  %v3182_v21 = vld [vmem:[#allocation11 + $0x28] sm:$0xff]  ;;  %1131 = vmatpush.msra.mxu0 %v3170_v43  ;;  %1151 = vmatpush.msra.mxu1 %v3172_v40 }
 0x250   :  { %v953_v38 = vpop.f32.mrf.mxu2  ;;  %1171 = vmatpush.msra.mxu2 %v3174_v51 }
 0x251   :  { %v978_v31 = vadd.f32 %v953_v38, %v2944_v25  ;;  %1132 = vmatpush.msra.mxu0 %v3180_v34  ;;  %1152 = vmatpush.msra.mxu1 %v3182_v21  ;;  %v3199_v25 = vld [vmem:[#allocation11 + $0x10] sm:$0xff]  ;;  %v3201_v38 = vld [vmem:[#allocation11 + $0x18] sm:$0xff] }
 0x252   :  { %1172 = vmatpush.msra.mxu2 %v3187_v30  ;;  %1193 = vmatpush.msra.mxu3 %v3201_v38 }
 0x253   :  { %v2232_v47 = vmul.f32 -1.442695, %v978_v31  ;;  %1133 = vmatpush.msra.mxu0 %v3193_v44  ;;  %1153 = vmatpush.msra.mxu1 %v3195_v26 }
 0x254   :  { %v2293_v40 = vpop.eup %2292  ;;  %1173 = vmatpush.msra.mxu2 %v3199_v25  ;;  %1400 = vmatpush.msrb.mxu3 %v3022_v10 }
 0x255   :  { %v2295_v51 = vpop.eup %2294  ;;  %v3205_v35 = vadd.f32 1.0, %v2293_v40  ;;  %2296 = vpow2.f32 %v2232_v47  ;;  %1340 = vmatpush.msrb.mxu0 %v3014_v5  ;;  %1360 = vmatpush.msrb.mxu1 %v3016_v14  ;;  %v973_v40 = vpop.f32.mrf.mxu3 }
 0x256   :  { %v3209_v31 = vadd.f32 1.0, %v2295_v51  ;;  %1380 = vmatpush.msrb.mxu2 %v3018_v0  ;;  %1401 = vmatpush.msrb.mxu3 %v3034_v16 }
 0x257   :  { %2298 = vrcp.f32 %v3205_v35  ;;  %1341 = vmatpush.msrb.mxu0 %v3026_v11  ;;  %1361 = vmatpush.msrb.mxu1 %v3028_v3  ;;  %v979_v11 = vadd.f32 %v973_v40, %v2947_v27  ;;  %vm997_vm10 = vweird.f32 %v3205_v35 }
 0x258   :  { %2300 = vrcp.f32 %v3209_v31  ;;  %1381 = vmatpush.msrb.mxu2 %v3030_v15  ;;  %1402 = vmatpush.msrb.mxu3 %v3046_v23  ;;  %vm1012_vm11 = vweird.f32 %v3209_v31 }
 0x259   :  { %1342 = vmatpush.msrb.mxu0 %v3038_v19  ;;  %1362 = vmatpush.msrb.mxu1 %v3040_v17 }
 0x25a   :  { %1382 = vmatpush.msrb.mxu2 %v3042_v20  ;;  %1403 = vmatpush.msrb.mxu3 %v3058_v2  ;;  %v1018_v2 = vand.u32 2147483648, %v3209_v31 }
 0x25b   :  { %v2297_v47 = vpop.eup %2296  ;;  %1343 = vmatpush.msrb.mxu0 %v3050_v24  ;;  %1363 = vmatpush.msrb.mxu1 %v3052_v28  ;;  %v1003_v28 = vand.u32 2147483648, %v3205_v35 }
 0x25c   :  { %v3225_v51 = vadd.f32 1.0, %v2297_v47  ;;  %1383 = vmatpush.msrb.mxu2 %v3054_v1  ;;  %1404 = vmatpush.msrb.mxu3 %v3070_v32 }
 0x25d   :  { %v2299_v10 = vpop.eup %2298  ;;  %1344 = vmatpush.msrb.mxu0 %v3062_v4  ;;  %1364 = vmatpush.msrb.mxu1 %v3064_v29  ;;  %v1001_v4 = vand.u32 2147483647, %v3205_v35 }
 0x25e   :  { %v2301_v15 = vpop.eup %2300  ;;  %v993_v16 = vmul.f32 %v2299_v10, %v3205_v35  ;;  %2302 = vrcp.f32 %v3225_v51  ;;  %1384 = vmatpush.msrb.mxu2 %v3066_v18  ;;  %vm998_vm8 = vweird.f32 %v2299_v10  ;;  %1405 = vmatpush.msrb.mxu3 %v3082_v41  ;;  %v1019_v35 = vor.u32 1.1754944e-38, %v1018_v2 }
 0x25f   :  { %v1008_v47 = vmul.f32 %v2301_v15, %v3209_v31  ;;  %2304 = vtanh.f32 %v979_v11  ;;  %1345 = vmatpush.msrb.mxu0 %v3074_v33  ;;  %1365 = vmatpush.msrb.mxu1 %v3076_v36  ;;  %vm1013_vm9 = vweird.f32 %v2301_v15  ;;  %vm999_vm12 = vmor %vm997_vm10, %vm998_vm8  ;;  %vm1002_vm14 = vcmp.eq.f32.partialorder %v1001_v4, 8.507059e+37 }
 0x260   :  { %v994_v27 = vsub.f32 1.0, %v993_v16  ;;  %1385 = vmatpush.msrb.mxu2 %v3078_v37  ;;  %1406 = vmatpush.msrb.mxu3 %v3094_v12  ;;  %vm1014_vm13 = vmor %vm1012_vm11, %vm1013_vm9  ;;  %vm1027_vm1 = vweird.f32 %v3225_v51 }
 0x261   :  { %v1009_v40 = vsub.f32 1.0, %v1008_v47  ;;  %v1016_v47 = vand.u32 2147483647, %v3209_v31  ;;  %1346 = vmatpush.msrb.mxu0 %v3086_v45  ;;  %1366 = vmatpush.msrb.mxu1 %v3088_v46 }
 0x262   :  { %v995_v1 = vmul.f32 %v2299_v10, %v994_v27  ;;  %1386 = vmatpush.msrb.mxu2 %v3090_v6  ;;  %1407 = vmatpush.msrb.mxu3 %v3106_v42 }
 0x263   :  { %v1010_v16 = vmul.f32 %v2301_v15, %v1009_v40  ;;  %v1004_v40 = vor.u32 1.1754944e-38, %v1003_v28  ;;  %1347 = vmatpush.msrb.mxu0 %v3098_v49  ;;  %1367 = vmatpush.msrb.mxu1 %v3100_v50  ;;  %vm1017_vm15 = vcmp.eq.f32.partialorder %v1016_v47, 8.507059e+37  ;;  %v3792_v47 = vld [vmem:[#allocation55_spill] sm:$0xff] }
 0x264   :  { %v3251_v11 = vpop.eup %2302  ;;  %v996_v36 = vadd.f32 %v2299_v10, %v995_v1  ;;  %1387 = vmatpush.msrb.mxu2 %v3102_v54  ;;  %1408 = vmatpush.msrb.mxu3 %v3118_v63 }
 0x265   :  { %v1023_v27 = vmul.f32 %v3251_v11, %v3225_v51  ;;  %v1011_v45 = vadd.f32 %v2301_v15, %v1010_v16  ;;  %v2305_v31 = vpop.eup %2304  ;;  %1348 = vmatpush.msrb.mxu0 %v3110_v58  ;;  %1368 = vmatpush.msrb.mxu1 %v3112_v59  ;;  %vm1028_vm0 = vweird.f32 %v3251_v11 }
 0x266   :  { %v1000_v1 = vsel %vm999_vm12, %v2299_v10, %v996_v36  ;;  %1388 = vmatpush.msrb.mxu2 %v3114_v62  ;;  %1409 = vmatpush.msrb.mxu3 %v3130_v39  ;;  %v1031_v36 = vand.u32 2147483647, %v3225_v51  ;;  %vm1029_vm2 = vmor %vm1027_vm1, %vm1028_vm0 }
 0x267   :  { %v1024_v12 = vsub.f32 1.0, %v1023_v27  ;;  %v1005_v6 = vsel %vm1002_vm14, %v1004_v40, %v1000_v1  ;;  %v1015_v46 = vsel %vm1014_vm13, %v2301_v15, %v1011_v45  ;;  %1349 = vmatpush.msrb.mxu0 %v3122_v52  ;;  %1369 = vmatpush.msrb.mxu1 %v3124_v13  ;;  %v3789_v45 = vld [vmem:[#allocation52_spill] sm:$0xff] }
 0x268   :  { %v1020_v28 = vsel %vm1017_vm15, %v1019_v35, %v1015_v46  ;;  %v1040_v16 = vmul.f32 %v2305_v31, %v1005_v6  ;;  %1389 = vmatpush.msrb.mxu2 %v3126_v7  ;;  %1410 = vmatpush.msrb.mxu3 %v3144_v53  ;;  %v3790_v46 = vld [vmem:[#allocation53_spill] sm:$0xff]  ;;  %v3793_v40 = vld [vmem:[#allocation56_spill] sm:$0xff]  ;;  %vm1032_vm3 = vcmp.eq.f32.partialorder %v1031_v36, 8.507059e+37  ;;  %v3795_v35 = vld [vmem:[#allocation58_spill] sm:$0xff] }
 0x269   :  { %v1039_v10 = vmul.f32 %v1020_v28, %v3011_v55  ;;  %v1025_v2 = vmul.f32 %v3251_v11, %v1024_v12  ;;  %1350 = vmatpush.msrb.mxu0 %v3136_v60  ;;  %1370 = vmatpush.msrb.mxu1 %v3138_v57  ;;  %v1033_v55 = vand.u32 2147483648, %v3225_v51  ;;  %v3791_v12 = vld [vmem:[#allocation54_spill] sm:$0xff]  ;;  %v3794_v51 = vld [vmem:[#allocation57_spill] sm:$0xff]  ;;  %v3796_v28 = vld [vmem:[#allocation39_spill] sm:$0xff] }
 0x26a   :  { %1390 = vmatpush.msrb.mxu2 %v3140_v56  ;;  %1411 = vmatpush.msrb.mxu3 %v3156_v48 }
 0x26b   :  { %v3275_v15 = vadd.f32 %v1040_v16, %v1039_v10  ;;  %v1026_v4 = vadd.f32 %v3251_v11, %v1025_v2  ;;  %1351 = vmatpush.msrb.mxu0 %v3148_v22  ;;  %1371 = vmatpush.msrb.mxu1 %v3150_v8  ;;  %v1034_v27 = vor.u32 1.1754944e-38, %v1033_v55  ;;  %v3797_v16 = vld [vmem:[#allocation40_spill] sm:$0xff]  ;;  %v3798_v10 = vld [vmem:[#allocation41_spill] sm:$0xff]  ;;  %v3799_v2 = vld [vmem:[#allocation42_spill] sm:$0xff] }
 0x26c   :  { %1391 = vmatpush.msrb.mxu2 %v3154_v9  ;;  %1412 = vmatpush.msrb.mxu3 %v3792_v47 }
 0x26d   :  { %2306 = vtanh.f32 %v3275_v15  ;;  %1352 = vmatpush.msrb.mxu0 %v3789_v45  ;;  %1372 = vmatpush.msrb.mxu1 %v3790_v46  ;;  %v1030_v6 = vsel %vm1029_vm2, %v3251_v11, %v1026_v4 }
 0x26e   :  { %1392 = vmatpush.msrb.mxu2 %v3791_v12  ;;  %1413 = vmatpush.msrb.mxu3 %v3795_v35  ;;  %v1035_v31 = vsel %vm1032_vm3, %v1034_v27, %v1030_v6 }
 0x26f   :  { %1353 = vmatpush.msrb.mxu0 %v3170_v43  ;;  %1373 = vmatpush.msrb.mxu1 %v3793_v40 }
 0x270   :  { %1393 = vmatpush.msrb.mxu2 %v3794_v51  ;;  %1414 = vmatpush.msrb.mxu3 %v3189_v61 }
 0x271   :  { %1354 = vmatpush.msrb.mxu0 %v3180_v34  ;;  %1374 = vmatpush.msrb.mxu1 %v3182_v21 }
 0x272   :  { %1394 = vmatpush.msrb.mxu2 %v3187_v30  ;;  %1415 = vmatpush.msrb.mxu3 %v3201_v38 }
 0x273   :  { %v2307_v1 = vpop.eup %2306  ;;  %1355 = vmatpush.msrb.mxu0 %v3193_v44  ;;  %1375 = vmatpush.msrb.mxu1 %v3195_v26 }
 0x274   :  { %v1044_v11 = vmul.f32 %v2307_v1, %v1035_v31  ;;  %1395 = vmatpush.msrb.mxu2 %v3199_v25 }
 0x276   :  { %1134 = vmatmul.f32.vlgmr.msra.gmra.mxu0 %v1044_v11  ;;  %1154 = vmatmul.f32.vlgmr.msra.gmra.mxu1 %v1044_v11 }
 0x277   :  { %1174 = vmatmul.f32.vlgmr.msra.gmra.mxu2 %v1044_v11  ;;  %1194 = vmatmul.f32.vlgmr.msra.gmra.mxu3 %v1044_v11 }
 0x278   :  { %1562 = vmatpush.msra.mxu0 %v3014_v5  ;;  %1582 = vmatpush.msra.mxu1 %v3016_v14  ;;  %v3800_v5 = vld [vmem:[#allocation43_spill] sm:$0xff]  ;;  %v3801_v14 = vld [vmem:[#allocation44_spill] sm:$0xff] }
 0x279   :  { %1602 = vmatpush.msra.mxu2 %v3018_v0  ;;  %1622 = vmatpush.msra.mxu3 %v3796_v28  ;;  %v3802_v0 = vld [vmem:[#allocation45_spill] sm:$0xff] }
 0x27a   :  { %1563 = vmatpush.msra.mxu0 %v3797_v16  ;;  %1583 = vmatpush.msra.mxu1 %v3028_v3  ;;  %v3803_v3 = vld [vmem:[#allocation46_spill] sm:$0xff] }
 0x27b   :  { %1603 = vmatpush.msra.mxu2 %v3798_v10  ;;  %1623 = vmatpush.msra.mxu3 %v3799_v2 }
 0x27c   :  { %1564 = vmatpush.msra.mxu0 %v3038_v19  ;;  %1584 = vmatpush.msra.mxu1 %v3040_v17  ;;  %v3804_v19 = vld [vmem:[#allocation47_spill] sm:$0xff]  ;;  %v3805_v17 = vld [vmem:[#allocation48_spill] sm:$0xff] }
 0x27d   :  { %1604 = vmatpush.msra.mxu2 %v3042_v20  ;;  %1624 = vmatpush.msra.mxu3 %v3046_v23  ;;  %v3806_v20 = vld [vmem:[#allocation49_spill] sm:$0xff]  ;;  %v3807_v23 = vld [vmem:[#allocation50_spill] sm:$0xff] }
 0x27e   :  { %1565 = vmatpush.msra.mxu0 %v3050_v24  ;;  %1585 = vmatpush.msra.mxu1 %v3800_v5  ;;  %v3808_v24 = vld [vmem:[#allocation51_spill] sm:$0xff] }
 0x27f   :  { %1605 = vmatpush.msra.mxu2 %v3801_v14  ;;  %1625 = vmatpush.msra.mxu3 %v3802_v0 }
 0x280   :  { %1566 = vmatpush.msra.mxu0 %v3803_v3  ;;  %1586 = vmatpush.msra.mxu1 %v3064_v29  ;;  %v3811_v29 = vld [vmem:[#allocation21_spill] sm:$0xff] }
 0x281   :  { %1606 = vmatpush.msra.mxu2 %v3066_v18  ;;  %1626 = vmatpush.msra.mxu3 %v3070_v32 }
 0x282   :  { %1567 = vmatpush.msra.mxu0 %v3074_v33  ;;  %1587 = vmatpush.msra.mxu1 %v3804_v19  ;;  %v3813_v19 = vld [vmem:[#allocation23_spill] sm:$0xff] }
 0x283   :  { %1607 = vmatpush.msra.mxu2 %v3078_v37  ;;  %1627 = vmatpush.msra.mxu3 %v3082_v41 }
 0x284   :  { %1568 = vmatpush.msra.mxu0 %v3805_v17  ;;  %1588 = vmatpush.msra.mxu1 %v3806_v20  ;;  %v3814_v20 = vld [vmem:[#allocation24_spill] sm:$0xff] }
 0x285   :  { %1608 = vmatpush.msra.mxu2 %v3807_v23  ;;  %1628 = vmatpush.msra.mxu3 %v3808_v24 }
 0x286   :  { %1569 = vmatpush.msra.mxu0 %v3098_v49  ;;  %1589 = vmatpush.msra.mxu1 %v3100_v50 }
 0x287   :  { %1609 = vmatpush.msra.mxu2 %v3102_v54  ;;  %1629 = vmatpush.msra.mxu3 %v3106_v42 }
 0x288   :  { %1570 = vmatpush.msra.mxu0 %v3110_v58  ;;  %1590 = vmatpush.msra.mxu1 %v3112_v59  ;;  %v3812_v58 = vld [vmem:[#allocation22_spill] sm:$0xff] }
 0x289   :  { %1610 = vmatpush.msra.mxu2 %v3114_v62  ;;  %1630 = vmatpush.msra.mxu3 %v3118_v63 }
 0x28a   :  { %1571 = vmatpush.msra.mxu0 %v3122_v52  ;;  %1591 = vmatpush.msra.mxu1 %v3124_v13 }
 0x28b   :  { %1611 = vmatpush.msra.mxu2 %v3126_v7  ;;  %1631 = vmatpush.msra.mxu3 %v3130_v39 }
 0x28c   :  { %1572 = vmatpush.msra.mxu0 %v3136_v60  ;;  %1592 = vmatpush.msra.mxu1 %v3138_v57  ;;  %v3810_v57 = vld [vmem:[#allocation20_spill] sm:$0xff] }
 0x28d   :  { %1612 = vmatpush.msra.mxu2 %v3140_v56  ;;  %1632 = vmatpush.msra.mxu3 %v3144_v53  ;;  %v3809_v53 = vld [vmem:[#allocation19_spill] sm:$0xff] }
 0x28e   :  { %1573 = vmatpush.msra.mxu0 %v3148_v22  ;;  %1593 = vmatpush.msra.mxu1 %v3150_v8 }
 0x28f   :  { %1613 = vmatpush.msra.mxu2 %v3154_v9  ;;  %1633 = vmatpush.msra.mxu3 %v3156_v48 }
 0x290   :  { %1574 = vmatpush.msra.mxu0 %v3789_v45  ;;  %1594 = vmatpush.msra.mxu1 %v3790_v46 }
 0x291   :  { %1614 = vmatpush.msra.mxu2 %v3791_v12  ;;  %1634 = vmatpush.msra.mxu3 %v3792_v47 }
 0x292   :  { %1575 = vmatpush.msra.mxu0 %v3170_v43  ;;  %1595 = vmatpush.msra.mxu1 %v3793_v40 }
 0x293   :  { %1615 = vmatpush.msra.mxu2 %v3794_v51  ;;  %1635 = vmatpush.msra.mxu3 %v3795_v35 }
 0x294   :  { %1576 = vmatpush.msra.mxu0 %v3180_v34  ;;  %1596 = vmatpush.msra.mxu1 %v3182_v21 }
 0x295   :  { %1616 = vmatpush.msra.mxu2 %v3187_v30  ;;  %1636 = vmatpush.msra.mxu3 %v3189_v61 }
 0x296   :  { %1577 = vmatpush.msra.mxu0 %v3193_v44  ;;  %1597 = vmatpush.msra.mxu1 %v3195_v26 }
 0x297   :  { %1617 = vmatpush.msra.mxu2 %v3199_v25  ;;  %1637 = vmatpush.msra.mxu3 %v3201_v38 }
 0x2f3   :  { %v1135_v43 = vpop.f32.mrf.mxu0  ;;  %v1155_v48 = vpop.f32.mrf.mxu1 }
 0x2f4   :  { %v1198_v56 = vadd.f32 %v1135_v43, %v3809_v53  ;;  %v1199_v34 = vadd.f32 %v1155_v48, %v3810_v57  ;;  %v3815_v53 = vld [vmem:[#allocation25_spill] sm:$0xff] }
 0x2f6   :  { %v2233_v60 = vmul.f32 -1.442695, %v1198_v56  ;;  %v2234_v39 = vmul.f32 -1.442695, %v1199_v34 }
 0x2f8   :  { %2308 = vpow2.f32 %v2233_v60 }
 0x2f9   :  { %2310 = vpow2.f32 %v2234_v39 }
 0x2fa   :  { %v1175_v30 = vpop.f32.mrf.mxu2  ;;  %v1195_v49 = vpop.f32.mrf.mxu3 }
 0x2fb   :  { %v1200_v18 = vadd.f32 %v1175_v30, %v3811_v29  ;;  %v1201_v59 = vadd.f32 %v1195_v49, %v3812_v58 }
 0x2fd   :  { %v2235_v44 = vmul.f32 -1.442695, %v1200_v18 }
 0x2fe   :  { %v2309_v32 = vpop.eup %2308 }
 0x2ff   :  { %v2311_v33 = vpop.eup %2310  ;;  %v1211_v37 = vadd.f32 1.0, %v2309_v32  ;;  %2312 = vpow2.f32 %v2235_v44 }
 0x300   :  { %v1212_v41 = vadd.f32 1.0, %v2311_v33  ;;  %v3816_v33 = vld [vmem:[#allocation26_spill] sm:$0xff] }
 0x301   :  { %2314 = vrcp.f32 %v1211_v37  ;;  %v1225_v22 = vand.u32 2147483648, %v1211_v37  ;;  %v1223_v61 = vand.u32 2147483647, %v1211_v37  ;;  %vm1219_vm6 = vweird.f32 %v1211_v37 }
 0x302   :  { %2316 = vrcp.f32 %v1212_v41  ;;  %v1240_v8 = vand.u32 2147483648, %v1212_v41  ;;  %v1238_v21 = vand.u32 2147483647, %v1212_v41  ;;  %vm1234_vm7 = vweird.f32 %v1212_v41 }
 0x303   :  { %v1226_v55 = vor.u32 1.1754944e-38, %v1225_v22  ;;  %vm1224_vm10 = vcmp.eq.f32.partialorder %v1223_v61, 8.507059e+37 }
 0x304   :  { %v1241_v45 = vor.u32 1.1754944e-38, %v1240_v8  ;;  %vm1239_vm11 = vcmp.eq.f32.partialorder %v1238_v21, 8.507059e+37 }
 0x305   :  { %v2313_v50 = vpop.eup %2312 }
 0x306   :  { %v1213_v54 = vadd.f32 1.0, %v2313_v50 }
 0x307   :  { %v2315_v42 = vpop.eup %2314 }
 0x308   :  { %v2317_v62 = vpop.eup %2316  ;;  %v1215_v63 = vmul.f32 %v2315_v42, %v1211_v37  ;;  %2318 = vrcp.f32 %v1213_v54  ;;  %vm1220_vm4 = vweird.f32 %v2315_v42  ;;  %v1255_v28 = vand.u32 2147483648, %v1213_v54 }
 0x309   :  { %v1230_v52 = vmul.f32 %v2317_v62, %v1212_v41  ;;  %2320 = vtanh.f32 %v1201_v59  ;;  %vm1235_vm5 = vweird.f32 %v2317_v62  ;;  %vm1221_vm8 = vmor %vm1219_vm6, %vm1220_vm4  ;;  %vm1249_vm13 = vweird.f32 %v1213_v54 }
 0x30a   :  { %v1216_v13 = vsub.f32 1.0, %v1215_v63  ;;  %vm1236_vm9 = vmor %vm1234_vm7, %vm1235_vm5  ;;  %v1253_v16 = vand.u32 2147483647, %v1213_v54  ;;  %v1256_v2 = vor.u32 1.1754944e-38, %v1255_v28 }
 0x30b   :  { %v1231_v7 = vsub.f32 1.0, %v1230_v52 }
 0x30c   :  { %v1217_v9 = vmul.f32 %v2315_v42, %v1216_v13  ;;  %vm1254_vm15 = vcmp.eq.f32.partialorder %v1253_v16, 8.507059e+37  ;;  %v3390_v16 = vld [vmem:[#allocation11 + $0x1e8] sm:$0xff] }
 0x30d   :  { %v1232_v26 = vmul.f32 %v2317_v62, %v1231_v7 }
 0x30e   :  { %v2319_v25 = vpop.eup %2318  ;;  %v1218_v38 = vadd.f32 %v2315_v42, %v1217_v9 }
 0x30f   :  { %v1245_v4 = vmul.f32 %v2319_v25, %v1213_v54  ;;  %v1233_v36 = vadd.f32 %v2317_v62, %v1232_v26  ;;  %v2321_v6 = vpop.eup %2320  ;;  %vm1250_vm12 = vweird.f32 %v2319_v25 }
 0x310   :  { %v1222_v46 = vsel %vm1221_vm8, %v2315_v42, %v1218_v38  ;;  %vm1251_vm14 = vmor %vm1249_vm13, %vm1250_vm12 }
 0x311   :  { %v1246_v12 = vsub.f32 1.0, %v1245_v4  ;;  %v1227_v47 = vsel %vm1224_vm10, %v1226_v55, %v1222_v46  ;;  %v1237_v27 = vsel %vm1236_vm9, %v2317_v62, %v1233_v36 }
 0x312   :  { %v1242_v40 = vsel %vm1239_vm11, %v1241_v45, %v1237_v27  ;;  %v1262_v51 = vmul.f32 %v2321_v6, %v1227_v47 }
 0x313   :  { %v1261_v35 = vmul.f32 %v1242_v40, %v3275_v15  ;;  %v1247_v1 = vmul.f32 %v2319_v25, %v1246_v12 }
 0x315   :  { %v3377_v31 = vadd.f32 %v1262_v51, %v1261_v35  ;;  %v1248_v11 = vadd.f32 %v2319_v25, %v1247_v1 }
 0x317   :  { %2322 = vtanh.f32 %v3377_v31  ;;  %v1252_v10 = vsel %vm1251_vm14, %v2319_v25, %v1248_v11 }
 0x318   :  { %v1257_v14 = vsel %vm1254_vm15, %v1256_v2, %v1252_v10  ;;  %v3392_v10 = vld [vmem:[#allocation11 + $0x1f0] sm:$0xff]  ;;  %v3396_v2 = vld [vmem:[#allocation11 + $0x1f8] sm:$0xff] }
 0x31d   :  { %v2323_v5 = vpop.eup %2322 }
 0x31e   :  { %v1266_v0 = vmul.f32 %v2323_v5, %v1257_v14  ;;  %v3400_v5 = vld [vmem:[#allocation11 + $0x1c0] sm:$0xff]  ;;  %v3402_v14 = vld [vmem:[#allocation11 + $0x1c8] sm:$0xff] }
 0x320   :  { %1356 = vmatmul.f32.vlgmr.msrb.gmra.mxu0 %v1266_v0  ;;  %1376 = vmatmul.f32.vlgmr.msrb.gmra.mxu1 %v1266_v0 }
 0x321   :  { %1396 = vmatmul.f32.vlgmr.msrb.gmra.mxu2 %v1266_v0  ;;  %1416 = vmatmul.f32.vlgmr.msrb.gmra.mxu3 %v1266_v0  ;;  %v3404_v0 = vld [vmem:[#allocation11 + $0x1d0] sm:$0xff] }
 0x322   :  { %1804 = vmatpush.msrb.mxu1 %v3390_v16  ;;  %1824 = vmatpush.msrb.mxu2 %v3392_v10 }
 0x323   :  { %1844 = vmatpush.msrb.mxu3 %v3396_v2 }
 0x324   :  { %1805 = vmatpush.msrb.mxu1 %v3402_v14  ;;  %1825 = vmatpush.msrb.mxu2 %v3404_v0 }
 0x39d   :  { %v1357_v15 = vpop.f32.mrf.mxu0  ;;  %v1377_v3 = vpop.f32.mrf.mxu1 }
 0x39e   :  { %v1420_v17 = vadd.f32 %v1357_v15, %v3813_v19  ;;  %v1421_v23 = vadd.f32 %v1377_v3, %v3814_v20  ;;  %v3408_v15 = vld [vmem:[#allocation11 + $0x1d8] sm:$0xff]  ;;  %v3412_v3 = vld [vmem:[#allocation11 + $0x1a0] sm:$0xff]  ;;  %v3414_v19 = vld [vmem:[#allocation11 + $0x1a8] sm:$0xff] }
 0x39f   :  { %1845 = vmatpush.msrb.mxu3 %v3408_v15  ;;  %1806 = vmatpush.msrb.mxu1 %v3414_v19  ;;  %v3420_v20 = vld [vmem:[#allocation11 + $0x1b8] sm:$0xff] }
 0x3a0   :  { %v2236_v24 = vmul.f32 -1.442695, %v1420_v17  ;;  %v2237_v43 = vmul.f32 -1.442695, %v1421_v23  ;;  %v3416_v17 = vld [vmem:[#allocation11 + $0x1b0] sm:$0xff]  ;;  %v3424_v23 = vld [vmem:[#allocation11 + $0x180] sm:$0xff] }
 0x3a1   :  { %1826 = vmatpush.msrb.mxu2 %v3416_v17  ;;  %1846 = vmatpush.msrb.mxu3 %v3420_v20 }
 0x3a2   :  { %2324 = vpow2.f32 %v2236_v24  ;;  %v3426_v24 = vld [vmem:[#allocation11 + $0x188] sm:$0xff] }
 0x3a3   :  { %2326 = vpow2.f32 %v2237_v43  ;;  %v3428_v43 = vld [vmem:[#allocation11 + $0x190] sm:$0xff]  ;;  %1807 = vmatpush.msrb.mxu1 %v3426_v24 }
 0x3a4   :  { %v1397_v48 = vpop.f32.mrf.mxu2  ;;  %v1417_v29 = vpop.f32.mrf.mxu3  ;;  %1827 = vmatpush.msrb.mxu2 %v3428_v43 }
 0x3a5   :  { %v1422_v56 = vadd.f32 %v1397_v48, %v3815_v53  ;;  %v1423_v37 = vadd.f32 %v1417_v29, %v3816_v33  ;;  %v3432_v48 = vld [vmem:[#allocation11 + $0x198] sm:$0xff]  ;;  %v3436_v53 = vld [vmem:[#allocation11 + $0x160] sm:$0xff] }
 0x3a6   :  { %1847 = vmatpush.msrb.mxu3 %v3432_v48  ;;  %v3456_v29 = vld [vmem:[#allocation11 + $0x158] sm:$0xff] }
 0x3a7   :  { %v2238_v57 = vmul.f32 -1.442695, %v1422_v56  ;;  %v3438_v56 = vld [vmem:[#allocation11 + $0x168] sm:$0xff]  ;;  %v3468_v33 = vld [vmem:[#allocation11 + $0x138] sm:$0xff] }
 0x3a8   :  { %v2325_v34 = vpop.eup %2324  ;;  %1808 = vmatpush.msrb.mxu1 %v3438_v56 }
 0x3a9   :  { %v2327_v60 = vpop.eup %2326  ;;  %v1433_v39 = vadd.f32 1.0, %v2325_v34  ;;  %2328 = vpow2.f32 %v2238_v57  ;;  %v3440_v57 = vld [vmem:[#allocation11 + $0x170] sm:$0xff]  ;;  %v3444_v34 = vld [vmem:[#allocation11 + $0x178] sm:$0xff] }
 0x3aa   :  { %v1434_v30 = vadd.f32 1.0, %v2327_v60  ;;  %1828 = vmatpush.msrb.mxu2 %v3440_v57  ;;  %1848 = vmatpush.msrb.mxu3 %v3444_v34  ;;  %v3448_v60 = vld [vmem:[#allocation11 + $0x140] sm:$0xff] }
 0x3ab   :  { %2330 = vrcp.f32 %v1433_v39  ;;  %v1447_v58 = vand.u32 2147483648, %v1433_v39  ;;  %v1445_v63 = vand.u32 2147483647, %v1433_v39  ;;  %vm1441_vm2 = vweird.f32 %v1433_v39 }
 0x3ac   :  { %2332 = vrcp.f32 %v1434_v30  ;;  %v1462_v59 = vand.u32 2147483648, %v1434_v30  ;;  %v1460_v13 = vand.u32 2147483647, %v1434_v30  ;;  %vm1456_vm3 = vweird.f32 %v1434_v30  ;;  %1849 = vmatpush.msrb.mxu3 %v3456_v29 }
 0x3ad   :  { %v1448_v9 = vor.u32 1.1754944e-38, %v1447_v58  ;;  %vm1446_vm6 = vcmp.eq.f32.partialorder %v1445_v63, 8.507059e+37  ;;  %v3488_v58 = vld [vmem:[#allocation11 + $0xf0] sm:$0xff]  ;;  %v3498_v63 = vld [vmem:[#allocation11 + $0xc8] sm:$0xff] }
 0x3ae   :  { %v1463_v26 = vor.u32 1.1754944e-38, %v1462_v59  ;;  %vm1461_vm7 = vcmp.eq.f32.partialorder %v1460_v13, 8.507059e+37  ;;  %1850 = vmatpush.msrb.mxu3 %v3468_v33  ;;  %v3492_v59 = vld [vmem:[#allocation11 + $0xf8] sm:$0xff] }
 0x3af   :  { %v2329_v18 = vpop.eup %2328 }
 0x3b0   :  { %v1435_v44 = vadd.f32 1.0, %v2329_v18  ;;  %v3460_v18 = vld [vmem:[#allocation11 + $0x120] sm:$0xff] }
 0x3b1   :  { %v2331_v32 = vpop.eup %2330 }
 0x3b2   :  { %v2333_v41 = vpop.eup %2332  ;;  %v1437_v49 = vmul.f32 %v2331_v32, %v1433_v39  ;;  %2334 = vrcp.f32 %v1435_v44  ;;  %vm1442_vm0 = vweird.f32 %v2331_v32  ;;  %v1477_v27 = vand.u32 2147483648, %v1435_v44  ;;  %v3450_v39 = vld [vmem:[#allocation11 + $0x148] sm:$0xff] }
 0x3b3   :  { %v1452_v50 = vmul.f32 %v2333_v41, %v1434_v30  ;;  %2336 = vtanh.f32 %v1423_v37  ;;  %vm1457_vm1 = vweird.f32 %v2333_v41  ;;  %vm1443_vm4 = vmor %vm1441_vm2, %vm1442_vm0  ;;  %vm1471_vm9 = vweird.f32 %v1435_v44  ;;  %v3452_v30 = vld [vmem:[#allocation11 + $0x150] sm:$0xff]  ;;  %1809 = vmatpush.msrb.mxu1 %v3450_v39  ;;  %v3472_v37 = vld [vmem:[#allocation11 + $0x100] sm:$0xff] }
 0x3b4   :  { %v1438_v54 = vsub.f32 1.0, %v1437_v49  ;;  %vm1458_vm5 = vmor %vm1456_vm3, %vm1457_vm1  ;;  %v1475_v40 = vand.u32 2147483647, %v1435_v44  ;;  %v1478_v35 = vor.u32 1.1754944e-38, %v1477_v27  ;;  %1829 = vmatpush.msrb.mxu2 %v3452_v30  ;;  %v3476_v49 = vld [vmem:[#allocation11 + $0x110] sm:$0xff]  ;;  %v3532_v27 = vld [vmem:[#allocation11 + $0x60] sm:$0xff] }
 0x3b5   :  { %v1453_v42 = vsub.f32 1.0, %v1452_v50  ;;  %v3480_v50 = vld [vmem:[#allocation11 + $0x118] sm:$0xff] }
 0x3b6   :  { %v1439_v62 = vmul.f32 %v2331_v32, %v1438_v54  ;;  %vm1476_vm11 = vcmp.eq.f32.partialorder %v1475_v40, 8.507059e+37  ;;  %1851 = vmatpush.msrb.mxu3 %v3480_v50  ;;  %v3484_v54 = vld [vmem:[#allocation11 + $0xe0] sm:$0xff]  ;;  %v3536_v40 = vld [vmem:[#allocation11 + $0x68] sm:$0xff] }
 0x3b7   :  { %v1454_v52 = vmul.f32 %v2333_v41, %v1453_v42  ;;  %v3486_v42 = vld [vmem:[#allocation11 + $0xe8] sm:$0xff]  ;;  %3819 = vst [vmem:[#allocation52_spill] sm:$0xff] %v3536_v40 }
 0x3b8   :  { %v2335_v7 = vpop.eup %2334  ;;  %v1440_v22 = vadd.f32 %v2331_v32, %v1439_v62  ;;  %1852 = vmatpush.msrb.mxu3 %v3492_v59  ;;  %v3496_v62 = vld [vmem:[#allocation11 + $0xc0] sm:$0xff] }
 0x3b9   :  { %v1467_v8 = vmul.f32 %v2335_v7, %v1435_v44  ;;  %v1455_v61 = vadd.f32 %v2333_v41, %v1454_v52  ;;  %v2337_v25 = vpop.eup %2336  ;;  %vm1472_vm8 = vweird.f32 %v2335_v7  ;;  %v3462_v44 = vld [vmem:[#allocation11 + $0x128] sm:$0xff]  ;;  %v3500_v52 = vld [vmem:[#allocation11 + $0xd0] sm:$0xff] }
 0x3ba   :  { %v1444_v21 = vsel %vm1443_vm4, %v2331_v32, %v1440_v22  ;;  %vm1473_vm10 = vmor %vm1471_vm9, %vm1472_vm8  ;;  %v3464_v32 = vld [vmem:[#allocation11 + $0x130] sm:$0xff]  ;;  %1810 = vmatpush.msrb.mxu1 %v3462_v44  ;;  %v3504_v22 = vld [vmem:[#allocation11 + $0xd8] sm:$0xff] }
 0x3bb   :  { %v1468_v38 = vsub.f32 1.0, %v1467_v8  ;;  %v1449_v4 = vsel %vm1446_vm6, %v1448_v9, %v1444_v21  ;;  %v1459_v55 = vsel %vm1458_vm5, %v2333_v41, %v1455_v61  ;;  %1830 = vmatpush.msrb.mxu2 %v3464_v32  ;;  %v3474_v41 = vld [vmem:[#allocation11 + $0x108] sm:$0xff]  ;;  %v3818_v61 = vld [vmem:[#allocation28_spill] sm:$0xff]  ;;  %1853 = vmatpush.msrb.mxu3 %v3504_v22  ;;  %v3510_v21 = vld [vmem:[#allocation11 + $0xa0] sm:$0xff] }
 0x3bc   :  { %v1464_v36 = vsel %vm1461_vm7, %v1463_v26, %v1459_v55  ;;  %v1484_v45 = vmul.f32 %v2337_v25, %v1449_v4  ;;  %1811 = vmatpush.msrb.mxu1 %v3474_v41  ;;  %v3817_v8 = vld [vmem:[#allocation27_spill] sm:$0xff]  ;;  %v3518_v4 = vld [vmem:[#allocation11 + $0xb8] sm:$0xff] }
 0x3bd   :  { %v1483_v46 = vmul.f32 %v1464_v36, %v3377_v31  ;;  %v1469_v6 = vmul.f32 %v2335_v7, %v1468_v38  ;;  %v3388_v31 = vld [vmem:[#allocation11 + $0x1e0] sm:$0xff]  ;;  %1831 = vmatpush.msrb.mxu2 %v3476_v49  ;;  %v3512_v25 = vld [vmem:[#allocation11 + $0xa8] sm:$0xff]  ;;  %v3514_v38 = vld [vmem:[#allocation11 + $0xb0] sm:$0xff]  ;;  %1854 = vmatpush.msrb.mxu3 %v3518_v4 }
 0x3be   :  { %1784 = vmatpush.msrb.mxu0 %v3388_v31  ;;  %1812 = vmatpush.msrb.mxu1 %v3486_v42 }
 0x3bf   :  { %v3385_v12 = vadd.f32 %v1484_v45, %v1483_v46  ;;  %v1470_v47 = vadd.f32 %v2335_v7, %v1469_v6  ;;  %1832 = vmatpush.msrb.mxu2 %v3488_v58  ;;  %v3522_v45 = vld [vmem:[#allocation11 + $0x80] sm:$0xff]  ;;  %v3524_v46 = vld [vmem:[#allocation11 + $0x88] sm:$0xff]  ;;  %v3528_v6 = vld [vmem:[#allocation11 + $0x90] sm:$0xff] }
 0x3c0   :  { %1785 = vmatpush.msrb.mxu0 %v3400_v5  ;;  %1813 = vmatpush.msrb.mxu1 %v3498_v63 }
 0x3c1   :  { %2338 = vtanh.f32 %v3385_v12  ;;  %v1474_v51 = vsel %vm1473_vm10, %v2335_v7, %v1470_v47  ;;  %1833 = vmatpush.msrb.mxu2 %v3500_v52  ;;  %v3530_v47 = vld [vmem:[#allocation11 + $0x98] sm:$0xff] }
 0x3c2   :  { %v1479_v11 = vsel %vm1476_vm11, %v1478_v35, %v1474_v51  ;;  %1786 = vmatpush.msrb.mxu0 %v3412_v3  ;;  %1814 = vmatpush.msrb.mxu1 %v3512_v25  ;;  %v3538_v51 = vld [vmem:[#allocation11 + $0x70] sm:$0xff]  ;;  %v3540_v35 = vld [vmem:[#allocation11 + $0x78] sm:$0xff] }
 0x3c3   :  { %1834 = vmatpush.msrb.mxu2 %v3514_v38  ;;  %1855 = vmatpush.msrb.mxu3 %v3530_v47  ;;  %3820 = vst [vmem:[#allocation53_spill] sm:$0xff] %v3538_v51 }
 0x3c4   :  { %1787 = vmatpush.msrb.mxu0 %v3424_v23  ;;  %1815 = vmatpush.msrb.mxu1 %v3524_v46  ;;  %3821 = vst [vmem:[#allocation54_spill] sm:$0xff] %v3540_v35 }
 0x3c5   :  { %1835 = vmatpush.msrb.mxu2 %v3528_v6  ;;  %1856 = vmatpush.msrb.mxu3 %v3540_v35  ;;  %v3567_v35 = vld [vmem:[#allocation11] sm:$0xff] }
 0x3c6   :  { %1788 = vmatpush.msrb.mxu0 %v3436_v53  ;;  %1816 = vmatpush.msrb.mxu1 %v3536_v40 }
 0x3c7   :  { %v2339_v1 = vpop.eup %2338  ;;  %1836 = vmatpush.msrb.mxu2 %v3538_v51  ;;  %v3569_v51 = vld [vmem:[#allocation11 + $0x8] sm:$0xff] }
 0x3c8   :  { %v1488_v28 = vmul.f32 %v2339_v1, %v1479_v11  ;;  %1789 = vmatpush.msrb.mxu0 %v3448_v60  ;;  %v3544_v1 = vld [vmem:[#allocation11 + $0x40] sm:$0xff]  ;;  %v3546_v11 = vld [vmem:[#allocation11 + $0x48] sm:$0xff] }
 0x3c9   :  { %3822 = vst [vmem:[#allocation55_spill] sm:$0xff] %v3546_v11  ;;  %1817 = vmatpush.msrb.mxu1 %v3546_v11 }
 0x3ca   :  { %1578 = vmatmul.f32.vlgmr.msra.gmra.mxu0 %v1488_v28  ;;  %1598 = vmatmul.f32.vlgmr.msra.gmra.mxu1 %v1488_v28 }
 0x3cb   :  { %1618 = vmatmul.f32.vlgmr.msra.gmra.mxu2 %v1488_v28  ;;  %1638 = vmatmul.f32.vlgmr.msra.gmra.mxu3 %v1488_v28  ;;  %v3548_v28 = vld [vmem:[#allocation11 + $0x50] sm:$0xff] }
 0x3cc   :  { %1790 = vmatpush.msrb.mxu0 %v3460_v18  ;;  %3823 = vst [vmem:[#allocation56_spill] sm:$0xff] %v3548_v28  ;;  %1837 = vmatpush.msrb.mxu2 %v3548_v28 }
 0x3ce   :  { %1791 = vmatpush.msrb.mxu0 %v3472_v37 }
 0x3d0   :  { %1792 = vmatpush.msrb.mxu0 %v3484_v54 }
 0x3d2   :  { %1793 = vmatpush.msrb.mxu0 %v3496_v62 }
 0x3d4   :  { %1794 = vmatpush.msrb.mxu0 %v3510_v21 }
 0x3d6   :  { %1795 = vmatpush.msrb.mxu0 %v3522_v45 }
 0x3d8   :  { %1796 = vmatpush.msrb.mxu0 %v3532_v27 }
 0x3da   :  { %1797 = vmatpush.msrb.mxu0 %v3544_v1 }
 0x447   :  { %v1579_v13 = vpop.f32.mrf.mxu0  ;;  %v1599_v7 = vpop.f32.mrf.mxu1 }
 0x448   :  { %v1642_v9 = vadd.f32 %v1579_v13, %v3817_v8  ;;  %v1643_v26 = vadd.f32 %v1599_v7, %v3818_v61  ;;  %v3552_v7 = vld [vmem:[#allocation11 + $0x58] sm:$0xff]  ;;  %v3554_v8 = vld [vmem:[#allocation11 + $0x20] sm:$0xff] }
 0x449   :  { %3824 = vst [vmem:[#allocation57_spill] sm:$0xff] %v3552_v7  ;;  %v3825_v61 = vld [vmem:[#allocation29_spill] sm:$0xff]  ;;  %1857 = vmatpush.msrb.mxu3 %v3552_v7  ;;  %1798 = vmatpush.msrb.mxu0 %v3554_v8 }
 0x44a   :  { %v2239_v55 = vmul.f32 -1.442695, %v1642_v9  ;;  %v2240_v36 = vmul.f32 -1.442695, %v1643_v26  ;;  %v3556_v9 = vld [vmem:[#allocation11 + $0x28] sm:$0xff] }
 0x44b   :  { %1818 = vmatpush.msrb.mxu1 %v3556_v9  ;;  %1799 = vmatpush.msrb.mxu0 %v3567_v35 }
 0x44c   :  { %2340 = vpow2.f32 %v2239_v55  ;;  %v3561_v55 = vld [vmem:[#allocation11 + $0x30] sm:$0xff] }
 0x44d   :  { %2342 = vpow2.f32 %v2240_v36  ;;  %v3563_v36 = vld [vmem:[#allocation11 + $0x38] sm:$0xff]  ;;  %1838 = vmatpush.msrb.mxu2 %v3561_v55  ;;  %1819 = vmatpush.msrb.mxu1 %v3569_v51 }
 0x44e   :  { %v1619_v13 = vpop.f32.mrf.mxu2  ;;  %1858 = vmatpush.msrb.mxu3 %v3563_v36  ;;  %2006 = vmatpush.msra.mxu0 %v3388_v31 }
 0x44f   :  { %v1644_v26 = vadd.f32 %v1619_v13, %v3825_v61  ;;  %v3573_v13 = vld [vmem:[#allocation11 + $0x10] sm:$0xff]  ;;  %v3575_v61 = vld [vmem:[#allocation11 + $0x18] sm:$0xff]  ;;  %2026 = vmatpush.msra.mxu1 %v3390_v16 }
 0x450   :  { %1839 = vmatpush.msrb.mxu2 %v3573_v13  ;;  %1859 = vmatpush.msrb.mxu3 %v3575_v61 }
 0x451   :  { %v2241_v40 = vmul.f32 -1.442695, %v1644_v26  ;;  %2007 = vmatpush.msra.mxu0 %v3400_v5  ;;  %2027 = vmatpush.msra.mxu1 %v3402_v14 }
 0x452   :  { %v2341_v11 = vpop.eup %2340  ;;  %2046 = vmatpush.msra.mxu2 %v3392_v10  ;;  %2066 = vmatpush.msra.mxu3 %v3396_v2  ;;  %v3826_v10 = vld [vmem:[#allocation30_spill] sm:$0xff] }
 0x453   :  { %v2343_v28 = vpop.eup %2342  ;;  %v3579_v7 = vadd.f32 1.0, %v2341_v11  ;;  %2344 = vpow2.f32 %v2241_v40  ;;  %v1639_v40 = vpop.f32.mrf.mxu3  ;;  %2008 = vmatpush.msra.mxu0 %v3412_v3  ;;  %2028 = vmatpush.msra.mxu1 %v3414_v19 }
 0x454   :  { %v3583_v26 = vadd.f32 1.0, %v2343_v28  ;;  %2047 = vmatpush.msra.mxu2 %v3404_v0  ;;  %2067 = vmatpush.msra.mxu3 %v3408_v15  ;;  %v1645_v2 = vadd.f32 %v1639_v40, %v3826_v10 }
 0x455   :  { %2346 = vrcp.f32 %v3579_v7  ;;  %2009 = vmatpush.msra.mxu0 %v3424_v23  ;;  %2029 = vmatpush.msra.mxu1 %v3426_v24  ;;  %v1669_v19 = vand.u32 2147483648, %v3579_v7  ;;  %v1667_v23 = vand.u32 2147483647, %v3579_v7  ;;  %vm1663_vm14 = vweird.f32 %v3579_v7 }
 0x456   :  { %2348 = vrcp.f32 %v3583_v26  ;;  %2048 = vmatpush.msra.mxu2 %v3416_v17  ;;  %2068 = vmatpush.msra.mxu3 %v3420_v20  ;;  %v1684_v17 = vand.u32 2147483648, %v3583_v26  ;;  %vm1678_vm15 = vweird.f32 %v3583_v26 }
 0x457   :  { %2010 = vmatpush.msra.mxu0 %v3436_v53  ;;  %2030 = vmatpush.msra.mxu1 %v3438_v56  ;;  %vm1668_vm2 = vcmp.eq.f32.partialorder %v1667_v23, 8.507059e+37 }
 0x458   :  { %2049 = vmatpush.msra.mxu2 %v3428_v43  ;;  %2069 = vmatpush.msra.mxu3 %v3432_v48  ;;  %v1682_v43 = vand.u32 2147483647, %v3583_v26 }
 0x459   :  { %v2345_v11 = vpop.eup %2344  ;;  %2011 = vmatpush.msra.mxu0 %v3448_v60  ;;  %2031 = vmatpush.msra.mxu1 %v3450_v39  ;;  %v1685_v60 = vor.u32 1.1754944e-38, %v1684_v17 }
 0x45a   :  { %v3599_v31 = vadd.f32 1.0, %v2345_v11  ;;  %2050 = vmatpush.msra.mxu2 %v3440_v57  ;;  %2070 = vmatpush.msra.mxu3 %v3444_v34  ;;  %v1670_v57 = vor.u32 1.1754944e-38, %v1669_v19  ;;  %vm1683_vm3 = vcmp.eq.f32.partialorder %v1682_v43, 8.507059e+37 }
 0x45b   :  { %v2347_v16 = vpop.eup %2346  ;;  %2012 = vmatpush.msra.mxu0 %v3460_v18  ;;  %2032 = vmatpush.msra.mxu1 %v3462_v44 }
 0x45c   :  { %v2349_v5 = vpop.eup %2348  ;;  %v1659_v14 = vmul.f32 %v2347_v16, %v3579_v7  ;;  %2350 = vrcp.f32 %v3599_v31  ;;  %vm1664_vm12 = vweird.f32 %v2347_v16  ;;  %2051 = vmatpush.msra.mxu2 %v3452_v30  ;;  %2071 = vmatpush.msra.mxu3 %v3456_v29  ;;  %vm1693_vm5 = vweird.f32 %v3599_v31 }
 0x45d   :  { %v1674_v0 = vmul.f32 %v2349_v5, %v3583_v26  ;;  %2352 = vtanh.f32 %v1645_v2  ;;  %vm1679_vm13 = vweird.f32 %v2349_v5  ;;  %vm1665_vm0 = vmor %vm1663_vm14, %vm1664_vm12  ;;  %2013 = vmatpush.msra.mxu0 %v3472_v37  ;;  %2033 = vmatpush.msra.mxu1 %v3474_v41 }
 0x45e   :  { %v1660_v15 = vsub.f32 1.0, %v1659_v14  ;;  %2052 = vmatpush.msra.mxu2 %v3464_v32  ;;  %2072 = vmatpush.msra.mxu3 %v3468_v33  ;;  %vm1680_vm1 = vmor %vm1678_vm15, %vm1679_vm13 }
 0x45f   :  { %v1675_v3 = vsub.f32 1.0, %v1674_v0  ;;  %2014 = vmatpush.msra.mxu0 %v3484_v54  ;;  %2034 = vmatpush.msra.mxu1 %v3486_v42  ;;  %v1697_v54 = vand.u32 2147483647, %v3599_v31  ;;  %v3827_v42 = vld [vmem:[#allocation52_spill] sm:$0xff] }
 0x460   :  { %v1661_v20 = vmul.f32 %v2347_v16, %v1660_v15  ;;  %2053 = vmatpush.msra.mxu2 %v3476_v49  ;;  %2073 = vmatpush.msra.mxu3 %v3480_v50 }
 0x461   :  { %v1676_v24 = vmul.f32 %v2349_v5, %v1675_v3  ;;  %2015 = vmatpush.msra.mxu0 %v3496_v62  ;;  %2035 = vmatpush.msra.mxu1 %v3498_v63  ;;  %v3829_v62 = vld [vmem:[#allocation54_spill] sm:$0xff]  ;;  %vm1698_vm7 = vcmp.eq.f32.partialorder %v1697_v54, 8.507059e+37 }
 0x462   :  { %v3625_v48 = vpop.eup %2350  ;;  %v1662_v53 = vadd.f32 %v2347_v16, %v1661_v20  ;;  %2054 = vmatpush.msra.mxu2 %v3488_v58  ;;  %2074 = vmatpush.msra.mxu3 %v3492_v59  ;;  %v3828_v59 = vld [vmem:[#allocation53_spill] sm:$0xff] }
 0x463   :  { %v1689_v56 = vmul.f32 %v3625_v48, %v3599_v31  ;;  %v1677_v34 = vadd.f32 %v2349_v5, %v1676_v24  ;;  %v2353_v30 = vpop.eup %2352  ;;  %2016 = vmatpush.msra.mxu0 %v3510_v21  ;;  %2036 = vmatpush.msra.mxu1 %v3512_v25  ;;  %vm1694_vm4 = vweird.f32 %v3625_v48  ;;  %v3832_v21 = vld [vmem:[#allocation57_spill] sm:$0xff] }
 0x464   :  { %v1666_v39 = vsel %vm1665_vm0, %v2347_v16, %v1662_v53  ;;  %2055 = vmatpush.msra.mxu2 %v3500_v52  ;;  %2075 = vmatpush.msra.mxu3 %v3504_v22  ;;  %vm1695_vm6 = vmor %vm1693_vm5, %vm1694_vm4  ;;  %v3830_v52 = vld [vmem:[#allocation55_spill] sm:$0xff]  ;;  %v3831_v22 = vld [vmem:[#allocation56_spill] sm:$0xff] }
 0x465   :  { %v1690_v29 = vsub.f32 1.0, %v1689_v56  ;;  %v1671_v18 = vsel %vm1668_vm2, %v1670_v57, %v1666_v39  ;;  %v1681_v44 = vsel %vm1680_vm1, %v2349_v5, %v1677_v34  ;;  %2017 = vmatpush.msra.mxu0 %v3522_v45  ;;  %2037 = vmatpush.msra.mxu1 %v3524_v46  ;;  %v3836_v16 = vld [vmem:[#allocation34_spill] sm:$0xff] }
 0x466   :  { %v1686_v32 = vsel %vm1683_vm3, %v1685_v60, %v1681_v44  ;;  %v1706_v33 = vmul.f32 %v2353_v30, %v1671_v18  ;;  %2056 = vmatpush.msra.mxu2 %v3514_v38  ;;  %2076 = vmatpush.msra.mxu3 %v3518_v4 }
 0x467   :  { %v1705_v37 = vmul.f32 %v1686_v32, %v3385_v12  ;;  %v1691_v41 = vmul.f32 %v3625_v48, %v1690_v29  ;;  %v1699_v12 = vand.u32 2147483648, %v3599_v31  ;;  %2018 = vmatpush.msra.mxu0 %v3532_v27  ;;  %2038 = vmatpush.msra.mxu1 %v3827_v42  ;;  %v3834_v27 = vld [vmem:[#allocation32_spill] sm:$0xff] }
 0x468   :  { %2057 = vmatpush.msra.mxu2 %v3528_v6  ;;  %2077 = vmatpush.msra.mxu3 %v3530_v47  ;;  %v3833_v6 = vld [vmem:[#allocation31_spill] sm:$0xff] }
 0x469   :  { %v3649_v49 = vadd.f32 %v1706_v33, %v1705_v37  ;;  %v1692_v50 = vadd.f32 %v3625_v48, %v1691_v41  ;;  %v1700_v63 = vor.u32 1.1754944e-38, %v1699_v12  ;;  %2019 = vmatpush.msra.mxu0 %v3544_v1  ;;  %2039 = vmatpush.msra.mxu1 %v3830_v52  ;;  %v2171_v52 = vld [vmem:[#allocation13 + $0x70] sm:$0xff] }
 0x46a   :  { %2058 = vmatpush.msra.mxu2 %v3828_v59  ;;  %2078 = vmatpush.msra.mxu3 %v3829_v62 }
 0x46b   :  { %2354 = vtanh.f32 %v3649_v49  ;;  %v1696_v58 = vsel %vm1695_vm6, %v3625_v48, %v1692_v50  ;;  %2020 = vmatpush.msra.mxu0 %v3554_v8  ;;  %2040 = vmatpush.msra.mxu1 %v3556_v9 }
 0x46c   :  { %2059 = vmatpush.msra.mxu2 %v3831_v22  ;;  %2079 = vmatpush.msra.mxu3 %v3832_v21  ;;  %v1701_v38 = vsel %vm1698_vm7, %v1700_v63, %v1696_v58  ;;  %v2170_v22 = vld [vmem:[#allocation13 + $0x68] sm:$0xff]  ;;  %v2169_v21 = vld [vmem:[#allocation13 + $0x60] sm:$0xff] }
 0x46d   :  { %2021 = vmatpush.msra.mxu0 %v3567_v35  ;;  %2041 = vmatpush.msra.mxu1 %v3569_v51  ;;  %v3835_v51 = vld [vmem:[#allocation33_spill] sm:$0xff] }
 0x46e   :  { %2060 = vmatpush.msra.mxu2 %v3561_v55  ;;  %2080 = vmatpush.msra.mxu3 %v3563_v36 }
 0x470   :  { %2061 = vmatpush.msra.mxu2 %v3573_v13  ;;  %2081 = vmatpush.msra.mxu3 %v3575_v61 }
 0x471   :  { %v2355_v25 = vpop.eup %2354 }
 0x472   :  { %v1710_v4 = vmul.f32 %v2355_v25, %v1701_v38  ;;  %v2168_v25 = vld [vmem:[#allocation13 + $0x58] sm:$0xff]  ;;  %v2167_v38 = vld [vmem:[#allocation13 + $0x50] sm:$0xff] }
 0x474   :  { %1800 = vmatmul.f32.vlgmr.msrb.gmra.mxu0 %v1710_v4  ;;  %1820 = vmatmul.f32.vlgmr.msrb.gmra.mxu1 %v1710_v4 }
 0x475   :  { %1840 = vmatmul.f32.vlgmr.msrb.gmra.mxu2 %v1710_v4  ;;  %1860 = vmatmul.f32.vlgmr.msrb.gmra.mxu3 %v1710_v4  ;;  %v2166_v4 = vld [vmem:[#allocation13 + $0x48] sm:$0xff] }
 0x4f1   :  { %v1801_v45 = vpop.f32.mrf.mxu0  ;;  %v1821_v46 = vpop.f32.mrf.mxu1 }
 0x4f2   :  { %v1864_v47 = vadd.f32 %v1801_v45, %v3833_v6  ;;  %v1865_v1 = vadd.f32 %v1821_v46, %v3834_v27  ;;  %v2165_v45 = vld [vmem:[#allocation13 + $0x40] sm:$0xff]  ;;  %v2164_v46 = vld [vmem:[#allocation13 + $0x38] sm:$0xff]  ;;  %v2163_v6 = vld [vmem:[#allocation13 + $0x30] sm:$0xff] }
 0x4f4   :  { %v2242_v28 = vmul.f32 -1.442695, %v1864_v47  ;;  %v2243_v7 = vmul.f32 -1.442695, %v1865_v1  ;;  %v3837_v1 = vld [vmem:[#allocation35_spill] sm:$0xff] }
 0x4f6   :  { %2356 = vpow2.f32 %v2242_v28 }
 0x4f7   :  { %2358 = vpow2.f32 %v2243_v7  ;;  %v3838_v7 = vld [vmem:[#allocation36_spill] sm:$0xff] }
 0x4f8   :  { %v1841_v35 = vpop.f32.mrf.mxu2  ;;  %v1861_v61 = vpop.f32.mrf.mxu3 }
 0x4f9   :  { %v1866_v8 = vadd.f32 %v1841_v35, %v3835_v51  ;;  %v1867_v10 = vadd.f32 %v1861_v61, %v3836_v16  ;;  %v2162_v51 = vld [vmem:[#allocation13 + $0x28] sm:$0xff] }
 0x4fa   :  { %v2158_v61 = vld [vmem:[#allocation13 + $0x8] sm:$0xff] }
 0x4fb   :  { %v2244_v9 = vmul.f32 -1.442695, %v1866_v8 }
 0x4fc   :  { %v2357_v55 = vpop.eup %2356 }
 0x4fd   :  { %v2359_v36 = vpop.eup %2358  ;;  %v1877_v26 = vadd.f32 1.0, %v2357_v55  ;;  %2360 = vpow2.f32 %v2244_v9  ;;  %v2161_v55 = vld [vmem:[#allocation13 + $0x20] sm:$0xff] }
 0x4fe   :  { %v1878_v13 = vadd.f32 1.0, %v2359_v36  ;;  %v2160_v36 = vld [vmem:[#allocation13 + $0x18] sm:$0xff] }
 0x4ff   :  { %2362 = vrcp.f32 %v1877_v26  ;;  %v1891_v3 = vand.u32 2147483648, %v1877_v26  ;;  %v1889_v20 = vand.u32 2147483647, %v1877_v26  ;;  %vm1885_vm10 = vweird.f32 %v1877_v26 }
 0x500   :  { %2364 = vrcp.f32 %v1878_v13  ;;  %v1906_v19 = vand.u32 2147483648, %v1878_v13  ;;  %v1904_v24 = vand.u32 2147483647, %v1878_v13  ;;  %vm1900_vm11 = vweird.f32 %v1878_v13 }
 0x501   :  { %v1892_v56 = vor.u32 1.1754944e-38, %v1891_v3  ;;  %vm1890_vm14 = vcmp.eq.f32.partialorder %v1889_v20, 8.507059e+37 }
 0x502   :  { %v1907_v34 = vor.u32 1.1754944e-38, %v1906_v19  ;;  %vm1905_vm15 = vcmp.eq.f32.partialorder %v1904_v24, 8.507059e+37 }
 0x503   :  { %v2361_v40 = vpop.eup %2360 }
 0x504   :  { %v1879_v11 = vadd.f32 1.0, %v2361_v40  ;;  %v3839_v40 = vld [vmem:[#allocation37_spill] sm:$0xff] }
 0x505   :  { %v2363_v31 = vpop.eup %2362 }
 0x506   :  { %v2365_v2 = vpop.eup %2364  ;;  %v1881_v5 = vmul.f32 %v2363_v31, %v1877_v26  ;;  %2366 = vrcp.f32 %v1879_v11  ;;  %vm1886_vm8 = vweird.f32 %v2363_v31  ;;  %v1921_v12 = vand.u32 2147483648, %v1879_v11  ;;  %v2159_v26 = vld [vmem:[#allocation13 + $0x10] sm:$0xff] }
 0x507   :  { %v1896_v14 = vmul.f32 %v2365_v2, %v1878_v13  ;;  %2368 = vtanh.f32 %v1867_v10  ;;  %vm1901_vm9 = vweird.f32 %v2365_v2  ;;  %vm1887_vm12 = vmor %vm1885_vm10, %vm1886_vm8  ;;  %vm1915_vm1 = vweird.f32 %v1879_v11 }
 0x508   :  { %v1882_v0 = vsub.f32 1.0, %v1881_v5  ;;  %vm1902_vm13 = vmor %vm1900_vm11, %vm1901_vm9  ;;  %v1919_v54 = vand.u32 2147483647, %v1879_v11  ;;  %v1922_v58 = vor.u32 1.1754944e-38, %v1921_v12 }
 0x509   :  { %v1897_v15 = vsub.f32 1.0, %v1896_v14 }
 0x50a   :  { %v1883_v17 = vmul.f32 %v2363_v31, %v1882_v0  ;;  %vm1920_vm3 = vcmp.eq.f32.partialorder %v1919_v54, 8.507059e+37 }
 0x50b   :  { %v1898_v23 = vmul.f32 %v2365_v2, %v1897_v15 }
 0x50c   :  { %v2367_v43 = vpop.eup %2366  ;;  %v1884_v48 = vadd.f32 %v2363_v31, %v1883_v17  ;;  %v3840_v17 = vld [vmem:[#allocation38_spill] sm:$0xff] }
 0x50d   :  { %v1911_v53 = vmul.f32 %v2367_v43, %v1879_v11  ;;  %v1899_v57 = vadd.f32 %v2365_v2, %v1898_v23  ;;  %v2369_v39 = vpop.eup %2368  ;;  %vm1916_vm0 = vweird.f32 %v2367_v43 }
 0x50e   :  { %v1888_v60 = vsel %vm1887_vm12, %v2363_v31, %v1884_v48  ;;  %vm1917_vm2 = vmor %vm1915_vm1, %vm1916_vm0  ;;  %v2157_v31 = vld [vmem:[#allocation13] sm:$0xff] }
 0x50f   :  { %v1912_v30 = vsub.f32 1.0, %v1911_v53  ;;  %v1893_v29 = vsel %vm1890_vm14, %v1892_v56, %v1888_v60  ;;  %v1903_v18 = vsel %vm1902_vm13, %v2365_v2, %v1899_v57 }
 0x510   :  { %v1908_v44 = vsel %vm1905_vm15, %v1907_v34, %v1903_v18  ;;  %v1928_v32 = vmul.f32 %v2369_v39, %v1893_v29 }
 0x511   :  { %v1927_v33 = vmul.f32 %v1908_v44, %v3649_v49  ;;  %v1913_v37 = vmul.f32 %v2367_v43, %v1912_v30  ;;  %v2172_v49 = vld [vmem:[#allocation13 + $0x78] sm:$0xff] }
 0x512   :  { %2177 = vmatpush.msrb.mxu0 %v2172_v49 }
 0x513   :  { %v3687_v41 = vadd.f32 %v1928_v32, %v1927_v33  ;;  %v1914_v50 = vadd.f32 %v2367_v43, %v1913_v37 }
 0x514   :  { %2178 = vmatpush.msrb.mxu0 %v2171_v52 }
 0x515   :  { %2370 = vtanh.f32 %v3687_v41  ;;  %v1918_v42 = vsel %vm1917_vm2, %v2367_v43, %v1914_v50 }
 0x516   :  { %v1923_v62 = vsel %vm1920_vm3, %v1922_v58, %v1918_v42  ;;  %2179 = vmatpush.msrb.mxu0 %v2170_v22 }
 0x518   :  { %2180 = vmatpush.msrb.mxu0 %v2169_v21 }
 0x51a   :  { %2181 = vmatpush.msrb.mxu0 %v2168_v25 }
 0x51b   :  { %v2371_v59 = vpop.eup %2370 }
 0x51c   :  { %v1932_v63 = vmul.f32 %v2371_v59, %v1923_v62  ;;  %2182 = vmatpush.msrb.mxu0 %v2167_v38 }
 0x51e   :  { %2022 = vmatmul.f32.vlgmr.msra.gmra.mxu0 %v1932_v63  ;;  %2042 = vmatmul.f32.vlgmr.msra.gmra.mxu1 %v1932_v63 }
 0x51f   :  { %2062 = vmatmul.f32.vlgmr.msra.gmra.mxu2 %v1932_v63  ;;  %2082 = vmatmul.f32.vlgmr.msra.gmra.mxu3 %v1932_v63 }
 0x520   :  { %2183 = vmatpush.msrb.mxu0 %v2166_v4 }
 0x522   :  { %2184 = vmatpush.msrb.mxu0 %v2165_v45 }
 0x524   :  { %2185 = vmatpush.msrb.mxu0 %v2164_v46 }
 0x526   :  { %2186 = vmatpush.msrb.mxu0 %v2163_v6 }
 0x528   :  { %2187 = vmatpush.msrb.mxu0 %v2162_v51 }
 0x52a   :  { %2188 = vmatpush.msrb.mxu0 %v2161_v55 }
 0x52c   :  { %2189 = vmatpush.msrb.mxu0 %v2160_v36 }
 0x52e   :  { %2190 = vmatpush.msrb.mxu0 %v2159_v26 }
 0x530   :  { %2191 = vmatpush.msrb.mxu0 %v2158_v61 }
 0x532   :  { %2192 = vmatpush.msrb.mxu0 %v2157_v31 }
 0x59b   :  { %v2023_v47 = vpop.f32.mrf.mxu0  ;;  %v2043_v27 = vpop.f32.mrf.mxu1 }
 0x59c   :  { %v2086_v28 = vadd.f32 %v2023_v47, %v3837_v1  ;;  %v2087_v35 = vadd.f32 %v2043_v27, %v3838_v7 }
 0x59e   :  { %v2245_v8 = vmul.f32 -1.442695, %v2086_v28  ;;  %v2246_v9 = vmul.f32 -1.442695, %v2087_v35 }
 0x5a0   :  { %2372 = vpow2.f32 %v2245_v8 }
 0x5a1   :  { %2374 = vpow2.f32 %v2246_v9 }
 0x5a2   :  { %v2063_v13 = vpop.f32.mrf.mxu2  ;;  %v2083_v0 = vpop.f32.mrf.mxu3 }
 0x5a3   :  { %v2088_v11 = vadd.f32 %v2063_v13, %v3839_v40  ;;  %v2089_v20 = vadd.f32 %v2083_v0, %v3840_v17 }
 0x5a5   :  { %v2247_v16 = vmul.f32 -1.442695, %v2088_v11 }
 0x5a6   :  { %v2373_v10 = vpop.eup %2372 }
 0x5a7   :  { %v2375_v2 = vpop.eup %2374  ;;  %v2099_v5 = vadd.f32 1.0, %v2373_v10  ;;  %2376 = vpow2.f32 %v2247_v16 }
 0x5a8   :  { %v2100_v14 = vadd.f32 1.0, %v2375_v2 }
 0x5a9   :  { %2378 = vrcp.f32 %v2099_v5  ;;  %v2113_v56 = vand.u32 2147483648, %v2099_v5  ;;  %v2111_v60 = vand.u32 2147483647, %v2099_v5  ;;  %vm2107_vm6 = vweird.f32 %v2099_v5 }
 0x5aa   :  { %2380 = vrcp.f32 %v2100_v14  ;;  %v2128_v57 = vand.u32 2147483648, %v2100_v14  ;;  %v2126_v30 = vand.u32 2147483647, %v2100_v14  ;;  %vm2122_vm7 = vweird.f32 %v2100_v14 }
 0x5ab   :  { %v2114_v32 = vor.u32 1.1754944e-38, %v2113_v56  ;;  %vm2112_vm10 = vcmp.eq.f32.partialorder %v2111_v60, 8.507059e+37 }
 0x5ac   :  { %v2129_v37 = vor.u32 1.1754944e-38, %v2128_v57  ;;  %vm2127_vm11 = vcmp.eq.f32.partialorder %v2126_v30, 8.507059e+37 }
 0x5ad   :  { %v2377_v15 = vpop.eup %2376 }
 0x5ae   :  { %v2101_v3 = vadd.f32 1.0, %v2377_v15 }
 0x5af   :  { %v2379_v19 = vpop.eup %2378 }
 0x5b0   :  { %v2381_v23 = vpop.eup %2380  ;;  %v2103_v24 = vmul.f32 %v2379_v19, %v2099_v5  ;;  %2382 = vrcp.f32 %v2101_v3  ;;  %vm2108_vm4 = vweird.f32 %v2379_v19  ;;  %v2143_v21 = vand.u32 2147483648, %v2101_v3 }
 0x5b1   :  { %v2118_v43 = vmul.f32 %v2381_v23, %v2100_v14  ;;  %2384 = vtanh.f32 %v2089_v20  ;;  %vm2123_vm5 = vweird.f32 %v2381_v23  ;;  %vm2109_vm8 = vmor %vm2107_vm6, %vm2108_vm4  ;;  %vm2137_vm13 = vweird.f32 %v2101_v3 }
 0x5b2   :  { %v2104_v48 = vsub.f32 1.0, %v2103_v24  ;;  %vm2124_vm9 = vmor %vm2122_vm7, %vm2123_vm5  ;;  %v2141_v25 = vand.u32 2147483647, %v2101_v3  ;;  %v2144_v4 = vor.u32 1.1754944e-38, %v2143_v21 }
 0x5b3   :  { %v2119_v53 = vsub.f32 1.0, %v2118_v43 }
 0x5b4   :  { %v2105_v34 = vmul.f32 %v2379_v19, %v2104_v48  ;;  %vm2142_vm15 = vcmp.eq.f32.partialorder %v2141_v25, 8.507059e+37 }
 0x5b5   :  { %v2120_v39 = vmul.f32 %v2381_v23, %v2119_v53 }
 0x5b6   :  { %v2383_v29 = vpop.eup %2382  ;;  %v2106_v18 = vadd.f32 %v2379_v19, %v2105_v34 }
 0x5b7   :  { %v2133_v44 = vmul.f32 %v2383_v29, %v2101_v3  ;;  %v2121_v33 = vadd.f32 %v2381_v23, %v2120_v39  ;;  %v2385_v12 = vpop.eup %2384  ;;  %vm2138_vm12 = vweird.f32 %v2383_v29 }
 0x5b8   :  { %v2110_v50 = vsel %vm2109_vm8, %v2379_v19, %v2106_v18  ;;  %vm2139_vm14 = vmor %vm2137_vm13, %vm2138_vm12 }
 0x5b9   :  { %v2134_v54 = vsub.f32 1.0, %v2133_v44  ;;  %v2115_v42 = vsel %vm2112_vm10, %v2114_v32, %v2110_v50  ;;  %v2125_v58 = vsel %vm2124_vm9, %v2381_v23, %v2121_v33 }
 0x5ba   :  { %v2130_v59 = vsel %vm2127_vm11, %v2129_v37, %v2125_v58  ;;  %v2150_v62 = vmul.f32 %v2385_v12, %v2115_v42 }
 0x5bb   :  { %v2149_v63 = vmul.f32 %v2130_v59, %v3687_v41  ;;  %v2135_v49 = vmul.f32 %v2383_v29, %v2134_v54  ;;  %v2259_v41 = vld [vmem:[%s3706_s5] ss:$0 sm:$0xff] }
 0x5bd   :  { %v2151_v52 = vadd.f32 %v2150_v62, %v2149_v63  ;;  %v2136_v22 = vadd.f32 %v2383_v29, %v2135_v49 }
 0x5bf   :  { %2386 = vtanh.f32 %v2151_v52  ;;  %v2140_v38 = vsel %vm2139_vm14, %v2383_v29, %v2136_v22 }
 0x5c0   :  { %v2145_v46 = vsel %vm2142_vm15, %v2144_v4, %v2140_v38 }
 0x5c5   :  { %v2387_v45 = vpop.eup %2386 }
 0x5c6   :  { %v2154_v6 = vmul.f32 %v2387_v45, %v2145_v46 }
 0x5c8   :  { %2193 = vmatmul.f32.vlgmr.msrb.gmra.mxu0 %v2154_v6 }
 0x645   :  { %v2194_v47 = vpop.f32.mrf.mxu0 }
 0x646   :  { %v2195_v27 = vadd.f32 %v2259_v41, %v2194_v47 }
 0x648   :  { %2197 = vst [vmem:[#allocation14] sm:$0xff] %v2195_v27 }
 0x649   :  { %2208 = dma.vmem_to_hbm [thread:$0]  %s2204_s24, 128, %s2206_s27, [#allocation7]  }
 0x64a   :  { %2538 = dma.done.wait [#allocation7], 128  }
 0x64b   :  { %2539 = vsyncadd [#allocation7], 4294967168 }
 0x64c   :  { %2213 = vsyncpa [#allocation6], 1 }
 0x64d   :  { %2214 = vsyncpa [#allocation9], 1 }
 0x64e   :  { %2215 = vsyncpa [#allocation12], 1 }
 0x64f   :  { %2216 = vsyncpa [#allocation7], 1 }

</bundles_post_ra>
